<compile_context>
chip_gen: v7x
topology: tpu7x:2x2x1
jax: 0.10.0
libtpu: 0.0.40
codegen_flags: <defaults>
</compile_context>

<pallas_src>
import functools

import jax
import jax.numpy as jnp
from jax.experimental import pallas as pl
from jax.experimental.pallas import tpu as pltpu

HIDDEN = 256  # fixed by the PyTorch module
N_SQ = 6      # number of 256x256 weights in the hidden-side slab
N_BH = 9      # number of 256-wide biases in the bias slab


def _tpu_generation():
    """Best-effort TPU generation (0 = unknown); used only for defaults."""
    try:
        kind = jax.devices()[0].device_kind.lower()
    except Exception:
        return 0
    for g in (7, 6, 5, 4, 3, 2):
        if f"v{g}" in kind:
            return g
    return 0


# ----------------------------------- kernel -----------------------------------
def icm_kernel(x_ref, w_in_ref, w_st_ref, w_big_ref, b_ref, out_ref,
               *, reset_time, action_dim, off_a, bf16_act):
    tb = out_ref.shape[0]          # batch tile
    pw = out_ref.shape[1]          # packed output / feature lane width (>=128)
    f32 = jnp.float32
    adt = jnp.bfloat16 if bf16_act else jnp.float32   # VPU dtype for hidden layers

    def mm(x, w):
        # bf16 operands on the MXU, f32 accumulation.
        return jnp.dot(x.astype(jnp.bfloat16), w, preferred_element_type=f32)

    # Static 128-aligned lane slices of the VMEM-resident packed operands (free).
    H = HIDDEN
    w_in = lambda k: w_in_ref[:, k * H:(k + 1) * H]            # K = in_w
    w_st = lambda k: w_st_ref[:, k * H:(k + 1) * H]            # K = pw
    w_sq = lambda k: w_big_ref[:, k * H:(k + 1) * H]           # K = 256, N = 256
    w_pl = lambda k: w_big_ref[:, N_SQ * H + k * pw:N_SQ * H + (k + 1) * pw]  # N = pw
    b_h = lambda k: b_ref[:, k * H:(k + 1) * H]                # (1, 256) f32
    b_pl = lambda k: b_ref[:, N_BH * H + k * pw:N_BH * H + (k + 1) * pw]      # (1, pw)

    def hidden(x, w, b):
        # bias-add + ReLU in `adt` (bf16 on v6e/v7x), matmul accumulation in f32.
        acc = mm(x, w).astype(adt)
        return jnp.maximum(acc + b.astype(adt), 0.0)

    x = x_ref[...]                                             # (2*tb, in_w) bf16

    # ---- feature net: obs and next_obs in ONE batched pass (sublane-stacked) ----
    h = hidden(x, w_in(0), b_h(0))                             # L1 (row-placed f_w1)
    h = hidden(h, w_sq(0), b_h(1))                             # L2
    feat = mm(h, w_pl(0)) + b_pl(0)                            # L3, f32, state lanes
    state = feat[:tb]                                          # at [off_ns, off_ns+S)
    nstate = feat[tb:]                                         # zeros elsewhere (exact)

    # ---- inverse net: cat([state, next_state]) as split row-placed matmuls ----
    h = jnp.maximum((mm(state, w_st(0)) + mm(nstate, w_st(1)) + b_h(2)).astype(adt), 0.0)
    h = hidden(h, w_sq(1), b_h(3))
    logits = mm(h, w_pl(2 - 1)) + b_pl(1)                      # f32, action lanes at off_a
    lane = jax.lax.broadcasted_iota(jnp.int32, logits.shape, 1)
    valid = (lane >= off_a) & (lane < off_a + action_dim)
    ml = jnp.where(valid, logits, -1e30)                       # masked softmax over pw lanes
    m = jnp.max(ml, axis=-1, keepdims=True)
    e = jnp.exp(ml - m)                                        # exactly 0 on invalid lanes
    # approx reciprocal: rows sum to 1 only to ~1e-3 relative accuracy.
    pred_action = e * pl.reciprocal(jnp.sum(e, axis=-1, keepdims=True), approx=True)

    # ---- forward_net_1: cat([state, action]) via split row-placed matmuls ----
    # (action comes straight from the packed-input lanes through w_in(1))
    h = jnp.maximum((mm(state, w_st(2)) + mm(x[:tb], w_in(1)) + b_h(4)).astype(adt), 0.0)
    pred_state = mm(h, w_sq(2)) + b_h(5)                       # f32 residual accumulator

    # ---- reset blocks (ONE shared parameter set, residual) ----
    rb1 = jnp.broadcast_to(b_h(6), (tb, H)).astype(adt)        # hoisted broadcasts
    rb2 = jnp.broadcast_to(b_h(7), (tb, H)).astype(adt)

    def rnet(v):
        t = jnp.maximum(mm(v, w_sq(3)).astype(adt) + rb1, 0.0)
        return jnp.maximum(mm(t, w_sq(4)).astype(adt) + rb2, 0.0)

    def reset_step(_, ps):
        return rnet(rnet(ps)).astype(f32) + ps

    if reset_time <= 4:
        for _ in range(reset_time):
            pred_state = reset_step(0, pred_state)
    else:
        # bound live ranges for long chains, keep some LLO scheduling visibility
        pred_state = jax.lax.fori_loop(0, reset_time, reset_step, pred_state, unroll=2)

    # ---- forward_net_2 (L2 weight/bias are column-placed -> lane-dense output) ----
    h = hidden(pred_state, w_sq(5), b_h(8))
    ps_packed = mm(h, w_pl(2)) + b_pl(2)                       # f32, state lanes at off_ps

    # ---- lane-dense store: disjoint lane supports, complementary lanes exact 0 ----
    out_ref[...] = pred_action + ps_packed + nstate


# --------------------------------- parameters ---------------------------------
def make_params(key, observation_dim, action_dim, state_dim):
    """Deterministic synthetic parameters. Weights are (in, out), biases (1, out)."""
    def lin(k, fan_in, fan_out, scale=0.05):
        kw, kb = jax.random.split(k)
        w = scale * jax.random.normal(kw, (fan_in, fan_out), jnp.float32)
        b = scale * jax.random.normal(kb, (1, fan_out), jnp.float32)
        return w, b

    keys = jax.random.split(key, 16)
    p = {}
    p["f_w1"], p["f_b1"] = lin(keys[0], observation_dim, HIDDEN)
    p["f_w2"], p["f_b2"] = lin(keys[1], HIDDEN, HIDDEN)
    p["f_w3"], p["f_b3"] = lin(keys[2], HIDDEN, state_dim)
    w1, p["i_b1"] = lin(keys[3], 2 * state_dim, HIDDEN)
    p["i_w1a"], p["i_w1b"] = w1[:state_dim], w1[state_dim:]
    p["i_w2"], p["i_b2"] = lin(keys[4], HIDDEN, HIDDEN)
    p["i_w3"], p["i_b3"] = lin(keys[5], HIDDEN, action_dim)
    w1, p["g1_b1"] = lin(keys[6], state_dim + action_dim, HIDDEN)
    p["g1_w1a"], p["g1_w1b"] = w1[:state_dim], w1[state_dim:]
    p["g1_w2"], p["g1_b2"] = lin(keys[7], HIDDEN, HIDDEN)
    p["r_w1"], p["r_b1"] = lin(keys[8], HIDDEN, HIDDEN)
    p["r_w2"], p["r_b2"] = lin(keys[9], HIDDEN, HIDDEN)
    p["g2_w1"], p["g2_b1"] = lin(keys[10], HIDDEN, HIDDEN)
    p["g2_w2"], p["g2_b2"] = lin(keys[11], HIDDEN, state_dim)
    return p


# ---------------------------------- wrapper -----------------------------------
def icm_forward(observation, action, next_observation, params, *, reset_time,
                action_dim, state_dim, tile_b=None, bf16_act=None):
    B, obs_dim = observation.shape
    H = HIDDEN
    gen = _tpu_generation()
    if bf16_act is None:
        bf16_act = gen >= 6                        # native bf16 VPU on v6e/v7x only

    # ---- batch tile: big tiles (>=256 preferred), guarantee >=2 grid steps ----
    if tile_b is None:
        cap = 512 if gen >= 6 else 256             # v5e: M=128/256 already fills MXU
        cands = [c for c in (512, 256, 128, 64, 32, 16, 8) if c <= cap]
        tile_b = next((c for c in cands if B % c == 0 and B // c >= 2), None)
        if tile_b is None:
            tile_b = next((c for c in cands if B % c == 0), B)
    assert B % tile_b == 0, "batch must be divisible by tile_b"
    nb = B // tile_b

    # ---- packed output layout: [pred_action | pred_state | next_state | pad] ----
    A, S = action_dim, state_dim
    off_a, off_ps, off_ns = 0, A, A + S
    pack_w = ((A + 2 * S + 127) // 128) * 128
    in_w = ((obs_dim + A + 127) // 128) * 128

    f32 = jnp.float32

    def rows(w, k_total, off):                     # place rows of w into (k_total, n)
        return jnp.zeros((k_total, w.shape[1]), f32).at[off:off + w.shape[0]].set(w)

    def cols(w, n_total, off):                     # place cols of w into (k, n_total)
        return jnp.zeros((w.shape[0], n_total), f32).at[:, off:off + w.shape[1]].set(w)

    p = params
    # input-side slab (K = in_w): [feature L1 | forward_net_1 L1 action-part]
    w_in_s = jnp.concatenate([rows(p["f_w1"], in_w, 0),
                              rows(p["g1_w1b"], in_w, obs_dim)], axis=1).astype(jnp.bfloat16)
    # state-side slab (K = pack_w; state features live at lanes [off_ns, off_ns+S))
    w_st_s = jnp.concatenate([rows(p["i_w1a"], pack_w, off_ns),
                              rows(p["i_w1b"], pack_w, off_ns),
                              rows(p["g1_w1a"], pack_w, off_ns)], axis=1).astype(jnp.bfloat16)
    # hidden-side slab (K = 256): six square weights + three column-placed heads
    w_big_s = jnp.concatenate([p["f_w2"], p["i_w2"], p["g1_w2"],
                               p["r_w1"], p["r_w2"], p["g2_w1"],
                               cols(p["f_w3"], pack_w, off_ns),
                               cols(p["i_w3"], pack_w, off_a),
                               cols(p["g2_w2"], pack_w, off_ps)], axis=1).astype(jnp.bfloat16)
    # bias slab (f32)
    b_slab = jnp.concatenate([p["f_b1"], p["f_b2"], p["i_b1"], p["i_b2"],
                              p["g1_b1"], p["g1_b2"], p["r_b1"], p["r_b2"], p["g2_b1"],
                              cols(p["f_b3"], pack_w, off_ns),
                              cols(p["i_b3"], pack_w, off_a),
                              cols(p["g2_b2"], pack_w, off_ps)], axis=1)

    # ---- single lane-dense bf16 input slab per tile: [obs|act|pad ; nobs|0|pad] ----
    obs_t = observation.reshape(nb, tile_b, obs_dim).astype(f32)
    nobs_t = next_observation.reshape(nb, tile_b, obs_dim).astype(f32)
    act_t = action.reshape(nb, tile_b, A).astype(f32)
    top = jnp.concatenate([obs_t, act_t], axis=2)
    bot = jnp.concatenate([nobs_t, jnp.zeros_like(act_t)], axis=2)
    x2 = jnp.concatenate([top, bot], axis=1)                       # (nb, 2*tb, obs+A)
    x2 = jnp.pad(x2, ((0, 0), (0, 0), (0, in_w - (obs_dim + A))))
    x2 = x2.reshape(nb * 2 * tile_b, in_w).astype(jnp.bfloat16)

    const = lambda arr: pl.BlockSpec(arr.shape, lambda i: (0, 0))  # VMEM-resident
    in_specs = [
        pl.BlockSpec((2 * tile_b, in_w), lambda i: (i, 0)),
        const(w_in_s), const(w_st_s), const(w_big_s), const(b_slab),
    ]
    out_spec = pl.BlockSpec((tile_b, pack_w), lambda i: (i, 0))

    kernel = functools.partial(icm_kernel, reset_time=reset_time,
                               action_dim=A, off_a=off_a, bf16_act=bf16_act)
    packed = pl.pallas_call(
        kernel,
        out_shape=jax.ShapeDtypeStruct((B, pack_w), jnp.float32),
        grid_spec=pltpu.PrefetchScalarGridSpec(
            num_scalar_prefetch=0,
            grid=(nb,),
            in_specs=in_specs,
            out_specs=out_spec,
        ),
        compiler_params=pltpu.CompilerParams(
            dimension_semantics=("parallel",),     # megacore sharding on v7x
            vmem_limit_bytes=16 * 1024 * 1024,     # ~2 MiB weights + small tiles
        ),
    )(x2, w_in_s, w_st_s, w_big_s, b_slab)

    pred_action = packed[:, off_a:off_a + A]
    pred_state = packed[:, off_ps:off_ps + S]
    next_state = packed[:, off_ns:off_ns + S]
    return pred_action, pred_state, next_state


# ------------------- pure-JAX f32 reference (for verification) -------------------
def icm_reference(observation, action, next_observation, p, *, reset_time):
    relu = lambda x: jnp.maximum(x, 0.0)

    def feature(x):
        h = relu(x @ p["f_w1"] + p["f_b1"])
        h = relu(h @ p["f_w2"] + p["f_b2"])
        return h @ p["f_w3"] + p["f_b3"]

    state = feature(observation)
    next_state = feature(next_observation)

    h = relu(state @ p["i_w1a"] + next_state @ p["i_w1b"] + p["i_b1"])
    h = relu(h @ p["i_w2"] + p["i_b2"])
    logits = h @ p["i_w3"] + p["i_b3"]
    pred_action = jax.nn.softmax(logits, axis=1)

    h = relu(state @ p["g1_w1a"] + action @ p["g1_w1b"] + p["g1_b1"])
    pred_state = h @ p["g1_w2"] + p["g1_b2"]

    def rnet(x):
        t = relu(x @ p["r_w1"] + p["r_b1"])
        return relu(t @ p["r_w2"] + p["r_b2"])

    for _ in range(reset_time):
        pred_state = rnet(rnet(pred_state)) + pred_state

    h = relu(pred_state @ p["g2_w1"] + p["g2_b1"])
    pred_state = h @ p["g2_w2"] + p["g2_b2"]
    return pred_action, pred_state, next_state


if __name__ == "__main__":
    # Small module-consistent sizes; tile_b=16 forces a 4-step batch grid so the
    # pipelined / VMEM-resident-weight / parallel-semantics path is exercised.
    B = 64
    observation_dim = 16
    action_dim = 4
    state_dim = 32
    reset_time = 2
    tile_b = 16

    key = jax.random.PRNGKey(0)
    k_obs, k_act, k_nobs, k_params = jax.random.split(key, 4)

    observation = jax.random.normal(k_obs, (B, observation_dim), jnp.float32)
    next_observation = jax.random.normal(k_nobs, (B, observation_dim), jnp.float32)
    act_idx = jax.random.randint(k_act, (B,), 0, action_dim)
    action = jax.nn.one_hot(act_idx, action_dim, dtype=jnp.float32)

    params = make_params(k_params, observation_dim, action_dim, state_dim)

    pred_action, pred_state, next_state = jax.block_until_ready(
        icm_forward(observation, action, next_observation, params,
                    reset_time=reset_time, action_dim=action_dim,
                    state_dim=state_dim, tile_b=tile_b)
    )

    ref_pa, ref_ps, ref_ns = icm_reference(
        observation, action, next_observation, params, reset_time=reset_time)

    assert pred_action.shape == (B, action_dim)
    assert pred_state.shape == (B, state_dim)
    assert next_state.shape == (B, state_dim)
    # bf16 MXU matmuls (+ optional bf16 activations) + approx softmax reciprocal:
    # compare to the f32 reference with a correspondingly loosened tolerance.
    assert jnp.allclose(pred_action, ref_pa, atol=2e-2, rtol=2e-2), \
        float(jnp.max(jnp.abs(pred_action - ref_pa)))
    assert jnp.allclose(pred_state, ref_ps, atol=2e-2, rtol=2e-2), \
        float(jnp.max(jnp.abs(pred_state - ref_ps)))
    assert jnp.allclose(next_state, ref_ns, atol=2e-2, rtol=2e-2), \
        float(jnp.max(jnp.abs(next_state - ref_ns)))

    print("KERNEL_OK")
</pallas_src>

<mosaic_0001>
module attributes {stable_mosaic.version = 11 : i64} {
  func.func @icm_kernel(%arg0: i32, %arg1: memref<32x128xbf16, #tpu.memory_space<vmem>>, %arg2: memref<128x512xbf16, #tpu.memory_space<vmem>>, %arg3: memref<128x768xbf16, #tpu.memory_space<vmem>>, %arg4: memref<256x1920xbf16, #tpu.memory_space<vmem>>, %arg5: memref<1x2688xf32, #tpu.memory_space<vmem>>, %arg6: memref<16x128xf32, #tpu.memory_space<vmem>>) attributes {dimension_semantics = [#tpu.dimension_semantics<parallel>], iteration_bounds = array<i64: 4>, scalar_prefetch = 0 : i64, scratch_operands = 0 : i64, tpu.core_type = #tpu.core_type<tc>, window_params = [{transform_indices = @transform_0, window_bounds = array<i64: 32, 128>}, {pipeline_mode = #tpu.pipeline_mode<synchronous>, transform_indices = @transform_1, window_bounds = array<i64: 128, 512>}, {pipeline_mode = #tpu.pipeline_mode<synchronous>, transform_indices = @transform_2, window_bounds = array<i64: 128, 768>}, {pipeline_mode = #tpu.pipeline_mode<synchronous>, transform_indices = @transform_3, window_bounds = array<i64: 256, 1920>}, {pipeline_mode = #tpu.pipeline_mode<synchronous>, transform_indices = @transform_4, window_bounds = array<i64: 1, 2688>}, {transform_indices = @transform_5, window_bounds = array<i64: 16, 128>}]} {
    %c0 = arith.constant 0 : index
    %c0_0 = arith.constant 0 : index
    %0 = vector.load %arg1[%c0, %c0_0] : memref<32x128xbf16, #tpu.memory_space<vmem>>, vector<32x128xbf16>
    %c0_1 = arith.constant 0 : index
    %c0_2 = arith.constant 0 : index
    %1 = vector.load %arg2[%c0_1, %c0_2] : memref<128x512xbf16, #tpu.memory_space<vmem>>, vector<128x256xbf16>
    %c0_3 = arith.constant 0 : index
    %c0_4 = arith.constant 0 : index
    %2 = vector.load %arg5[%c0_3, %c0_4] : memref<1x2688xf32, #tpu.memory_space<vmem>>, vector<1x256xf32>
    %cst = arith.constant dense<0.000000e+00> : vector<32x256xf32>
    %3 = tpu.matmul %0, %1, %cst {dimension_numbers = #tpu.dot_dimension_numbers<[1], [0], [0], [1], [0, 0, 1, 1], [], []>} : vector<32x128xbf16>, vector<128x256xbf16>, vector<32x256xf32> -> vector<32x256xf32>
    %4 = vector.broadcast %2 : vector<1x256xf32> to vector<32x256xf32>
    %5 = arith.addf %3, %4 : vector<32x256xf32>
    %cst_5 = arith.constant 0.000000e+00 : f32
    %6 = vector.broadcast %cst_5 : f32 to vector<32x256xf32>
    %7 = arith.maximumf %5, %6 : vector<32x256xf32>
    %c0_6 = arith.constant 0 : index
    %c0_7 = arith.constant 0 : index
    %8 = vector.load %arg4[%c0_6, %c0_7] : memref<256x1920xbf16, #tpu.memory_space<vmem>>, vector<256x256xbf16>
    %c0_8 = arith.constant 0 : index
    %c256 = arith.constant 256 : index
    %9 = vector.load %arg5[%c0_8, %c256] : memref<1x2688xf32, #tpu.memory_space<vmem>>, vector<1x256xf32>
    %10 = arith.truncf %7 : vector<32x256xf32> to vector<32x256xbf16>
    %cst_9 = arith.constant dense<0.000000e+00> : vector<32x256xf32>
    %11 = tpu.matmul %10, %8, %cst_9 {dimension_numbers = #tpu.dot_dimension_numbers<[1], [0], [0], [1], [0, 0, 1, 1], [], []>} : vector<32x256xbf16>, vector<256x256xbf16>, vector<32x256xf32> -> vector<32x256xf32>
    %12 = vector.broadcast %9 : vector<1x256xf32> to vector<32x256xf32>
    %13 = arith.addf %11, %12 : vector<32x256xf32>
    %cst_10 = arith.constant 0.000000e+00 : f32
    %14 = vector.broadcast %cst_10 : f32 to vector<32x256xf32>
    %15 = arith.maximumf %13, %14 : vector<32x256xf32>
    %c0_11 = arith.constant 0 : index
    %c1536 = arith.constant 1536 : index
    %16 = vector.load %arg4[%c0_11, %c1536] : memref<256x1920xbf16, #tpu.memory_space<vmem>>, vector<256x128xbf16>
    %17 = arith.truncf %15 : vector<32x256xf32> to vector<32x256xbf16>
    %cst_12 = arith.constant dense<0.000000e+00> : vector<32x128xf32>
    %18 = tpu.matmul %17, %16, %cst_12 {dimension_numbers = #tpu.dot_dimension_numbers<[1], [0], [0], [1], [0, 0, 1, 1], [], []>} : vector<32x256xbf16>, vector<256x128xbf16>, vector<32x128xf32> -> vector<32x128xf32>
    %c0_13 = arith.constant 0 : index
    %c2304 = arith.constant 2304 : index
    %19 = vector.load %arg5[%c0_13, %c2304] : memref<1x2688xf32, #tpu.memory_space<vmem>>, vector<1x128xf32>
    %20 = vector.broadcast %19 : vector<1x128xf32> to vector<32x128xf32>
    %21 = arith.addf %18, %20 : vector<32x128xf32>
    %22 = vector.extract_strided_slice %21 {offsets = [0, 0], sizes = [16, 128], strides = [1, 1]} : vector<32x128xf32> to vector<16x128xf32>
    %23 = vector.extract_strided_slice %21 {offsets = [16, 0], sizes = [16, 128], strides = [1, 1]} : vector<32x128xf32> to vector<16x128xf32>
    %c0_14 = arith.constant 0 : index
    %c0_15 = arith.constant 0 : index
    %24 = vector.load %arg3[%c0_14, %c0_15] : memref<128x768xbf16, #tpu.memory_space<vmem>>, vector<128x256xbf16>
    %25 = arith.truncf %22 : vector<16x128xf32> to vector<16x128xbf16>
    %cst_16 = arith.constant dense<0.000000e+00> : vector<16x256xf32>
    %26 = tpu.matmul %25, %24, %cst_16 {dimension_numbers = #tpu.dot_dimension_numbers<[1], [0], [0], [1], [0, 0, 1, 1], [], []>} : vector<16x128xbf16>, vector<128x256xbf16>, vector<16x256xf32> -> vector<16x256xf32>
    %c0_17 = arith.constant 0 : index
    %c256_18 = arith.constant 256 : index
    %27 = vector.load %arg3[%c0_17, %c256_18] : memref<128x768xbf16, #tpu.memory_space<vmem>>, vector<128x256xbf16>
    %28 = arith.truncf %23 : vector<16x128xf32> to vector<16x128xbf16>
    %cst_19 = arith.constant dense<0.000000e+00> : vector<16x256xf32>
    %29 = tpu.matmul %28, %27, %cst_19 {dimension_numbers = #tpu.dot_dimension_numbers<[1], [0], [0], [1], [0, 0, 1, 1], [], []>} : vector<16x128xbf16>, vector<128x256xbf16>, vector<16x256xf32> -> vector<16x256xf32>
    %30 = arith.addf %26, %29 : vector<16x256xf32>
    %c0_20 = arith.constant 0 : index
    %c512 = arith.constant 512 : index
    %31 = vector.load %arg5[%c0_20, %c512] : memref<1x2688xf32, #tpu.memory_space<vmem>>, vector<1x256xf32>
    %32 = vector.broadcast %31 : vector<1x256xf32> to vector<16x256xf32>
    %33 = arith.addf %30, %32 : vector<16x256xf32>
    %cst_21 = arith.constant 0.000000e+00 : f32
    %34 = vector.broadcast %cst_21 : f32 to vector<16x256xf32>
    %35 = arith.maximumf %33, %34 : vector<16x256xf32>
    %c0_22 = arith.constant 0 : index
    %c256_23 = arith.constant 256 : index
    %36 = vector.load %arg4[%c0_22, %c256_23] : memref<256x1920xbf16, #tpu.memory_space<vmem>>, vector<256x256xbf16>
    %c0_24 = arith.constant 0 : index
    %c768 = arith.constant 768 : index
    %37 = vector.load %arg5[%c0_24, %c768] : memref<1x2688xf32, #tpu.memory_space<vmem>>, vector<1x256xf32>
    %38 = arith.truncf %35 : vector<16x256xf32> to vector<16x256xbf16>
    %cst_25 = arith.constant dense<0.000000e+00> : vector<16x256xf32>
    %39 = tpu.matmul %38, %36, %cst_25 {dimension_numbers = #tpu.dot_dimension_numbers<[1], [0], [0], [1], [0, 0, 1, 1], [], []>} : vector<16x256xbf16>, vector<256x256xbf16>, vector<16x256xf32> -> vector<16x256xf32>
    %40 = vector.broadcast %37 : vector<1x256xf32> to vector<16x256xf32>
    %41 = arith.addf %39, %40 : vector<16x256xf32>
    %cst_26 = arith.constant 0.000000e+00 : f32
    %42 = vector.broadcast %cst_26 : f32 to vector<16x256xf32>
    %43 = arith.maximumf %41, %42 : vector<16x256xf32>
    %c0_27 = arith.constant 0 : index
    %c1664 = arith.constant 1664 : index
    %44 = vector.load %arg4[%c0_27, %c1664] : memref<256x1920xbf16, #tpu.memory_space<vmem>>, vector<256x128xbf16>
    %45 = arith.truncf %43 : vector<16x256xf32> to vector<16x256xbf16>
    %cst_28 = arith.constant dense<0.000000e+00> : vector<16x128xf32>
    %46 = tpu.matmul %45, %44, %cst_28 {dimension_numbers = #tpu.dot_dimension_numbers<[1], [0], [0], [1], [0, 0, 1, 1], [], []>} : vector<16x256xbf16>, vector<256x128xbf16>, vector<16x128xf32> -> vector<16x128xf32>
    %c0_29 = arith.constant 0 : index
    %c2432 = arith.constant 2432 : index
    %47 = vector.load %arg5[%c0_29, %c2432] : memref<1x2688xf32, #tpu.memory_space<vmem>>, vector<1x128xf32>
    %48 = vector.broadcast %47 : vector<1x128xf32> to vector<16x128xf32>
    %49 = arith.addf %46, %48 : vector<16x128xf32>
    %50 = tpu.iota {dimensions = array<i32: 1>} : vector<16x128xi32>
    %c0_i32 = arith.constant 0 : i32
    %51 = vector.broadcast %c0_i32 : i32 to vector<16x128xi32>
    %52 = arith.cmpi sge, %50, %51 : vector<16x128xi32>
    %c4_i32 = arith.constant 4 : i32
    %53 = vector.broadcast %c4_i32 : i32 to vector<16x128xi32>
    %54 = arith.cmpi slt, %50, %53 : vector<16x128xi32>
    %55 = arith.andi %52, %54 : vector<16x128xi1>
    %cst_30 = arith.constant -1.000000e+30 : f32
    %56 = vector.broadcast %cst_30 : f32 to vector<16x128xf32>
    %57 = arith.select %55, %49, %56 : vector<16x128xi1>, vector<16x128xf32>
    %cst_31 = arith.constant dense<0xFF800000> : vector<16xf32>
    %58 = vector.multi_reduction <maximumf>, %57, %cst_31 [1] : vector<16x128xf32> to vector<16xf32>
    %59 = vector.shape_cast %58 : vector<16xf32> to vector<16x1xf32>
    %60 = vector.broadcast %59 : vector<16x1xf32> to vector<16x128xf32>
    %61 = arith.subf %57, %60 : vector<16x128xf32>
    %62 = math.exp %61 : vector<16x128xf32>
    %cst_32 = arith.constant dense<0.000000e+00> : vector<16xf32>
    %63 = vector.multi_reduction <add>, %62, %cst_32 [1] : vector<16x128xf32> to vector<16xf32>
    %64 = vector.shape_cast %63 : vector<16xf32> to vector<16x1xf32>
    %65 = tpu.reciprocal %64 {approx = true} : vector<16x1xf32> -> vector<16x1xf32>
    %66 = vector.broadcast %65 : vector<16x1xf32> to vector<16x128xf32>
    %67 = arith.mulf %62, %66 : vector<16x128xf32>
    %c0_33 = arith.constant 0 : index
    %c512_34 = arith.constant 512 : index
    %68 = vector.load %arg3[%c0_33, %c512_34] : memref<128x768xbf16, #tpu.memory_space<vmem>>, vector<128x256xbf16>
    %69 = arith.truncf %22 : vector<16x128xf32> to vector<16x128xbf16>
    %cst_35 = arith.constant dense<0.000000e+00> : vector<16x256xf32>
    %70 = tpu.matmul %69, %68, %cst_35 {dimension_numbers = #tpu.dot_dimension_numbers<[1], [0], [0], [1], [0, 0, 1, 1], [], []>} : vector<16x128xbf16>, vector<128x256xbf16>, vector<16x256xf32> -> vector<16x256xf32>
    %71 = vector.extract_strided_slice %0 {offsets = [0, 0], sizes = [16, 128], strides = [1, 1]} : vector<32x128xbf16> to vector<16x128xbf16>
    %c0_36 = arith.constant 0 : index
    %c256_37 = arith.constant 256 : index
    %72 = vector.load %arg2[%c0_36, %c256_37] : memref<128x512xbf16, #tpu.memory_space<vmem>>, vector<128x256xbf16>
    %cst_38 = arith.constant dense<0.000000e+00> : vector<16x256xf32>
    %73 = tpu.matmul %71, %72, %cst_38 {dimension_numbers = #tpu.dot_dimension_numbers<[1], [0], [0], [1], [0, 0, 1, 1], [], []>} : vector<16x128xbf16>, vector<128x256xbf16>, vector<16x256xf32> -> vector<16x256xf32>
    %74 = arith.addf %70, %73 : vector<16x256xf32>
    %c0_39 = arith.constant 0 : index
    %c1024 = arith.constant 1024 : index
    %75 = vector.load %arg5[%c0_39, %c1024] : memref<1x2688xf32, #tpu.memory_space<vmem>>, vector<1x256xf32>
    %76 = vector.broadcast %75 : vector<1x256xf32> to vector<16x256xf32>
    %77 = arith.addf %74, %76 : vector<16x256xf32>
    %cst_40 = arith.constant 0.000000e+00 : f32
    %78 = vector.broadcast %cst_40 : f32 to vector<16x256xf32>
    %79 = arith.maximumf %77, %78 : vector<16x256xf32>
    %c0_41 = arith.constant 0 : index
    %c512_42 = arith.constant 512 : index
    %80 = vector.load %arg4[%c0_41, %c512_42] : memref<256x1920xbf16, #tpu.memory_space<vmem>>, vector<256x256xbf16>
    %81 = arith.truncf %79 : vector<16x256xf32> to vector<16x256xbf16>
    %cst_43 = arith.constant dense<0.000000e+00> : vector<16x256xf32>
    %82 = tpu.matmul %81, %80, %cst_43 {dimension_numbers = #tpu.dot_dimension_numbers<[1], [0], [0], [1], [0, 0, 1, 1], [], []>} : vector<16x256xbf16>, vector<256x256xbf16>, vector<16x256xf32> -> vector<16x256xf32>
    %c0_44 = arith.constant 0 : index
    %c1280 = arith.constant 1280 : index
    %83 = vector.load %arg5[%c0_44, %c1280] : memref<1x2688xf32, #tpu.memory_space<vmem>>, vector<1x256xf32>
    %84 = vector.broadcast %83 : vector<1x256xf32> to vector<16x256xf32>
    %85 = arith.addf %82, %84 : vector<16x256xf32>
    %c0_45 = arith.constant 0 : index
    %c1536_46 = arith.constant 1536 : index
    %86 = vector.load %arg5[%c0_45, %c1536_46] : memref<1x2688xf32, #tpu.memory_space<vmem>>, vector<1x256xf32>
    %87 = vector.shape_cast %86 : vector<1x256xf32> to vector<1x256xf32>
    %88 = vector.broadcast %87 : vector<1x256xf32> to vector<16x256xf32>
    %c0_47 = arith.constant 0 : index
    %c1792 = arith.constant 1792 : index
    %89 = vector.load %arg5[%c0_47, %c1792] : memref<1x2688xf32, #tpu.memory_space<vmem>>, vector<1x256xf32>
    %90 = vector.shape_cast %89 : vector<1x256xf32> to vector<1x256xf32>
    %91 = vector.broadcast %90 : vector<1x256xf32> to vector<16x256xf32>
    %c0_48 = arith.constant 0 : index
    %c768_49 = arith.constant 768 : index
    %92 = vector.load %arg4[%c0_48, %c768_49] : memref<256x1920xbf16, #tpu.memory_space<vmem>>, vector<256x256xbf16>
    %93 = arith.truncf %85 : vector<16x256xf32> to vector<16x256xbf16>
    %cst_50 = arith.constant dense<0.000000e+00> : vector<16x256xf32>
    %94 = tpu.matmul %93, %92, %cst_50 {dimension_numbers = #tpu.dot_dimension_numbers<[1], [0], [0], [1], [0, 0, 1, 1], [], []>} : vector<16x256xbf16>, vector<256x256xbf16>, vector<16x256xf32> -> vector<16x256xf32>
    %95 = arith.addf %94, %88 : vector<16x256xf32>
    %cst_51 = arith.constant 0.000000e+00 : f32
    %96 = vector.broadcast %cst_51 : f32 to vector<16x256xf32>
    %97 = arith.maximumf %95, %96 : vector<16x256xf32>
    %c0_52 = arith.constant 0 : index
    %c1024_53 = arith.constant 1024 : index
    %98 = vector.load %arg4[%c0_52, %c1024_53] : memref<256x1920xbf16, #tpu.memory_space<vmem>>, vector<256x256xbf16>
    %99 = arith.truncf %97 : vector<16x256xf32> to vector<16x256xbf16>
    %cst_54 = arith.constant dense<0.000000e+00> : vector<16x256xf32>
    %100 = tpu.matmul %99, %98, %cst_54 {dimension_numbers = #tpu.dot_dimension_numbers<[1], [0], [0], [1], [0, 0, 1, 1], [], []>} : vector<16x256xbf16>, vector<256x256xbf16>, vector<16x256xf32> -> vector<16x256xf32>
    %101 = arith.addf %100, %91 : vector<16x256xf32>
    %cst_55 = arith.constant 0.000000e+00 : f32
    %102 = vector.broadcast %cst_55 : f32 to vector<16x256xf32>
    %103 = arith.maximumf %101, %102 : vector<16x256xf32>
    %c0_56 = arith.constant 0 : index
    %c768_57 = arith.constant 768 : index
    %104 = vector.load %arg4[%c0_56, %c768_57] : memref<256x1920xbf16, #tpu.memory_space<vmem>>, vector<256x256xbf16>
    %105 = arith.truncf %103 : vector<16x256xf32> to vector<16x256xbf16>
    %cst_58 = arith.constant dense<0.000000e+00> : vector<16x256xf32>
    %106 = tpu.matmul %105, %104, %cst_58 {dimension_numbers = #tpu.dot_dimension_numbers<[1], [0], [0], [1], [0, 0, 1, 1], [], []>} : vector<16x256xbf16>, vector<256x256xbf16>, vector<16x256xf32> -> vector<16x256xf32>
    %107 = arith.addf %106, %88 : vector<16x256xf32>
    %cst_59 = arith.constant 0.000000e+00 : f32
    %108 = vector.broadcast %cst_59 : f32 to vector<16x256xf32>
    %109 = arith.maximumf %107, %108 : vector<16x256xf32>
    %c0_60 = arith.constant 0 : index
    %c1024_61 = arith.constant 1024 : index
    %110 = vector.load %arg4[%c0_60, %c1024_61] : memref<256x1920xbf16, #tpu.memory_space<vmem>>, vector<256x256xbf16>
    %111 = arith.truncf %109 : vector<16x256xf32> to vector<16x256xbf16>
    %cst_62 = arith.constant dense<0.000000e+00> : vector<16x256xf32>
    %112 = tpu.matmul %111, %110, %cst_62 {dimension_numbers = #tpu.dot_dimension_numbers<[1], [0], [0], [1], [0, 0, 1, 1], [], []>} : vector<16x256xbf16>, vector<256x256xbf16>, vector<16x256xf32> -> vector<16x256xf32>
    %113 = arith.addf %112, %91 : vector<16x256xf32>
    %cst_63 = arith.constant 0.000000e+00 : f32
    %114 = vector.broadcast %cst_63 : f32 to vector<16x256xf32>
    %115 = arith.maximumf %113, %114 : vector<16x256xf32>
    %116 = arith.addf %115, %85 : vector<16x256xf32>
    %c0_64 = arith.constant 0 : index
    %c768_65 = arith.constant 768 : index
    %117 = vector.load %arg4[%c0_64, %c768_65] : memref<256x1920xbf16, #tpu.memory_space<vmem>>, vector<256x256xbf16>
    %118 = arith.truncf %116 : vector<16x256xf32> to vector<16x256xbf16>
    %cst_66 = arith.constant dense<0.000000e+00> : vector<16x256xf32>
    %119 = tpu.matmul %118, %117, %cst_66 {dimension_numbers = #tpu.dot_dimension_numbers<[1], [0], [0], [1], [0, 0, 1, 1], [], []>} : vector<16x256xbf16>, vector<256x256xbf16>, vector<16x256xf32> -> vector<16x256xf32>
    %120 = arith.addf %119, %88 : vector<16x256xf32>
    %cst_67 = arith.constant 0.000000e+00 : f32
    %121 = vector.broadcast %cst_67 : f32 to vector<16x256xf32>
    %122 = arith.maximumf %120, %121 : vector<16x256xf32>
    %c0_68 = arith.constant 0 : index
    %c1024_69 = arith.constant 1024 : index
    %123 = vector.load %arg4[%c0_68, %c1024_69] : memref<256x1920xbf16, #tpu.memory_space<vmem>>, vector<256x256xbf16>
    %124 = arith.truncf %122 : vector<16x256xf32> to vector<16x256xbf16>
    %cst_70 = arith.constant dense<0.000000e+00> : vector<16x256xf32>
    %125 = tpu.matmul %124, %123, %cst_70 {dimension_numbers = #tpu.dot_dimension_numbers<[1], [0], [0], [1], [0, 0, 1, 1], [], []>} : vector<16x256xbf16>, vector<256x256xbf16>, vector<16x256xf32> -> vector<16x256xf32>
    %126 = arith.addf %125, %91 : vector<16x256xf32>
    %cst_71 = arith.constant 0.000000e+00 : f32
    %127 = vector.broadcast %cst_71 : f32 to vector<16x256xf32>
    %128 = arith.maximumf %126, %127 : vector<16x256xf32>
    %c0_72 = arith.constant 0 : index
    %c768_73 = arith.constant 768 : index
    %129 = vector.load %arg4[%c0_72, %c768_73] : memref<256x1920xbf16, #tpu.memory_space<vmem>>, vector<256x256xbf16>
    %130 = arith.truncf %128 : vector<16x256xf32> to vector<16x256xbf16>
    %cst_74 = arith.constant dense<0.000000e+00> : vector<16x256xf32>
    %131 = tpu.matmul %130, %129, %cst_74 {dimension_numbers = #tpu.dot_dimension_numbers<[1], [0], [0], [1], [0, 0, 1, 1], [], []>} : vector<16x256xbf16>, vector<256x256xbf16>, vector<16x256xf32> -> vector<16x256xf32>
    %132 = arith.addf %131, %88 : vector<16x256xf32>
    %cst_75 = arith.constant 0.000000e+00 : f32
    %133 = vector.broadcast %cst_75 : f32 to vector<16x256xf32>
    %134 = arith.maximumf %132, %133 : vector<16x256xf32>
    %c0_76 = arith.constant 0 : index
    %c1024_77 = arith.constant 1024 : index
    %135 = vector.load %arg4[%c0_76, %c1024_77] : memref<256x1920xbf16, #tpu.memory_space<vmem>>, vector<256x256xbf16>
    %136 = arith.truncf %134 : vector<16x256xf32> to vector<16x256xbf16>
    %cst_78 = arith.constant dense<0.000000e+00> : vector<16x256xf32>
    %137 = tpu.matmul %136, %135, %cst_78 {dimension_numbers = #tpu.dot_dimension_numbers<[1], [0], [0], [1], [0, 0, 1, 1], [], []>} : vector<16x256xbf16>, vector<256x256xbf16>, vector<16x256xf32> -> vector<16x256xf32>
    %138 = arith.addf %137, %91 : vector<16x256xf32>
    %cst_79 = arith.constant 0.000000e+00 : f32
    %139 = vector.broadcast %cst_79 : f32 to vector<16x256xf32>
    %140 = arith.maximumf %138, %139 : vector<16x256xf32>
    %141 = arith.addf %140, %116 : vector<16x256xf32>
    %c0_80 = arith.constant 0 : index
    %c1280_81 = arith.constant 1280 : index
    %142 = vector.load %arg4[%c0_80, %c1280_81] : memref<256x1920xbf16, #tpu.memory_space<vmem>>, vector<256x256xbf16>
    %c0_82 = arith.constant 0 : index
    %c2048 = arith.constant 2048 : index
    %143 = vector.load %arg5[%c0_82, %c2048] : memref<1x2688xf32, #tpu.memory_space<vmem>>, vector<1x256xf32>
    %144 = arith.truncf %141 : vector<16x256xf32> to vector<16x256xbf16>
    %cst_83 = arith.constant dense<0.000000e+00> : vector<16x256xf32>
    %145 = tpu.matmul %144, %142, %cst_83 {dimension_numbers = #tpu.dot_dimension_numbers<[1], [0], [0], [1], [0, 0, 1, 1], [], []>} : vector<16x256xbf16>, vector<256x256xbf16>, vector<16x256xf32> -> vector<16x256xf32>
    %146 = vector.broadcast %143 : vector<1x256xf32> to vector<16x256xf32>
    %147 = arith.addf %145, %146 : vector<16x256xf32>
    %cst_84 = arith.constant 0.000000e+00 : f32
    %148 = vector.broadcast %cst_84 : f32 to vector<16x256xf32>
    %149 = arith.maximumf %147, %148 : vector<16x256xf32>
    %c0_85 = arith.constant 0 : index
    %c1792_86 = arith.constant 1792 : index
    %150 = vector.load %arg4[%c0_85, %c1792_86] : memref<256x1920xbf16, #tpu.memory_space<vmem>>, vector<256x128xbf16>
    %151 = arith.truncf %149 : vector<16x256xf32> to vector<16x256xbf16>
    %cst_87 = arith.constant dense<0.000000e+00> : vector<16x128xf32>
    %152 = tpu.matmul %151, %150, %cst_87 {dimension_numbers = #tpu.dot_dimension_numbers<[1], [0], [0], [1], [0, 0, 1, 1], [], []>} : vector<16x256xbf16>, vector<256x128xbf16>, vector<16x128xf32> -> vector<16x128xf32>
    %c0_88 = arith.constant 0 : index
    %c2560 = arith.constant 2560 : index
    %153 = vector.load %arg5[%c0_88, %c2560] : memref<1x2688xf32, #tpu.memory_space<vmem>>, vector<1x128xf32>
    %154 = vector.broadcast %153 : vector<1x128xf32> to vector<16x128xf32>
    %155 = arith.addf %152, %154 : vector<16x128xf32>
    %156 = arith.addf %67, %155 : vector<16x128xf32>
    %157 = arith.addf %156, %23 : vector<16x128xf32>
    %c0_89 = arith.constant 0 : index
    %c0_90 = arith.constant 0 : index
    %158 = vector.load %arg6[%c0_89, %c0_90] : memref<16x128xf32, #tpu.memory_space<vmem>>, vector<16x128xf32>
    tpu.vector_store %arg6[%c0_89, %c0_90], %157 {strides = array<i32>} : memref<16x128xf32, #tpu.memory_space<vmem>>, vector<16x128xf32>,
    return
  }
  func.func @transform_0(%arg0: i32) -> (i32, i32) {
    %c0_i32 = arith.constant 0 : i32
    %c0_i32_0 = arith.constant 0 : i32
    return %arg0, %c0_i32 : i32, i32
  }
  func.func @transform_1(%arg0: i32) -> (i32, i32) {
    %c0_i32 = arith.constant 0 : i32
    %c0_i32_0 = arith.constant 0 : i32
    %c0_i32_1 = arith.constant 0 : i32
    return %c0_i32, %c0_i32_0 : i32, i32
  }
  func.func @transform_2(%arg0: i32) -> (i32, i32) {
    %c0_i32 = arith.constant 0 : i32
    %c0_i32_0 = arith.constant 0 : i32
    %c0_i32_1 = arith.constant 0 : i32
    return %c0_i32, %c0_i32_0 : i32, i32
  }
  func.func @transform_3(%arg0: i32) -> (i32, i32) {
    %c0_i32 = arith.constant 0 : i32
    %c0_i32_0 = arith.constant 0 : i32
    %c0_i32_1 = arith.constant 0 : i32
    return %c0_i32, %c0_i32_0 : i32, i32
  }
  func.func @transform_4(%arg0: i32) -> (i32, i32) {
    %c0_i32 = arith.constant 0 : i32
    %c0_i32_0 = arith.constant 0 : i32
    %c0_i32_1 = arith.constant 0 : i32
    return %c0_i32, %c0_i32_0 : i32, i32
  }
  func.func @transform_5(%arg0: i32) -> (i32, i32) {
    %c0_i32 = arith.constant 0 : i32
    %c0_i32_0 = arith.constant 0 : i32
    return %arg0, %c0_i32 : i32, i32
  }
}

</mosaic_0001>

<bundles_post_ra>
// kernel: tpu_custom_call.1
= control target key start
LH: loop header
LB: loop body
LE: loop exit
PB: predicated region body
PF: predicated region fallthrough
CT: control target
= control target key end

     0   :  { %10 = vsyncpa [#allocation3], 0  ;;  %s5664_s0 = inlined_call_operand.hbm [shape: bf16[128,128], index: 0, kind: input, shape index: {}]   ;;  %s5665_s1 = inlined_call_operand.hbm [shape: bf16[128,512], index: 1, kind: input, shape index: {}]   ;;  %s5666_s2 = inlined_call_operand.hbm [shape: bf16[128,768], index: 2, kind: input, shape index: {}]   ;;  %s5667_s3 = inlined_call_operand.hbm [shape: bf16[256,1920], index: 3, kind: input, shape index: {}]   ;;  %s5668_s4 = inlined_call_operand.hbm [shape: f32[1,2688], index: 4, kind: input, shape index: {}]   ;;  %s5669_s5 = inlined_call_operand.hbm [shape: f32[64,128], index: 5, kind: output, shape index: {}]  }
   0x1   :  { %12 = vsyncpa [#allocation3 + $0x1], 0 }
   0x2   :  { %13 = vsyncpa [#allocation6], 0 }
   0x3   :  { %14 = vsyncpa [#allocation9], 0 }
   0x4   :  { %15 = vsyncpa [#allocation4], 0 }
   0x5   :  { %17 = vsyncpa [#allocation4 + $0x1], 0  ;;  %s4876_s18 = smov 0   ;;  %s4878_s19 = smov 0  }
   0x6   :  { %s4880_s20 = smov 0   ;;  %s4882_s21 = smov 0  }
   0x7 LB: > { %s4897_s22 = sadd.s32 4294967295, %s4827_s21   ;;  %s3617_s23 = sadd.s32 4294967294, %s4827_s21   ;;  %s4827_s21 = sphi %s4882_s21, %s5829_s21   ;;  %s4823_s20 = sphi %s4880_s20, %s5828_s20   ;;  %s4819_s19 = sphi %s4878_s19, %s5827_s19   ;;  %s4815_s18 = sphi %s4876_s18, %s5826_s18  }
   0x8   : > { %p43_p0 = scmp.ne.s32.totalorder %s4819_s19, %s4815_s18  ;;  %p5670_p1 = scmp.eq.s32.totalorder %s4897_s22, 0 }
   0x9   : > { %p157_p3 = scmp.eq.s32.totalorder %s3617_s23, 3  ;;  %p3618_p5 = scmp.ge.s32.totalorder %s4827_s21, 1 }
   0xa   : > { %p4906_p4 = por %p5670_p1, %p43_p0  ;;  %p164_p7 = scmp.lt.s32.totalorder %s4827_s21, 5 }
   0xb   : > { %p4911_p6 = por %p157_p3, %p43_p0  ;;  %s4829_s27 = smov [#allocation5]  }
   0xc   : > { %s5726_s24 = scalar_select %p4906_p4, 1, 0 }
   0xd   : > { %s5727_s25 = scalar_select %p4911_p6, 1, 0 }
   0xe   : > { %p4916_p8 = pnand %p3618_p5, %p164_p7  ;;  %s176_s28 = sshll.u32 %s4829_s27, 4  ;;  %s177_s28 = int_to_ptr.vmem [resolvable:$true] %s176_s28 }
   0xf   : > { %s4830_s30 = smov [#allocation8]   ;;  %s4611_s9 = scalar_lea.hbm %s5665_s1, 4096 }
  0x10   : > { %s5728_s26 = scalar_select %p4916_p8, 1, 0 }
  0x11   : > { %p4066_p9 = pneg %p4916_p8  ;;  %s202_s6 = sshll.u32 %s4830_s30, 4  ;;  %s4928_s6 = int_to_ptr.vmem [resolvable:$true] %s202_s6 }
  0x12   : > { %p4612_p11 = scmp.ne.s32.totalorder %s5665_s1, %s4611_s9  ;;  %p4618_p3 = scmp.lt.u32.totalorder %s4611_s9, %s5665_s1 }
  0x13   : > { %p4924_p10 = pnand %p4066_p9, %p5670_p1 }
  0x15   : > { %p4938_p12 = pneg %p4924_p10 }
  0x17   : > { %p4614_p13 = pnand %p4938_p12, %p4612_p11 }
  0x19   : > { %p4615_p0 = pneg %p4614_p13 }
  0x1b   : > { %p4620_p5 = pnand %p4618_p3, %p4615_p0 }
  0x1d   : > { %4623 = shalt.err (!%p4620_p5)
}
  0x1e   : > { %s4624_s15 = scalar_lea.vmem %s177_s28, 4096  ;;  %p4632_p2 = scmp.lt.s32.totalorder %s177_s28, %s177_s28 }
  0x1f   : > { %p4625_p7 = scmp.ne.s32.totalorder %s177_s28, %s4624_s15  ;;  %p4633_p6 = scmp.lt.s32.totalorder %s4624_s15, %s4624_s15 }
  0x21   : > { %p4627_p9 = pnand %p4625_p7, %p4938_p12  ;;  %p4634_p4 = por %p4633_p6, %p4632_p2 }
  0x23   : > { %p4628_p1 = pneg %p4627_p9 }
  0x25   : > { %p4635_p8 = pnand %p4634_p4, %p4628_p1 }
  0x27   : > { %4638 = shalt.err (!%p4635_p8)
}
  0x28   : > { %s4831_s16 = smov 256   ;;  %s4832_s17 = smov 16  }
  0x29   : > { %4069 = dma.hbm_to_vmem [thread:$0]  (!%p4924_p10), %s5665_s1, 4096, %s177_s28, [#allocation6], %s4831_s16, %s4831_s16, %s4832_s17  }
  0x2a   : > { %s4639_s8 = scalar_lea.hbm %s5667_s3, 30720 }
  0x2b   : > { %p4640_p11 = scmp.ne.s32.totalorder %s5667_s3, %s4639_s8  ;;  %p4646_p4 = scmp.lt.u32.totalorder %s4639_s8, %s5667_s3 }
  0x2d   : > { %p4642_p1 = pnand %p4640_p11, %p4938_p12 }
  0x2f   : > { %p4643_p2 = pneg %p4642_p1 }
  0x31   : > { %p4648_p6 = pnand %p4646_p4, %p4643_p2 }
  0x33   : > { %4651 = shalt.err (!%p4648_p6)
}
  0x34   : > { %s4652_s28 = scalar_lea.vmem %s4928_s6, 30720  ;;  %p4660_p3 = scmp.lt.s32.totalorder %s4928_s6, %s4928_s6 }
  0x35   : > { %p4653_p8 = scmp.ne.s32.totalorder %s4928_s6, %s4652_s28  ;;  %p4661_p5 = scmp.lt.s32.totalorder %s4652_s28, %s4652_s28 }
  0x37   : > { %p4655_p13 = pnand %p4653_p8, %p4938_p12  ;;  %p4662_p7 = por %p4661_p5, %p4660_p3 }
  0x39   : > { %p4656_p0 = pneg %p4655_p13 }
  0x3b   : > { %p4663_p9 = pnand %p4662_p7, %p4656_p0 }
  0x3d   : > { %4666 = shalt.err (!%p4663_p9)
}
  0x3e   : > { %s4833_s14 = smov 960   ;;  %s4834_s15 = smov 60  }
  0x3f   : > { %4075 = dma.hbm_to_vmem [thread:$0]  (!%p4924_p10), %s5667_s3, 30720, %s4928_s6, [#allocation9], %s4833_s14, %s4833_s14, %s4834_s15  }
  0x40   : > { %s4835_s23 = smov [#allocation7]   ;;  %s4667_s8 = scalar_lea.hbm %s5666_s2, 6144 }
  0x41   : > { %s189_s27 = sshll.u32 %s4835_s23, 4  ;;  %p4668_p11 = scmp.ne.s32.totalorder %s5666_s2, %s4667_s8  ;;  %s190_s27 = int_to_ptr.vmem [resolvable:$true] %s189_s27 }
  0x42   : > { %p4674_p4 = scmp.lt.u32.totalorder %s4667_s8, %s5666_s2 }
  0x43   : > { %p4670_p1 = pnand %p4668_p11, %p4938_p12 }
  0x45   : > { %p4671_p2 = pneg %p4670_p1 }
  0x47   : > { %p4676_p6 = pnand %p4674_p4, %p4671_p2 }
  0x49   : > { %4679 = shalt.err (!%p4676_p6)
}
  0x4a   : > { %s4680_s6 = scalar_lea.vmem %s190_s27, 6144  ;;  %p4688_p3 = scmp.lt.s32.totalorder %s190_s27, %s190_s27 }
  0x4b   : > { %p4681_p8 = scmp.ne.s32.totalorder %s190_s27, %s4680_s6  ;;  %p4689_p5 = scmp.lt.s32.totalorder %s4680_s6, %s4680_s6 }
  0x4d   : > { %p4683_p13 = pnand %p4681_p8, %p4938_p12  ;;  %p4690_p7 = por %p4689_p5, %p4688_p3 }
  0x4f   : > { %p4684_p0 = pneg %p4683_p13 }
  0x51   : > { %p4691_p9 = pnand %p4690_p7, %p4684_p0 }
  0x53   : > { %4694 = shalt.err (!%p4691_p9)
}
  0x54   : > { %s4836_s28 = smov 384   ;;  %s4837_s14 = smov 24  }
  0x55   : > { %4072 = dma.hbm_to_vmem [thread:$0]  (!%p4924_p10), %s5666_s2, 6144, %s190_s27, [#allocation6], %s4836_s28, %s4836_s28, %s4837_s14  }
  0x56   : > { %s4838_s17 = smov [#allocation10]   ;;  %s4695_s8 = scalar_lea.hbm %s5668_s4, 336 }
  0x57   : > { %s216_s23 = sshll.u32 %s4838_s17, 4  ;;  %p4696_p11 = scmp.ne.s32.totalorder %s5668_s4, %s4695_s8  ;;  %s217_s23 = int_to_ptr.vmem [resolvable:$true] %s216_s23 }
  0x58   : > { %p4702_p4 = scmp.lt.u32.totalorder %s4695_s8, %s5668_s4 }
  0x59   : > { %p4698_p1 = pnand %p4696_p11, %p4938_p12 }
  0x5b   : > { %p4699_p2 = pneg %p4698_p1 }
  0x5d   : > { %p4704_p6 = pnand %p4702_p4, %p4699_p2 }
  0x5f   : > { %4707 = shalt.err (!%p4704_p6)
}
  0x60   : > { %s4708_s27 = scalar_lea.vmem %s217_s23, 336  ;;  %s4715_s6 = scalar_lea.vmem %s217_s23, 352 }
  0x61   : > { %p4709_p8 = scmp.ne.s32.totalorder %s217_s23, %s4708_s27  ;;  %p4716_p3 = scmp.lt.s32.totalorder %s217_s23, %s217_s23 }
  0x62   : > { %p4717_p5 = scmp.lt.s32.totalorder %s4715_s6, %s4708_s27 }
  0x63   : > { %p4711_p13 = pnand %p4709_p8, %p4938_p12 }
  0x64   : > { %p4718_p7 = por %p4717_p5, %p4716_p3 }
  0x65   : > { %p4712_p0 = pneg %p4711_p13 }
  0x67   : > { %p4719_p9 = pnand %p4718_p7, %p4712_p0 }
  0x69   : > { %4722 = shalt.err (!%p4719_p9)
}
  0x6a   : > { %4078 = dma.hbm_to_vmem [thread:$0]  (!%p4924_p10), %s5668_s4, 336, %s217_s23, [#allocation9]  }
  0x6b   : > { %s5014_s12 = sadd.s32 1, %s4827_s21   ;;  %s30_s15 = sadd.s32 1, %s4823_s20 }
  0x6c   : > { %s27_s29 = ssub.s32 %s4827_s21, %s5014_s12  ;;  %p37_p12 = scmp.ne.s32.totalorder %s4823_s20, %s4819_s19 }
  0x6d   : > { %p28_p11 = scmp.eq.s32.totalorder %s27_s29, 0  ;;  %p38_p1 = scmp.eq.s32.totalorder %s4827_s21, 0 }
  0x6e   : > { %p5731_p2 = scmp.eq.s32.totalorder %s4897_s22, 3  ;;  %p4091_p6 = scmp.lt.s32.totalorder %s4827_s21, 4 }
  0x6f   : > { %s5030_s17 = scalar_select %p28_p11, %s4823_s20, %s30_s15  }
  0x70   : > { %p5024_p4 = por %p5731_p2, %p37_p12  ;;  %p39_p8 = por %p38_p1, %p37_p12 }
  0x71   : > { %s227_s30 = sand.u32 1, %s4823_s20   ;;  %s3964_s23 = sshll.u32 %s4827_s21, 8 }
  0x72   : > { %s3624_s7 = sshll.u32 %s227_s30, 4  ;;  %s5037_s10 = scalar_lea.hbm %s5664_s0, %s3964_s23 }
  0x73   : > { %s231_s11 = scalar_lea.vmem [#allocation2], %s3624_s7  ;;  %p5041_p10 = pnand %p4091_p6, %p39_p8 }
  0x74   : > { %s238_s13 = sshll.u32 %s231_s11, 4  ;;  %s5045_s6 = scalar_lea.sflag [#allocation3], %s227_s30  ;;  %s5039_s13 = int_to_ptr.vmem [resolvable:$true] %s238_s13 }
  0x75   : > { %s4723_s28 = scalar_lea.hbm %s5037_s10, 256  ;;  %p4725_p0 = pneg %p5041_p10 }
  0x76   : > { %p4724_p13 = scmp.ne.s32.totalorder %s5037_s10, %s4723_s28  ;;  %s4728_s29 = scalar_lea.hbm %s5664_s0, 1024 }
  0x77   : > { %p4729_p7 = scmp.lt.u32.totalorder %s5037_s10, %s5664_s0  ;;  %p4730_p9 = scmp.lt.u32.totalorder %s4728_s29, %s4723_s28 }
  0x78   : > { %p4726_p3 = pnand %p4725_p0, %p4724_p13  ;;  %p4732_p11 = scmp.lt.u32.totalorder %s4723_s28, %s5037_s10 }
  0x79   : > { %p4731_p12 = por %p4730_p9, %p4729_p7 }
  0x7a   : > { %p4727_p5 = pneg %p4726_p3 }
  0x7b   : > { %p4733_p1 = por %p4732_p11, %p4731_p12 }
  0x7d   : > { %p4734_p2 = pnand %p4733_p1, %p4727_p5 }
  0x7f   : > { %4737 = shalt.err (!%p4734_p2)
}
  0x80   : > { %s4738_s30 = scalar_lea.vmem %s5039_s13, 256  ;;  %s4839_s8 = smov [#allocation2]  }
  0x81   : > { %p4739_p6 = scmp.ne.s32.totalorder %s5039_s13, %s4738_s30  ;;  %s4743_s9 = sshll.u32 %s4839_s8, 4  ;;  %s4744_s9 = int_to_ptr.vmem [resolvable:$false] %s4743_s9 }
  0x82   : > { %s4745_s11 = scalar_lea.vmem %s4744_s9, 512  ;;  %p4746_p3 = scmp.lt.s32.totalorder %s5039_s13, %s4744_s9 }
  0x83   : > { %p4741_p8 = pnand %p4739_p6, %p4725_p0  ;;  %p4747_p7 = scmp.lt.s32.totalorder %s4745_s11, %s4738_s30 }
  0x85   : > { %p4742_p13 = pneg %p4741_p8  ;;  %p4748_p9 = por %p4747_p7, %p4746_p3 }
  0x87   : > { %p4749_p12 = pnand %p4748_p9, %p4742_p13 }
  0x89   : > { %4752 = shalt.err (!%p4749_p12)
}
  0x8a   : > { %s4840_s28 = smov 64   ;;  %s4841_s14 = smov 4  }
  0x8b   : > { %4082 = dma.hbm_to_vmem [thread:$0]  (!%p5041_p10), %s5037_s10, 256, %s5039_s13, %s5045_s6, %s4840_s28, %s4840_s28, %s4841_s14  }
  0x8c   : > { %p5734_p0 = scmp.ne.s32.totalorder %s5728_s26, 0 }
  0x8e   : > { %250 = sbr.rel (%p5734_p0) target bundleno = 3865 (0xf19), region = 40 }
  0x95   : > { %s5076_s15 = sand.u32 1, %s4819_s19   ;;  %p5735_p5 = scmp.ne.s32.totalorder %s5726_s24, 0 }
  0x96   : > { %s3628_s29 = sshll.u32 %s5076_s15, 4  ;;  %s253_s7 = scalar_lea.sflag [#allocation3], %s5076_s15 }
  0x97   : > { %s5082_s23 = scalar_lea.vmem [#allocation2], %s3628_s29 }
  0x98   : > { %4798 = dma.done.wait (%p5735_p5), %s253_s7, 256  }
  0x99   : > { %4800 = vsyncadd (%p5735_p5), %s253_s7, 4294967040  ;;  %p5736_p10 = scmp.eq.s32.totalorder %s4897_s22, 0 }
  0x9b   : > { %4802 = dma.done.wait (%p5736_p10), [#allocation6], 10240   ;;  %p5737_p11 = pmov %p5736_p10 }
  0x9c   : > { %p5738_p1 = pmov %p5736_p10 }
  0x9d   : > { %4804 = vsyncadd (%p5737_p11), [#allocation6], 4294957056 }
  0x9e   : > { %4806 = dma.done.wait (%p5738_p1), [#allocation9], 31056   ;;  %p5739_p2 = pmov %p5738_p1 }
  0x9f   : > { %v4842_v0 = vmov 0   ;;  %v4144_v1 = vld [vmem:[#allocation5 + $0x4] ss:$16 sps:$4 sm:$0xff]   ;;  %v4146_v2 = vld [vmem:[#allocation5] ss:$16 sps:$4 sm:$0xff]   ;;  %v4169_v33 = vld [vmem:[%s5082_s23 + $0x8] sm:$0xff]   ;;  %v324_v62 = vlaneseq }
  0xa0   : > { %4808 = vsyncadd (%p5739_p2), [#allocation9], 4294936240  ;;  %458 = vmatprep.mubr.bf16.mxu0 %v4842_v0  ;;  %426 = vmatprep.subr.bf16.mxu0 %v4144_v1  ;;  %v4147_v3 = vld [vmem:[#allocation5 + $0x24] ss:$16 sps:$4 sm:$0xff]   ;;  %v4149_v4 = vld [vmem:[#allocation5 + $0x20] ss:$16 sps:$4 sm:$0xff]  }
  0xa1   : > { %427 = vmatpush1.bf16.msra.mxu0 %v4146_v2  ;;  %v4150_v5 = vld [vmem:[#allocation5 + $0x44] ss:$16 sps:$4 sm:$0xff]   ;;  %v4152_v6 = vld [vmem:[#allocation5 + $0x40] ss:$16 sps:$4 sm:$0xff]   ;;  %v4173_v12 = vld [vmem:[#allocation8 + $0x7c] ss:$60 sps:$4 sm:$0xff]  }
  0xa2   : > { %428 = vmatprep.subr.bf16.mxu0 %v4147_v3  ;;  %v4153_v7 = vld [vmem:[#allocation5 + $0x64] ss:$16 sps:$4 sm:$0xff]   ;;  %v4155_v8 = vld [vmem:[#allocation5 + $0x60] ss:$16 sps:$4 sm:$0xff]   ;;  %v4179_v20 = vld [vmem:[#allocation8 + $0x16c] ss:$60 sps:$4 sm:$0xff]  }
  0xa3   : > { %v4156_v9 = vld [vmem:[#allocation5 + $0x84] ss:$16 sps:$4 sm:$0xff]   ;;  %v4172_v11 = vld [vmem:[#allocation8] ss:$60 sps:$4 sm:$0xff]   ;;  %v4178_v19 = vld [vmem:[#allocation8 + $0xf0] ss:$60 sps:$4 sm:$0xff]  }
  0xa4   : > { %v4170_v10 = vld [vmem:[#allocation8 + $0x4] ss:$60 sps:$4 sm:$0xff]   ;;  %v4175_v15 = vld [vmem:[#allocation8 + $0x78] ss:$60 sps:$4 sm:$0xff]   ;;  %v4190_v31 = vld [vmem:[#allocation8 + $0x2d0] ss:$60 sps:$4 sm:$0xff]  }
  0xa5   : > { %429 = vmatpush1.bf16.msra.mxu0 %v4149_v4  ;;  %v4158_v13 = vld [vmem:[#allocation5 + $0x80] ss:$16 sps:$4 sm:$0xff]   ;;  %695 = vmatprep.subr.bf16.mxu1 %v4170_v10  ;;  %v4159_v14 = vld [vmem:[#allocation5 + $0xa4] ss:$16 sps:$4 sm:$0xff]   ;;  %v4185_v28 = vld [vmem:[#allocation8 + $0x25c] ss:$60 sps:$4 sm:$0xff]  }
  0xa6   : > { %430 = vmatprep.subr.bf16.mxu0 %v4150_v5  ;;  %696 = vmatpush1.bf16.msra.mxu1 %v4172_v11  ;;  %v4176_v16 = vld [vmem:[#allocation8 + $0xf4] ss:$60 sps:$4 sm:$0xff]   ;;  %v4181_v23 = vld [vmem:[#allocation8 + $0x168] ss:$60 sps:$4 sm:$0xff]   ;;  %v4184_v26 = vld [vmem:[#allocation8 + $0x1e0] ss:$60 sps:$4 sm:$0xff]  }
  0xa7   : > { %697 = vmatprep.subr.bf16.mxu1 %v4173_v12  ;;  %v4161_v17 = vld [vmem:[#allocation5 + $0xa0] ss:$16 sps:$4 sm:$0xff]   ;;  %v4162_v18 = vld [vmem:[#allocation5 + $0xc4] ss:$16 sps:$4 sm:$0xff]   ;;  %v4191_v32 = vld [vmem:[#allocation8 + $0x34c] ss:$60 sps:$4 sm:$0xff]  }
  0xa8   : > { %v4164_v21 = vld [vmem:[#allocation5 + $0xc0] ss:$16 sps:$4 sm:$0xff]   ;;  %v4165_v22 = vld [vmem:[#allocation5 + $0xe4] ss:$16 sps:$4 sm:$0xff]   ;;  %v4197_v37 = vld [vmem:[#allocation8 + $0x43c] ss:$60 sps:$4 sm:$0xff]  }
  0xa9   : > { %431 = vmatpush1.bf16.msra.mxu0 %v4152_v6  ;;  %v4182_v24 = vld [vmem:[#allocation8 + $0x1e4] ss:$60 sps:$4 sm:$0xff]   ;;  %v4187_v29 = vld [vmem:[#allocation8 + $0x258] ss:$60 sps:$4 sm:$0xff]   ;;  %v4202_v40 = vld [vmem:[#allocation8 + $0x4b0] ss:$60 sps:$4 sm:$0xff]  }
  0xaa   : > { %432 = vmatprep.subr.bf16.mxu0 %v4153_v7  ;;  %698 = vmatpush1.bf16.msra.mxu1 %v4175_v15  ;;  %v4167_v25 = vld [vmem:[#allocation5 + $0xe0] ss:$16 sps:$4 sm:$0xff]   ;;  %v4193_v34 = vld [vmem:[#allocation8 + $0x348] ss:$60 sps:$4 sm:$0xff]   ;;  %v4199_v38 = vld [vmem:[#allocation8 + $0x438] ss:$60 sps:$4 sm:$0xff]  }
  0xab   : > { %699 = vmatprep.subr.bf16.mxu1 %v4176_v16  ;;  %v4168_v27 = vld [vmem:[%s5082_s23] sm:$0xff]   ;;  %v4203_v41 = vld [vmem:[#allocation8 + $0x52c] ss:$60 sps:$4 sm:$0xff]   ;;  %v4209_v45 = vld [vmem:[#allocation8 + $0x61c] ss:$60 sps:$4 sm:$0xff]   ;;  %v325_v63 = vshrl.u32 %v324_v62, 7 }
  0xac   : > { %v4188_v30 = vld [vmem:[#allocation8 + $0x2d4] ss:$60 sps:$4 sm:$0xff]   ;;  %v4194_v35 = vld [vmem:[#allocation8 + $0x3c4] ss:$60 sps:$4 sm:$0xff]   ;;  %v4215_v49 = vld [vmem:[#allocation8 + $0x70c] ss:$60 sps:$4 sm:$0xff]  }
  0xad   : > { %433 = vmatpush1.bf16.msra.mxu0 %v4155_v8  ;;  %v4196_v36 = vld [vmem:[#allocation8 + $0x3c0] ss:$60 sps:$4 sm:$0xff]   ;;  %v4200_v39 = vld [vmem:[#allocation8 + $0x4b4] ss:$60 sps:$4 sm:$0xff]   ;;  %v4205_v42 = vld [vmem:[#allocation8 + $0x528] ss:$60 sps:$4 sm:$0xff]  }
  0xae   : > { %434 = vmatprep.subr.bf16.mxu0 %v4156_v9  ;;  %700 = vmatpush1.bf16.msra.mxu1 %v4178_v19  ;;  %v4206_v43 = vld [vmem:[#allocation8 + $0x5a4] ss:$60 sps:$4 sm:$0xff]   ;;  %v4211_v46 = vld [vmem:[#allocation8 + $0x618] ss:$60 sps:$4 sm:$0xff]   ;;  %v4214_v48 = vld [vmem:[#allocation8 + $0x690] ss:$60 sps:$4 sm:$0xff]  }
  0xaf   : > { %701 = vmatprep.subr.bf16.mxu1 %v4179_v20  ;;  %v4208_v44 = vld [vmem:[#allocation8 + $0x5a0] ss:$60 sps:$4 sm:$0xff]   ;;  %v4212_v47 = vld [vmem:[#allocation8 + $0x694] ss:$60 sps:$4 sm:$0xff]   ;;  %v4217_v50 = vld [vmem:[#allocation8 + $0x708] ss:$60 sps:$4 sm:$0xff]  }
  0xb0   : > { %v4218_v51 = vld [vmem:[#allocation8 + $0x3f0] ss:$60 sps:$4 sm:$0xff]   ;;  %v4220_v53 = vld [vmem:[#allocation8 + $0x468] ss:$60 sps:$4 sm:$0xff]   ;;  %v4222_v55 = vld [vmem:[#allocation8 + $0x4e0] ss:$60 sps:$4 sm:$0xff]  }
  0xb1   : > { %435 = vmatpush1.bf16.msra.mxu0 %v4158_v13  ;;  %v4219_v52 = vld [vmem:[#allocation8 + $0x30] ss:$60 sps:$4 sm:$0xff]   ;;  %v4221_v54 = vld [vmem:[#allocation8 + $0xa8] ss:$60 sps:$4 sm:$0xff]   ;;  %v4223_v56 = vld [vmem:[#allocation8 + $0x120] ss:$60 sps:$4 sm:$0xff]  }
  0xb2   : > { %436 = vmatprep.subr.bf16.mxu0 %v4159_v14  ;;  %702 = vmatpush1.bf16.msra.mxu1 %v4181_v23  ;;  %v4224_v57 = vld [vmem:[#allocation8 + $0x558] ss:$60 sps:$4 sm:$0xff]   ;;  %v4226_v59 = vld [vmem:[#allocation8 + $0x5d0] ss:$60 sps:$4 sm:$0xff]   ;;  %v4228_v61 = vld [vmem:[#allocation8 + $0x648] ss:$60 sps:$4 sm:$0xff]  }
  0xb3   : > { %703 = vmatprep.subr.bf16.mxu1 %v4182_v24  ;;  %v4225_v58 = vld [vmem:[#allocation8 + $0x198] ss:$60 sps:$4 sm:$0xff]   ;;  %v4227_v60 = vld [vmem:[#allocation8 + $0x210] ss:$60 sps:$4 sm:$0xff]   ;;  %v5101_v1 = vsub.s32 0, %v325_v63  ;;  %v5103_v3 = vsub.s32 1, %v325_v63 }
  0xb4   : > { %v322_v2 = vld [vmem:[#allocation10] sm:$0x3]  ;;  %s298_s24 = scalar_lea.vmem [#allocation11], %s3628_s29  ;;  %s3965_s10 = sshll.u32 %s4897_s22, 8 }
  0xb5   : > { %437 = vmatpush1.bf16.msra.mxu0 %v4161_v17  ;;  %5740 = vst [vmem:[#allocation16_spill] sm:$0xff] %v5101_v1  ;;  %5741 = vst [vmem:[#allocation17_spill] sm:$0xff] %v5103_v3  ;;  %v327_v4 = vrot.slane %v322_v2, %v5101_v1  ;;  %v331_v5 = vrot.slane %v322_v2, %v5103_v3  ;;  %s3506_s26 = sshll.u32 %s298_s24, 4  ;;  %s5618_s6 = scalar_lea.hbm %s5669_s5, %s3965_s10  ;;  %s5620_s26 = int_to_ptr.vmem [resolvable:$true] %s3506_s26 }
  0xb6   : > { %438 = vmatprep.subr.bf16.mxu0 %v4162_v18  ;;  %704 = vmatpush1.bf16.msra.mxu1 %v4184_v26  ;;  %s3493_s30 = scalar_lea.sflag [#allocation4], %s5076_s15  ;;  %s4753_s8 = scalar_lea.vmem %s5620_s26, 256 }
  0xb7   : > { %705 = vmatprep.subr.bf16.mxu1 %v4185_v28  ;;  %p4754_p6 = scmp.ne.s32.totalorder %s5620_s26, %s4753_s8  ;;  %s4843_s22 = smov [#allocation11]  }
  0xb8   : > { %s4757_s9 = sshll.u32 %s4843_s22, 4  ;;  %s4758_s9 = int_to_ptr.vmem [resolvable:$false] %s4757_s9 }
  0xb9   : > { %439 = vmatpush1.bf16.msra.mxu0 %v4164_v21  ;;  %p4755_p8 = pnand %p4754_p6, %p5024_p4  ;;  %s4759_s11 = scalar_lea.vmem %s4758_s9, 512 }
  0xba   : > { %440 = vmatprep.subr.bf16.mxu0 %v4165_v22  ;;  %706 = vmatpush1.bf16.msra.mxu1 %v4187_v29  ;;  %p4760_p3 = scmp.lt.s32.totalorder %s5620_s26, %s4758_s9  ;;  %p4761_p7 = scmp.lt.s32.totalorder %s4759_s11, %s4753_s8 }
  0xbb   : > { %707 = vmatprep.subr.bf16.mxu1 %v4188_v30  ;;  %p4756_p13 = pneg %p4755_p8 }
  0xbc   : > { %p4762_p9 = por %p4761_p7, %p4760_p3 }
  0xbd   : > { %441 = vmatpush1.bf16.msra.mxu0 %v4167_v25 }
  0xbe   : > { %708 = vmatpush1.bf16.msra.mxu1 %v4190_v31  ;;  %3966 = vmatprep.subr.bf16.mxu0 %v4218_v51  ;;  %p4763_p12 = pnand %p4762_p9, %p4756_p13 }
  0xbf   : > { %709 = vmatprep.subr.bf16.mxu1 %v4191_v32 }
  0xc0   : > { %459 = vmatmul.mubr.bf16.vlgmr.msra.gmra.mrb[0].mxu0 %v4168_v27 }
  0xc1   : > { %468 = vmatprep.mubr.bf16.mxu0 %v4842_v0  ;;  %3967 = vmatpush3.bf16.msra.mxu0 %v4219_v52 }
  0xc2   : > { %710 = vmatpush1.bf16.msra.mxu1 %v4193_v34  ;;  %3968 = vmatprep.subr.bf16.mxu0 %v4220_v53  ;;  %v4229_v34 = vld [vmem:[#allocation8 + $0x288] ss:$60 sps:$4 sm:$0xff]  }
  0xc3   : > { %711 = vmatprep.subr.bf16.mxu1 %v4194_v35  ;;  %v4230_v35 = vld [vmem:[#allocation8 + $0x6c0] ss:$60 sps:$4 sm:$0xff]  }
  0xc5   : > { %3969 = vmatpush3.bf16.msra.mxu0 %v4221_v54 }
  0xc6   : > { %712 = vmatpush1.bf16.msra.mxu1 %v4196_v36  ;;  %3970 = vmatprep.subr.bf16.mxu0 %v4222_v55  ;;  %v4231_v36 = vld [vmem:[#allocation8 + $0x300] ss:$60 sps:$4 sm:$0xff]  }
  0xc7   : > { %713 = vmatprep.subr.bf16.mxu1 %v4197_v37  ;;  %v4232_v37 = vld [vmem:[#allocation8 + $0x738] ss:$60 sps:$4 sm:$0xff]  }
  0xc8   : > { %469 = vmatmul.mubr.bf16.gmra.mrb[4].mxu0 %v4169_v33 }
  0xc9   : > { %3971 = vmatpush3.bf16.msra.mxu0 %v4223_v56 }
  0xca   : > { %714 = vmatpush1.bf16.msra.mxu1 %v4199_v38  ;;  %3972 = vmatprep.subr.bf16.mxu0 %v4224_v57  ;;  %v4233_v38 = vld [vmem:[#allocation8 + $0x378] ss:$60 sps:$4 sm:$0xff]  }
  0xcb   : > { %715 = vmatprep.subr.bf16.mxu1 %v4200_v39  ;;  %v4236_v39 = vld [vmem:[#allocation7 + $0xc] ss:$24 sps:$4 sm:$0xff]  }
  0xcd   : > { %3973 = vmatpush3.bf16.msra.mxu0 %v4225_v58  ;;  %v4234_v58 = vld [vmem:[#allocation7 + $0x8] ss:$24 sps:$4 sm:$0xff]  }
  0xce   : > { %716 = vmatpush1.bf16.msra.mxu1 %v4202_v40  ;;  %3974 = vmatprep.subr.bf16.mxu0 %v4226_v59  ;;  %v519_v40 = vld [vmem:[#allocation10 + $0x2] sm:$0x3] }
  0xcf   : > { %717 = vmatprep.subr.bf16.mxu1 %v4203_v41  ;;  %v528_v41 = vrot.slane %v519_v40, %v5101_v1 }
  0xd1   : > { %3975 = vmatpush3.bf16.msra.mxu0 %v4227_v60 }
  0xd2   : > { %718 = vmatpush1.bf16.msra.mxu1 %v4205_v42  ;;  %3976 = vmatprep.subr.bf16.mxu0 %v4228_v61  ;;  %v532_v42 = vrot.slane %v519_v40, %v5103_v3  ;;  %v4239_v61 = vld [vmem:[#allocation7 + $0x3c] ss:$24 sps:$4 sm:$0xff]  }
  0xd3   : > { %719 = vmatprep.subr.bf16.mxu1 %v4206_v43  ;;  %v4300_v40 = vld [vmem:[#allocation8 + $0x2d8] ss:$60 sps:$4 sm:$0xff]  }
  0xd5   : > { %3977 = vmatpush3.bf16.msra.mxu0 %v4229_v34  ;;  %v4291_v34 = vld [vmem:[#allocation8 + $0x170] ss:$60 sps:$4 sm:$0xff]  }
  0xd6   : > { %720 = vmatpush1.bf16.msra.mxu1 %v4208_v44  ;;  %3978 = vmatprep.subr.bf16.mxu0 %v4230_v35  ;;  %v4296_v35 = vld [vmem:[#allocation8 + $0x1ec] ss:$60 sps:$4 sm:$0xff]  }
  0xd7   : > { %721 = vmatprep.subr.bf16.mxu1 %v4209_v45 }
  0xd9   : > { %3979 = vmatpush3.bf16.msra.mxu0 %v4231_v36  ;;  %v4294_v36 = vld [vmem:[#allocation8 + $0x1e8] ss:$60 sps:$4 sm:$0xff]  }
  0xda   : > { %722 = vmatpush1.bf16.msra.mxu1 %v4211_v46  ;;  %3980 = vmatprep.subr.bf16.mxu0 %v4232_v37  ;;  %v4299_v37 = vld [vmem:[#allocation8 + $0x264] ss:$60 sps:$4 sm:$0xff]  }
  0xdb   : > { %723 = vmatprep.subr.bf16.mxu1 %v4212_v47 }
  0xdd   : > { %3981 = vmatpush3.bf16.msra.mxu0 %v4233_v38  ;;  %v4297_v38 = vld [vmem:[#allocation8 + $0x260] ss:$60 sps:$4 sm:$0xff]  }
  0xde   : > { %724 = vmatpush1.bf16.msra.mxu1 %v4214_v48  ;;  %1058 = vmatprep.subr.bf16.mxu0 %v4236_v39  ;;  %v4302_v39 = vld [vmem:[#allocation8 + $0x2dc] ss:$60 sps:$4 sm:$0xff]  }
  0xdf   : > { %725 = vmatprep.subr.bf16.mxu1 %v4215_v49 }
  0xe2   : > { %726 = vmatpush1.bf16.msra.mxu1 %v4217_v50 }
 0x193   : > { %v460_v6 = vpop.f32.mrb[0].mxu0 }
 0x194   : > { %v461_v7 = vadd.f32 %v460_v6, %v327_v4  ;;  %v462_v8 = vpop.f32.mrb[1].mxu0 }
 0x195   : > { %v463_v9 = vadd.f32 %v462_v8, %v331_v5  ;;  %v464_v10 = vpop.f32.mrb[2].mxu0 }
 0x196   : > { %v465_v11 = vadd.f32 %v464_v10, %v327_v4  ;;  %v466_v12 = vpop.f32.mrb[3].mxu0  ;;  %v479_v14 = vmax.f32 %v461_v7, 0.0  ;;  %v4237_v7 = vld [vmem:[#allocation7 + $0x38] ss:$24 sps:$4 sm:$0xff]   ;;  %v4242_v10 = vld [vmem:[#allocation7 + $0x6c] ss:$24 sps:$4 sm:$0xff]  }
 0x197   : > { %v467_v13 = vadd.f32 %v466_v12, %v331_v5  ;;  %v480_v16 = vmax.f32 %v463_v9, 0.0 }
 0x198   : > { %v481_v15 = vmax.f32 %v465_v11, 0.0 }
 0x199   : > { %v482_v17 = vmax.f32 %v467_v13, 0.0 }
 0x19a   : > { %v520_v18 = vpack.c.bf16 %v481_v15, %v479_v14  ;;  %v4240_v15 = vld [vmem:[#allocation7 + $0x68] ss:$24 sps:$4 sm:$0xff]  }
 0x19b   : > { %v470_v19 = vpop.f32.mrb[4].mxu0  ;;  %v521_v20 = vpack.c.bf16 %v482_v17, %v480_v16  ;;  %v4245_v16 = vld [vmem:[#allocation7 + $0x9c] ss:$24 sps:$4 sm:$0xff]   ;;  %v4243_v17 = vld [vmem:[#allocation7 + $0x98] ss:$24 sps:$4 sm:$0xff]  }
 0x19c   : > { %v471_v21 = vadd.f32 %v470_v19, %v327_v4  ;;  %v472_v22 = vpop.f32.mrb[5].mxu0  ;;  %v4246_v19 = vld [vmem:[#allocation7 + $0xc8] ss:$24 sps:$4 sm:$0xff]  }
 0x19d   : > { %v473_v23 = vadd.f32 %v472_v22, %v331_v5  ;;  %v474_v24 = vpop.f32.mrb[6].mxu0  ;;  %727 = vmatprep.mubr.bf16.mxu1 %v521_v20  ;;  %v4251_v20 = vld [vmem:[#allocation7 + $0xfc] ss:$24 sps:$4 sm:$0xff]   ;;  %v4254_v22 = vld [vmem:[#allocation7 + $0x12c] ss:$24 sps:$4 sm:$0xff]  }
 0x19e   : > { %v475_v25 = vadd.f32 %v474_v24, %v327_v4  ;;  %v476_v26 = vpop.f32.mrb[7].mxu0  ;;  %728 = vmatmul.mubr.bf16.vlgmr.msra.gmra.mrb[0].mxu1 %v520_v18  ;;  %v483_v28 = vmax.f32 %v471_v21, 0.0  ;;  %v4248_v18 = vld [vmem:[#allocation7 + $0xcc] ss:$24 sps:$4 sm:$0xff]   ;;  %v4249_v21 = vld [vmem:[#allocation7 + $0xf8] ss:$24 sps:$4 sm:$0xff]  }
 0x19f   : > { %v477_v27 = vadd.f32 %v476_v26, %v331_v5  ;;  %v484_v30 = vmax.f32 %v473_v23, 0.0  ;;  %v4252_v23 = vld [vmem:[#allocation7 + $0x128] ss:$24 sps:$4 sm:$0xff]   ;;  %v4257_v24 = vld [vmem:[#allocation7 + $0x15c] ss:$24 sps:$4 sm:$0xff]  }
 0x1a0   : > { %v485_v29 = vmax.f32 %v475_v25, 0.0  ;;  %v4255_v25 = vld [vmem:[#allocation7 + $0x158] ss:$24 sps:$4 sm:$0xff]   ;;  %v4260_v26 = vld [vmem:[#allocation7 + $0x4] ss:$24 sps:$4 sm:$0xff]  }
 0x1a1   : > { %v486_v31 = vmax.f32 %v477_v27, 0.0  ;;  %v4282_v27 = vld [vmem:[#allocation8 + $0x8] ss:$60 sps:$4 sm:$0xff]  }
 0x1a2   : > { %v522_v32 = vpack.c.bf16 %v485_v29, %v483_v28  ;;  %v4284_v28 = vld [vmem:[#allocation8 + $0xc] ss:$60 sps:$4 sm:$0xff]   ;;  %v4287_v29 = vld [vmem:[#allocation8 + $0x84] ss:$60 sps:$4 sm:$0xff]  }
 0x1a3   : > { %v523_v33 = vpack.c.bf16 %v486_v31, %v484_v30  ;;  %1450 = vmatprep.subr.bf16.mxu1 %v4284_v28  ;;  %v4285_v30 = vld [vmem:[#allocation8 + $0x80] ss:$60 sps:$4 sm:$0xff]   ;;  %v4279_v28 = vld [vmem:[#allocation7 + $0x150] ss:$24 sps:$4 sm:$0xff]  }
 0x1a4   : > { %1451 = vmatpush1.bf16.msra.mxu1 %v4282_v27  ;;  %v4290_v31 = vld [vmem:[#allocation8 + $0xfc] ss:$60 sps:$4 sm:$0xff]   ;;  %v4281_v27 = vld [vmem:[#allocation7 + $0x154] ss:$24 sps:$4 sm:$0xff]  }
 0x1a5   : > { %737 = vmatprep.mubr.bf16.mxu1 %v523_v33  ;;  %1452 = vmatprep.subr.bf16.mxu1 %v4287_v29  ;;  %v4293_v33 = vld [vmem:[#allocation8 + $0x174] ss:$60 sps:$4 sm:$0xff]   ;;  %v4326_v29 = vld [vmem:[#allocation8 + $0x69c] ss:$60 sps:$4 sm:$0xff]  }
 0x1a6   : > { %738 = vmatmul.mubr.bf16.gmra.mrb[4].mxu1 %v522_v32  ;;  %v4288_v32 = vld [vmem:[#allocation8 + $0xf8] ss:$60 sps:$4 sm:$0xff]  }
 0x1a8   : > { %1453 = vmatpush1.bf16.msra.mxu1 %v4285_v30  ;;  %v4324_v30 = vld [vmem:[#allocation8 + $0x698] ss:$60 sps:$4 sm:$0xff]  }
 0x1a9   : > { %1454 = vmatprep.subr.bf16.mxu1 %v4290_v31  ;;  %v4329_v31 = vld [vmem:[#allocation8 + $0x714] ss:$60 sps:$4 sm:$0xff]  }
 0x1ac   : > { %1455 = vmatpush1.bf16.msra.mxu1 %v4288_v32  ;;  %v4327_v32 = vld [vmem:[#allocation8 + $0x710] ss:$60 sps:$4 sm:$0xff]  }
 0x1ad   : > { %1456 = vmatprep.subr.bf16.mxu1 %v4293_v33  ;;  %v4332_v33 = vld [vmem:[#allocation5 + $0xc] ss:$16 sps:$4 sm:$0xff]  }
 0x1b0   : > { %1457 = vmatpush1.bf16.msra.mxu1 %v4291_v34  ;;  %v4378_v34 = vld [vmem:[#allocation8 + $0x3f4] ss:$60 sps:$4 sm:$0xff]  }
 0x1b1   : > { %1458 = vmatprep.subr.bf16.mxu1 %v4296_v35  ;;  %v4379_v35 = vld [vmem:[#allocation8 + $0x34] ss:$60 sps:$4 sm:$0xff]  }
 0x1b4   : > { %1459 = vmatpush1.bf16.msra.mxu1 %v4294_v36  ;;  %v4380_v36 = vld [vmem:[#allocation8 + $0x46c] ss:$60 sps:$4 sm:$0xff]  }
 0x1b5   : > { %1460 = vmatprep.subr.bf16.mxu1 %v4299_v37  ;;  %v4381_v37 = vld [vmem:[#allocation8 + $0xac] ss:$60 sps:$4 sm:$0xff]  }
 0x1b8   : > { %1461 = vmatpush1.bf16.msra.mxu1 %v4297_v38  ;;  %v4382_v38 = vld [vmem:[#allocation8 + $0x4e4] ss:$60 sps:$4 sm:$0xff]  }
 0x1b9   : > { %1462 = vmatprep.subr.bf16.mxu1 %v4302_v39  ;;  %v4383_v39 = vld [vmem:[#allocation8 + $0x124] ss:$60 sps:$4 sm:$0xff]  }
 0x1bc   : > { %1463 = vmatpush1.bf16.msra.mxu1 %v4300_v40  ;;  %v4384_v40 = vld [vmem:[#allocation8 + $0x55c] ss:$60 sps:$4 sm:$0xff]  }
 0x271   : > { %v729_v43 = vpop.f32.mrb[0].mxu1 }
 0x272   : > { %v730_v44 = vadd.f32 %v729_v43, %v528_v41  ;;  %v731_v45 = vpop.f32.mrb[1].mxu1  ;;  %v4308_v43 = vld [vmem:[#allocation8 + $0x3cc] ss:$60 sps:$4 sm:$0xff]  }
 0x273   : > { %v732_v46 = vadd.f32 %v731_v45, %v532_v42  ;;  %v733_v47 = vpop.f32.mrb[2].mxu1  ;;  %v4311_v45 = vld [vmem:[#allocation8 + $0x444] ss:$60 sps:$4 sm:$0xff]  }
 0x274   : > { %v734_v48 = vadd.f32 %v733_v47, %v528_v41  ;;  %v735_v49 = vpop.f32.mrb[3].mxu1  ;;  %v748_v51 = vmax.f32 %v730_v44, 0.0  ;;  %v4306_v44 = vld [vmem:[#allocation8 + $0x3c8] ss:$60 sps:$4 sm:$0xff]   ;;  %v4314_v47 = vld [vmem:[#allocation8 + $0x4bc] ss:$60 sps:$4 sm:$0xff]  }
 0x275   : > { %v736_v50 = vadd.f32 %v735_v49, %v532_v42  ;;  %v749_v53 = vmax.f32 %v732_v46, 0.0  ;;  %v4309_v46 = vld [vmem:[#allocation8 + $0x440] ss:$60 sps:$4 sm:$0xff]   ;;  %v4317_v49 = vld [vmem:[#allocation8 + $0x534] ss:$60 sps:$4 sm:$0xff]  }
 0x276   : > { %v750_v52 = vmax.f32 %v734_v48, 0.0  ;;  %v4312_v48 = vld [vmem:[#allocation8 + $0x4b8] ss:$60 sps:$4 sm:$0xff]  }
 0x277   : > { %v751_v54 = vmax.f32 %v736_v50, 0.0  ;;  %v4315_v50 = vld [vmem:[#allocation8 + $0x530] ss:$60 sps:$4 sm:$0xff]  }
 0x278   : > { %v788_v55 = vpack.c.bf16 %v750_v52, %v748_v51  ;;  %v4320_v51 = vld [vmem:[#allocation8 + $0x5ac] ss:$60 sps:$4 sm:$0xff]  }
 0x279   : > { %v789_v56 = vpack.c.bf16 %v751_v54, %v749_v53  ;;  %v739_v57 = vpop.f32.mrb[4].mxu1  ;;  %v4318_v52 = vld [vmem:[#allocation8 + $0x5a8] ss:$60 sps:$4 sm:$0xff]   ;;  %v4321_v54 = vld [vmem:[#allocation8 + $0x620] ss:$60 sps:$4 sm:$0xff]  }
 0x27a   : > { %v740_v59 = vadd.f32 %v739_v57, %v528_v41  ;;  %v741_v60 = vpop.f32.mrb[5].mxu1  ;;  %v4323_v53 = vld [vmem:[#allocation8 + $0x624] ss:$60 sps:$4 sm:$0xff]  }
 0x27b   : > { %v742_v63 = vadd.f32 %v741_v60, %v532_v42  ;;  %v743_v2 = vpop.f32.mrb[6].mxu1  ;;  %927 = vmatprep.mubr.bf16.mxu0 %v789_v56 }
 0x27c   : > { %v744_v4 = vadd.f32 %v743_v2, %v528_v41  ;;  %v745_v5 = vpop.f32.mrb[7].mxu1  ;;  %928 = vmatmul.mubr.bf16.vlgmr.msra.gmra.mrb[8].mxu0 %v788_v55  ;;  %v752_v8 = vmax.f32 %v740_v59, 0.0  ;;  %v4305_v41 = vld [vmem:[#allocation8 + $0x354] ss:$60 sps:$4 sm:$0xff]  }
 0x27d   : > { %v746_v6 = vadd.f32 %v745_v5, %v532_v42  ;;  %1059 = vmatpush1.bf16.msra.mxu0 %v4234_v58  ;;  %v753_v11 = vmax.f32 %v742_v63, 0.0  ;;  %v4303_v42 = vld [vmem:[#allocation8 + $0x350] ss:$60 sps:$4 sm:$0xff]   ;;  %1464 = vmatprep.subr.bf16.mxu1 %v4305_v41  ;;  %v4385_v41 = vld [vmem:[#allocation8 + $0x19c] ss:$60 sps:$4 sm:$0xff]  }
 0x27e   : > { %v754_v9 = vmax.f32 %v744_v4, 0.0  ;;  %1060 = vmatprep.subr.bf16.mxu0 %v4239_v61  ;;  %1465 = vmatpush1.bf16.msra.mxu1 %v4303_v42  ;;  %v3684_v59 = vld [vmem:[#allocation10 + $0x12] ss:$0 sm:$0xff] }
 0x27f   : > { %v755_v12 = vmax.f32 %v746_v6, 0.0  ;;  %1466 = vmatprep.subr.bf16.mxu1 %v4308_v43  ;;  %v4386_v42 = vld [vmem:[#allocation8 + $0x5d4] ss:$60 sps:$4 sm:$0xff]  }
 0x280   : > { %v790_v13 = vpack.c.bf16 %v754_v9, %v752_v8  ;;  %v4387_v43 = vld [vmem:[#allocation8 + $0x214] ss:$60 sps:$4 sm:$0xff]  }
 0x281   : > { %v791_v14 = vpack.c.bf16 %v755_v12, %v753_v11  ;;  %1061 = vmatpush1.bf16.msra.mxu0 %v4237_v7 }
 0x282   : > { %1062 = vmatprep.subr.bf16.mxu0 %v4242_v10  ;;  %1467 = vmatpush1.bf16.msra.mxu1 %v4306_v44  ;;  %v4388_v44 = vld [vmem:[#allocation8 + $0x64c] ss:$60 sps:$4 sm:$0xff]  }
 0x283   : > { %935 = vmatprep.mubr.bf16.mxu0 %v791_v14  ;;  %1468 = vmatprep.subr.bf16.mxu1 %v4311_v45  ;;  %v4389_v45 = vld [vmem:[#allocation8 + $0x28c] ss:$60 sps:$4 sm:$0xff]  }
 0x284   : > { %936 = vmatmul.mubr.bf16.gmra.mrb[12].mxu0 %v790_v13  ;;  %v4258_v13 = vld [vmem:[#allocation7] ss:$24 sps:$4 sm:$0xff]  }
 0x285   : > { %1063 = vmatpush1.bf16.msra.mxu0 %v4240_v15  ;;  %1090 = vmatprep.mubr.bf16.mxu0 %v4842_v0  ;;  %v4263_v15 = vld [vmem:[#allocation7 + $0x34] ss:$24 sps:$4 sm:$0xff]  }
 0x286   : > { %1064 = vmatprep.subr.bf16.mxu0 %v4245_v16  ;;  %1469 = vmatpush1.bf16.msra.mxu1 %v4309_v46  ;;  %v4261_v16 = vld [vmem:[#allocation7 + $0x30] ss:$24 sps:$4 sm:$0xff]   ;;  %v1224_v46 = vld [vmem:[#allocation10 + $0x4] sm:$0x3] }
 0x287   : > { %1470 = vmatprep.subr.bf16.mxu1 %v4314_v47  ;;  %v1229_v47 = vrot.slane %v1224_v46, %v5101_v1 }
 0x289   : > { %1065 = vmatpush1.bf16.msra.mxu0 %v4243_v17  ;;  %v4266_v17 = vld [vmem:[#allocation7 + $0x64] ss:$24 sps:$4 sm:$0xff]  }
 0x28a   : > { %1066 = vmatprep.subr.bf16.mxu0 %v4248_v18  ;;  %1471 = vmatpush1.bf16.msra.mxu1 %v4312_v48  ;;  %v4264_v18 = vld [vmem:[#allocation7 + $0x60] ss:$24 sps:$4 sm:$0xff]   ;;  %v1233_v48 = vrot.slane %v1224_v46, %v5103_v3 }
 0x28b   : > { %1472 = vmatprep.subr.bf16.mxu1 %v4317_v49 }
 0x28d   : > { %1067 = vmatpush1.bf16.msra.mxu0 %v4246_v19  ;;  %v4269_v19 = vld [vmem:[#allocation7 + $0x94] ss:$24 sps:$4 sm:$0xff]  }
 0x28e   : > { %1068 = vmatprep.subr.bf16.mxu0 %v4251_v20  ;;  %1473 = vmatpush1.bf16.msra.mxu1 %v4315_v50  ;;  %v4267_v20 = vld [vmem:[#allocation7 + $0x90] ss:$24 sps:$4 sm:$0xff]  }
 0x28f   : > { %1474 = vmatprep.subr.bf16.mxu1 %v4320_v51 }
 0x291   : > { %1069 = vmatpush1.bf16.msra.mxu0 %v4249_v21  ;;  %v4272_v21 = vld [vmem:[#allocation7 + $0xc4] ss:$24 sps:$4 sm:$0xff]  }
 0x292   : > { %1070 = vmatprep.subr.bf16.mxu0 %v4254_v22  ;;  %1475 = vmatpush1.bf16.msra.mxu1 %v4318_v52  ;;  %v4270_v22 = vld [vmem:[#allocation7 + $0xc0] ss:$24 sps:$4 sm:$0xff]  }
 0x293   : > { %1476 = vmatprep.subr.bf16.mxu1 %v4323_v53 }
 0x295   : > { %1071 = vmatpush1.bf16.msra.mxu0 %v4252_v23  ;;  %v4275_v23 = vld [vmem:[#allocation7 + $0xf4] ss:$24 sps:$4 sm:$0xff]  }
 0x296   : > { %1072 = vmatprep.subr.bf16.mxu0 %v4257_v24  ;;  %1477 = vmatpush1.bf16.msra.mxu1 %v4321_v54  ;;  %v4273_v24 = vld [vmem:[#allocation7 + $0xf0] ss:$24 sps:$4 sm:$0xff]  }
 0x297   : > { %1478 = vmatprep.subr.bf16.mxu1 %v4326_v29  ;;  %v4363_v29 = vld [vmem:[#allocation7 + $0xa0] ss:$24 sps:$4 sm:$0xff]  }
 0x299   : > { %1073 = vmatpush1.bf16.msra.mxu0 %v4255_v25  ;;  %v4278_v25 = vld [vmem:[#allocation7 + $0x124] ss:$24 sps:$4 sm:$0xff]  }
 0x29a   : > { %1181 = vmatprep.subr.bf16.mxu0 %v4260_v26  ;;  %v4276_v26 = vld [vmem:[#allocation7 + $0x120] ss:$24 sps:$4 sm:$0xff]   ;;  %1479 = vmatpush1.bf16.msra.mxu1 %v4324_v30  ;;  %v4368_v30 = vld [vmem:[#allocation7 + $0xd4] ss:$24 sps:$4 sm:$0xff]  }
 0x29b   : > { %1480 = vmatprep.subr.bf16.mxu1 %v4329_v31  ;;  %v4366_v31 = vld [vmem:[#allocation7 + $0xd0] ss:$24 sps:$4 sm:$0xff]  }
 0x29e   : > { %1481 = vmatpush1.bf16.msra.mxu1 %v4327_v32  ;;  %v4371_v32 = vld [vmem:[#allocation7 + $0x104] ss:$24 sps:$4 sm:$0xff]  }
 0x29f   : > { %1812 = vmatprep.subr.bf16.mxu1 %v4332_v33  ;;  %v4369_v33 = vld [vmem:[#allocation7 + $0x100] ss:$24 sps:$4 sm:$0xff]  }
 0x34f   : > { %v3982_v55 = vpop.f32.mrb[8].mxu0 }
 0x350   : > { %v3983_v56 = vpop.f32.mrb[9].mxu0 }
 0x351   : > { %v3984_v57 = vadd.f32 %v3983_v56, %v3982_v55  ;;  %v3985_v58 = vpop.f32.mrb[10].mxu0 }
 0x352   : > { %v3986_v60 = vpop.f32.mrb[11].mxu0 }
 0x353   : > { %v3987_v61 = vadd.f32 %v3986_v60, %v3985_v58  ;;  %v930_v63 = vadd.f32 %v3984_v57, %v3684_v59 }
 0x355   : > { %v933_v2 = vadd.f32 %v3987_v61, %v3684_v59 }
 0x357   : > { %v5110_v4 = vpack.c.bf16 %v933_v2, %v930_v63  ;;  %v3988_v5 = vpop.f32.mrb[12].mxu0  ;;  %v4330_v2 = vld [vmem:[#allocation5 + $0x8] ss:$16 sps:$4 sm:$0xff]  }
 0x358   : > { %v3989_v6 = vpop.f32.mrb[13].mxu0 }
 0x359   : > { %v3990_v7 = vadd.f32 %v3989_v6, %v3988_v5  ;;  %v3991_v8 = vpop.f32.mrb[14].mxu0  ;;  %v4335_v5 = vld [vmem:[#allocation5 + $0x2c] ss:$16 sps:$4 sm:$0xff]   ;;  %v4333_v6 = vld [vmem:[#allocation5 + $0x28] ss:$16 sps:$4 sm:$0xff]  }
 0x35a   : > { %v3992_v9 = vpop.f32.mrb[15].mxu0 }
 0x35b   : > { %v3993_v10 = vadd.f32 %v3992_v9, %v3991_v8  ;;  %v5112_v11 = vadd.f32 %v3990_v7, %v3684_v59  ;;  %v4338_v7 = vld [vmem:[#allocation5 + $0x4c] ss:$16 sps:$4 sm:$0xff]   ;;  %v4336_v8 = vld [vmem:[#allocation5 + $0x48] ss:$16 sps:$4 sm:$0xff]  }
 0x35c   : > { %v4341_v9 = vld [vmem:[#allocation5 + $0x6c] ss:$16 sps:$4 sm:$0xff]  }
 0x35d   : > { %5742 = vst [vmem:[#allocation18_spill] sm:$0xff] %v5112_v11  ;;  %v5114_v12 = vadd.f32 %v3993_v10, %v3684_v59  ;;  %v4339_v10 = vld [vmem:[#allocation5 + $0x68] ss:$16 sps:$4 sm:$0xff]  }
 0x35f   : > { %5743 = vst [vmem:[#allocation19_spill] sm:$0xff] %v5114_v12  ;;  %v977_v14 = vpack.c.bf16 %v5114_v12, %v5112_v11  ;;  %v5289_v12 = vld [vmem:[#allocation8 + $0x3e4] ss:$60 sps:$4 sm:$0xff]  }
 0x361   : > { %1091 = vmatmul.mubr.bf16.vlgmr.msra.gmra.mrb[16].mxu0 %v977_v14  ;;  %v4342_v14 = vld [vmem:[#allocation5 + $0x88] ss:$16 sps:$4 sm:$0xff]  }
 0x362   : > { %1182 = vmatpush1.bf16.msra.mxu0 %v4258_v13  ;;  %1213 = vmatprep.mubr.bf16.mxu0 %v4842_v0  ;;  %v4344_v13 = vld [vmem:[#allocation5 + $0x8c] ss:$16 sps:$4 sm:$0xff]  }
 0x363   : > { %1183 = vmatprep.subr.bf16.mxu0 %v4263_v15  ;;  %v4347_v15 = vld [vmem:[#allocation5 + $0xac] ss:$16 sps:$4 sm:$0xff]  }
 0x366   : > { %1184 = vmatpush1.bf16.msra.mxu0 %v4261_v16  ;;  %v4345_v16 = vld [vmem:[#allocation5 + $0xa8] ss:$16 sps:$4 sm:$0xff]  }
 0x367   : > { %1185 = vmatprep.subr.bf16.mxu0 %v4266_v17  ;;  %v4350_v17 = vld [vmem:[#allocation5 + $0xcc] ss:$16 sps:$4 sm:$0xff]  }
 0x36a   : > { %1186 = vmatpush1.bf16.msra.mxu0 %v4264_v18  ;;  %v4348_v18 = vld [vmem:[#allocation5 + $0xc8] ss:$16 sps:$4 sm:$0xff]  }
 0x36b   : > { %1187 = vmatprep.subr.bf16.mxu0 %v4269_v19  ;;  %v4353_v19 = vld [vmem:[#allocation5 + $0xec] ss:$16 sps:$4 sm:$0xff]  }
 0x36e   : > { %1188 = vmatpush1.bf16.msra.mxu0 %v4267_v20  ;;  %v4351_v20 = vld [vmem:[#allocation5 + $0xe8] ss:$16 sps:$4 sm:$0xff]  }
 0x36f   : > { %1189 = vmatprep.subr.bf16.mxu0 %v4272_v21  ;;  %v4356_v21 = vld [vmem:[#allocation7 + $0x14] ss:$24 sps:$4 sm:$0xff]  }
 0x372   : > { %1190 = vmatpush1.bf16.msra.mxu0 %v4270_v22  ;;  %v4354_v22 = vld [vmem:[#allocation7 + $0x10] ss:$24 sps:$4 sm:$0xff]  }
 0x373   : > { %1191 = vmatprep.subr.bf16.mxu0 %v4275_v23  ;;  %v4359_v23 = vld [vmem:[#allocation7 + $0x44] ss:$24 sps:$4 sm:$0xff]  }
 0x376   : > { %1192 = vmatpush1.bf16.msra.mxu0 %v4273_v24  ;;  %v4610_v24 = vld [vmem:[%s5082_s23] sm:$0xff]  }
 0x377   : > { %1193 = vmatprep.subr.bf16.mxu0 %v4278_v25  ;;  %v4357_v25 = vld [vmem:[#allocation7 + $0x40] ss:$24 sps:$4 sm:$0xff]  }
 0x37a   : > { %1194 = vmatpush1.bf16.msra.mxu0 %v4276_v26  ;;  %v4362_v26 = vld [vmem:[#allocation7 + $0x74] ss:$24 sps:$4 sm:$0xff]  }
 0x37b   : > { %1195 = vmatprep.subr.bf16.mxu0 %v4281_v27  ;;  %v4360_v27 = vld [vmem:[#allocation7 + $0x70] ss:$24 sps:$4 sm:$0xff]  }
 0x37e   : > { %1196 = vmatpush1.bf16.msra.mxu0 %v4279_v28  ;;  %v4365_v28 = vld [vmem:[#allocation7 + $0xa4] ss:$24 sps:$4 sm:$0xff]  }
 0x37f   : > { %3994 = vmatprep.subr.bf16.mxu0 %v4378_v34  ;;  %v4374_v34 = vld [vmem:[#allocation7 + $0x134] ss:$24 sps:$4 sm:$0xff]  }
 0x381   : > { %1214 = vmatmul.mubr.bf16.vlgmr.msra.gmra.mrb[16].mxu0 %v5110_v4 }
 0x382   : > { %3995 = vmatpush3.bf16.msra.mxu0 %v4379_v35  ;;  %v4377_v35 = vld [vmem:[#allocation7 + $0x164] ss:$24 sps:$4 sm:$0xff]  }
 0x383   : > { %3996 = vmatprep.subr.bf16.mxu0 %v4380_v36  ;;  %v4375_v36 = vld [vmem:[#allocation7 + $0x160] ss:$24 sps:$4 sm:$0xff]  }
 0x386   : > { %3997 = vmatpush3.bf16.msra.mxu0 %v4381_v37  ;;  %v4390_v37 = vld [vmem:[#allocation8 + $0x6c4] ss:$60 sps:$4 sm:$0xff]  }
 0x387   : > { %3998 = vmatprep.subr.bf16.mxu0 %v4382_v38  ;;  %v4391_v38 = vld [vmem:[#allocation8 + $0x304] ss:$60 sps:$4 sm:$0xff]  }
 0x38a   : > { %3999 = vmatpush3.bf16.msra.mxu0 %v4383_v39  ;;  %v4392_v39 = vld [vmem:[#allocation8 + $0x73c] ss:$60 sps:$4 sm:$0xff]  }
 0x38b   : > { %4000 = vmatprep.subr.bf16.mxu0 %v4384_v40  ;;  %v4393_v40 = vld [vmem:[#allocation8 + $0x37c] ss:$60 sps:$4 sm:$0xff]  }
 0x38e   : > { %4001 = vmatpush3.bf16.msra.mxu0 %v4385_v41  ;;  %v4396_v41 = vld [vmem:[#allocation8 + $0x14] ss:$60 sps:$4 sm:$0xff]  }
 0x38f   : > { %4002 = vmatprep.subr.bf16.mxu0 %v4386_v42  ;;  %v1276_v42 = vld [vmem:[#allocation10 + $0x6] sm:$0x3] }
 0x392   : > { %4003 = vmatpush3.bf16.msra.mxu0 %v4387_v43  ;;  %v1283_v43 = vrot.slane %v1276_v42, %v5101_v1 }
 0x393   : > { %4004 = vmatprep.subr.bf16.mxu0 %v4388_v44  ;;  %v1287_v44 = vrot.slane %v1276_v42, %v5103_v3 }
 0x396   : > { %4005 = vmatpush3.bf16.msra.mxu0 %v4389_v45 }
 0x397   : > { %4006 = vmatprep.subr.bf16.mxu0 %v4390_v37 }
 0x39a   : > { %4007 = vmatpush3.bf16.msra.mxu0 %v4391_v38 }
 0x39b   : > { %4008 = vmatprep.subr.bf16.mxu0 %v4392_v39 }
 0x39e   : > { %4009 = vmatpush3.bf16.msra.mxu0 %v4393_v40 }
 0x39f   : > { %2204 = vmatprep.subr.bf16.mxu0 %v4396_v41  ;;  %v4439_v41 = vld [vmem:[#allocation8 + $0x718] ss:$60 sps:$4 sm:$0xff]  }
 0x454   : > { %v1215_v49 = vpop.f32.mrb[16].mxu0 }
 0x455   : > { %v1236_v50 = vadd.f32 %v1229_v47, %v1215_v49  ;;  %v1217_v51 = vpop.f32.mrb[17].mxu0 }
 0x456   : > { %v1237_v52 = vadd.f32 %v1233_v48, %v1217_v51  ;;  %v1219_v53 = vpop.f32.mrb[18].mxu0 }
 0x457   : > { %v1238_v54 = vadd.f32 %v1229_v47, %v1219_v53  ;;  %v1221_v55 = vpop.f32.mrb[19].mxu0  ;;  %v1240_v57 = vmax.f32 %v1236_v50, 0.0 }
 0x458   : > { %v1239_v56 = vadd.f32 %v1233_v48, %v1221_v55  ;;  %v1241_v59 = vmax.f32 %v1237_v52, 0.0 }
 0x459   : > { %v1242_v58 = vmax.f32 %v1238_v54, 0.0 }
 0x45a   : > { %v1243_v60 = vmax.f32 %v1239_v56, 0.0 }
 0x45b   : > { %v1277_v61 = vpack.c.bf16 %v1242_v58, %v1240_v57  ;;  %v4394_v58 = vld [vmem:[#allocation8 + $0x10] ss:$60 sps:$4 sm:$0xff]  }
 0x45c   : > { %v1278_v63 = vpack.c.bf16 %v1243_v60, %v1241_v59  ;;  %v4399_v59 = vld [vmem:[#allocation8 + $0x8c] ss:$60 sps:$4 sm:$0xff]  }
 0x45d   : > { %v4397_v60 = vld [vmem:[#allocation8 + $0x88] ss:$60 sps:$4 sm:$0xff]  }
 0x45e   : > { %1482 = vmatprep.mubr.bf16.mxu1 %v1278_v63  ;;  %v4400_v63 = vld [vmem:[#allocation8 + $0x100] ss:$60 sps:$4 sm:$0xff]  }
 0x45f   : > { %1483 = vmatmul.mubr.bf16.vlgmr.msra.gmra.mrb[8].mxu1 %v1277_v61  ;;  %v4402_v61 = vld [vmem:[#allocation8 + $0x104] ss:$60 sps:$4 sm:$0xff]  }
 0x460   : > { %1813 = vmatpush1.bf16.msra.mxu1 %v4330_v2  ;;  %1844 = vmatprep.mubr.bf16.mxu1 %v4842_v0  ;;  %v4405_v2 = vld [vmem:[#allocation8 + $0x17c] ss:$60 sps:$4 sm:$0xff]  }
 0x461   : > { %1814 = vmatprep.subr.bf16.mxu1 %v4335_v5  ;;  %v4403_v5 = vld [vmem:[#allocation8 + $0x178] ss:$60 sps:$4 sm:$0xff]  }
 0x464   : > { %1815 = vmatpush1.bf16.msra.mxu1 %v4333_v6  ;;  %v4408_v6 = vld [vmem:[#allocation8 + $0x1f4] ss:$60 sps:$4 sm:$0xff]  }
 0x465   : > { %1816 = vmatprep.subr.bf16.mxu1 %v4338_v7  ;;  %v4406_v7 = vld [vmem:[#allocation8 + $0x1f0] ss:$60 sps:$4 sm:$0xff]  }
 0x468   : > { %1817 = vmatpush1.bf16.msra.mxu1 %v4336_v8  ;;  %v4411_v8 = vld [vmem:[#allocation8 + $0x26c] ss:$60 sps:$4 sm:$0xff]  }
 0x469   : > { %1818 = vmatprep.subr.bf16.mxu1 %v4341_v9  ;;  %v4409_v9 = vld [vmem:[#allocation8 + $0x268] ss:$60 sps:$4 sm:$0xff]  }
 0x46c   : > { %1819 = vmatpush1.bf16.msra.mxu1 %v4339_v10  ;;  %v4414_v10 = vld [vmem:[#allocation8 + $0x2e4] ss:$60 sps:$4 sm:$0xff]  }
 0x46d   : > { %1820 = vmatprep.subr.bf16.mxu1 %v4344_v13  ;;  %v4412_v13 = vld [vmem:[#allocation8 + $0x2e0] ss:$60 sps:$4 sm:$0xff]  }
 0x470   : > { %1821 = vmatpush1.bf16.msra.mxu1 %v4342_v14  ;;  %v4417_v14 = vld [vmem:[#allocation8 + $0x35c] ss:$60 sps:$4 sm:$0xff]  }
 0x471   : > { %1822 = vmatprep.subr.bf16.mxu1 %v4347_v15  ;;  %v4415_v15 = vld [vmem:[#allocation8 + $0x358] ss:$60 sps:$4 sm:$0xff]  }
 0x474   : > { %1823 = vmatpush1.bf16.msra.mxu1 %v4345_v16  ;;  %v4420_v16 = vld [vmem:[#allocation8 + $0x3d4] ss:$60 sps:$4 sm:$0xff]  }
 0x475   : > { %1824 = vmatprep.subr.bf16.mxu1 %v4350_v17  ;;  %v4418_v17 = vld [vmem:[#allocation8 + $0x3d0] ss:$60 sps:$4 sm:$0xff]  }
 0x478   : > { %1825 = vmatpush1.bf16.msra.mxu1 %v4348_v18  ;;  %v4423_v18 = vld [vmem:[#allocation8 + $0x44c] ss:$60 sps:$4 sm:$0xff]  }
 0x479   : > { %1826 = vmatprep.subr.bf16.mxu1 %v4353_v19  ;;  %v4421_v19 = vld [vmem:[#allocation8 + $0x448] ss:$60 sps:$4 sm:$0xff]  }
 0x47c   : > { %1827 = vmatpush1.bf16.msra.mxu1 %v4351_v20  ;;  %v4426_v20 = vld [vmem:[#allocation8 + $0x4c4] ss:$60 sps:$4 sm:$0xff]  }
 0x47d   : > { %1935 = vmatprep.subr.bf16.mxu1 %v4356_v21  ;;  %v4424_v21 = vld [vmem:[#allocation8 + $0x4c0] ss:$60 sps:$4 sm:$0xff]  }
 0x47f   : > { %1845 = vmatmul.mubr.bf16.vlgmr.msra.gmra.mrb[12].mxu1 %v4610_v24  ;;  %v4432_v24 = vld [vmem:[#allocation8 + $0x5b4] ss:$60 sps:$4 sm:$0xff]  }
 0x480   : > { %1936 = vmatpush1.bf16.msra.mxu1 %v4354_v22  ;;  %1967 = vmatprep.mubr.bf16.mxu1 %v4842_v0  ;;  %v4372_v0 = vld [vmem:[#allocation7 + $0x130] ss:$24 sps:$4 sm:$0xff]   ;;  %v4429_v22 = vld [vmem:[#allocation8 + $0x53c] ss:$60 sps:$4 sm:$0xff]  }
 0x481   : > { %1937 = vmatprep.subr.bf16.mxu1 %v4359_v23  ;;  %v4427_v23 = vld [vmem:[#allocation8 + $0x538] ss:$60 sps:$4 sm:$0xff]  }
 0x484   : > { %1938 = vmatpush1.bf16.msra.mxu1 %v4357_v25  ;;  %v4430_v25 = vld [vmem:[#allocation8 + $0x5b0] ss:$60 sps:$4 sm:$0xff]  }
 0x485   : > { %1939 = vmatprep.subr.bf16.mxu1 %v4362_v26  ;;  %v4435_v26 = vld [vmem:[#allocation8 + $0x62c] ss:$60 sps:$4 sm:$0xff]  }
 0x488   : > { %1940 = vmatpush1.bf16.msra.mxu1 %v4360_v27  ;;  %v1978_v27 = vld [vmem:[#allocation10 + $0x8] sm:$0x3] }
 0x489   : > { %1941 = vmatprep.subr.bf16.mxu1 %v4365_v28  ;;  %v4433_v28 = vld [vmem:[#allocation8 + $0x628] ss:$60 sps:$4 sm:$0xff]  }
 0x48c   : > { %1942 = vmatpush1.bf16.msra.mxu1 %v4363_v29  ;;  %v1983_v29 = vrot.slane %v1978_v27, %v5101_v1 }
 0x48d   : > { %1943 = vmatprep.subr.bf16.mxu1 %v4368_v30  ;;  %v4438_v30 = vld [vmem:[#allocation8 + $0x6a4] ss:$60 sps:$4 sm:$0xff]  }
 0x490   : > { %1944 = vmatpush1.bf16.msra.mxu1 %v4366_v31  ;;  %v1987_v31 = vrot.slane %v1978_v27, %v5103_v3 }
 0x491   : > { %1945 = vmatprep.subr.bf16.mxu1 %v4371_v32 }
 0x494   : > { %1946 = vmatpush1.bf16.msra.mxu1 %v4369_v33  ;;  %v4436_v33 = vld [vmem:[#allocation8 + $0x6a0] ss:$60 sps:$4 sm:$0xff]  }
 0x495   : > { %1947 = vmatprep.subr.bf16.mxu1 %v4374_v34 }
 0x498   : > { %1948 = vmatpush1.bf16.msra.mxu1 %v4372_v0 }
 0x499   : > { %1949 = vmatprep.subr.bf16.mxu1 %v4377_v35  ;;  %v4441_v35 = vld [vmem:[#allocation8 + $0x71c] ss:$60 sps:$4 sm:$0xff]  }
 0x49c   : > { %1950 = vmatpush1.bf16.msra.mxu1 %v4375_v36 }
 0x49f   : > { %1968 = vmatmul.mubr.bf16.vlgmr.msra.gmra.mrb[12].mxu1 %v5110_v4 }
 0x532   : > { %v1484_v45 = vpop.f32.mrb[8].mxu1 }
 0x533   : > { %v1485_v46 = vadd.f32 %v1484_v45, %v1283_v43  ;;  %v1486_v47 = vpop.f32.mrb[9].mxu1 }
 0x534   : > { %v1487_v48 = vadd.f32 %v1486_v47, %v1287_v44  ;;  %v1488_v4 = vpop.f32.mrb[10].mxu1 }
 0x535   : > { %v1489_v49 = vadd.f32 %v1488_v4, %v1283_v43  ;;  %v1490_v50 = vpop.f32.mrb[11].mxu1  ;;  %v1493_v52 = vmax.f32 %v1485_v46, 0.0  ;;  %v5132_v4 = vld [vmem:[#allocation8 + $0x18] ss:$60 sps:$4 sm:$0xff]  }
 0x536   : > { %v1491_v51 = vadd.f32 %v1490_v50, %v1287_v44  ;;  %v1494_v54 = vmax.f32 %v1487_v48, 0.0  ;;  %v5130_v48 = vld [vmem:[#allocation8 + $0x1c] ss:$60 sps:$4 sm:$0xff]   ;;  %v5138_v50 = vld [vmem:[#allocation8 + $0x90] ss:$60 sps:$4 sm:$0xff]  }
 0x537   : > { %v1495_v53 = vmax.f32 %v1489_v49, 0.0  ;;  %5744 = vst [vmem:[#allocation20_spill] sm:$0xff] %v5130_v48  ;;  %2465 = vmatprep.subr.bf16.mxu1 %v5130_v48  ;;  %v5136_v49 = vld [vmem:[#allocation8 + $0x94] ss:$60 sps:$4 sm:$0xff]  }
 0x538   : > { %v1496_v55 = vmax.f32 %v1491_v51, 0.0  ;;  %2466 = vmatpush1.bf16.msra.mxu1 %v5132_v4  ;;  %v5140_v51 = vld [vmem:[#allocation8 + $0x10c] ss:$60 sps:$4 sm:$0xff]  }
 0x539   : > { %v1529_v56 = vpack.c.bf16 %v1495_v53, %v1493_v52  ;;  %2467 = vmatprep.subr.bf16.mxu1 %v5136_v49  ;;  %v5144_v52 = vld [vmem:[#allocation8 + $0x108] ss:$60 sps:$4 sm:$0xff]  }
 0x53a   : > { %v1530_v57 = vpack.c.bf16 %v1496_v55, %v1494_v54  ;;  %v5147_v53 = vld [vmem:[#allocation8 + $0x184] ss:$60 sps:$4 sm:$0xff]   ;;  %v5153_v55 = vld [vmem:[#allocation8 + $0x1fc] ss:$60 sps:$4 sm:$0xff]  }
 0x53b   : > { %v5150_v54 = vld [vmem:[#allocation8 + $0x180] ss:$60 sps:$4 sm:$0xff]  }
 0x53c   : > { %1666 = vmatprep.mubr.bf16.mxu0 %v1530_v57  ;;  %2468 = vmatpush1.bf16.msra.mxu1 %v5138_v50  ;;  %v5159_v57 = vld [vmem:[#allocation8 + $0x274] ss:$60 sps:$4 sm:$0xff]  }
 0x53d   : > { %1667 = vmatmul.mubr.bf16.vlgmr.msra.gmra.mrb[20].mxu0 %v1529_v56  ;;  %2469 = vmatprep.subr.bf16.mxu1 %v5140_v51  ;;  %v5156_v56 = vld [vmem:[#allocation8 + $0x1f8] ss:$60 sps:$4 sm:$0xff]  }
 0x53e   : > { %2205 = vmatpush1.bf16.msra.mxu0 %v4394_v58  ;;  %v5162_v58 = vld [vmem:[#allocation8 + $0x270] ss:$60 sps:$4 sm:$0xff]  }
 0x53f   : > { %2206 = vmatprep.subr.bf16.mxu0 %v4399_v59  ;;  %v5165_v59 = vld [vmem:[#allocation8 + $0x2ec] ss:$60 sps:$4 sm:$0xff]  }
 0x540   : > { %2470 = vmatpush1.bf16.msra.mxu1 %v5144_v52 }
 0x541   : > { %2471 = vmatprep.subr.bf16.mxu1 %v5147_v53 }
 0x542   : > { %2207 = vmatpush1.bf16.msra.mxu0 %v4397_v60  ;;  %v5168_v60 = vld [vmem:[#allocation8 + $0x2e8] ss:$60 sps:$4 sm:$0xff]  }
 0x543   : > { %2208 = vmatprep.subr.bf16.mxu0 %v4402_v61  ;;  %v5171_v61 = vld [vmem:[#allocation8 + $0x364] ss:$60 sps:$4 sm:$0xff]  }
 0x544   : > { %2472 = vmatpush1.bf16.msra.mxu1 %v5150_v54 }
 0x545   : > { %2473 = vmatprep.subr.bf16.mxu1 %v5153_v55 }
 0x546   : > { %2209 = vmatpush1.bf16.msra.mxu0 %v4400_v63  ;;  %v5174_v63 = vld [vmem:[#allocation8 + $0x360] ss:$60 sps:$4 sm:$0xff]  }
 0x547   : > { %2210 = vmatprep.subr.bf16.mxu0 %v4405_v2  ;;  %5745 = vst [vmem:[#allocation21_spill] sm:$0xff] %v5174_v63  ;;  %v5177_v2 = vld [vmem:[#allocation8 + $0x3dc] ss:$60 sps:$4 sm:$0xff]  }
 0x548   : > { %2474 = vmatpush1.bf16.msra.mxu1 %v5156_v56  ;;  %5746 = vst [vmem:[#allocation22_spill] sm:$0xff] %v5177_v2 }
 0x549   : > { %2475 = vmatprep.subr.bf16.mxu1 %v5159_v57 }
 0x54a   : > { %2211 = vmatpush1.bf16.msra.mxu0 %v4403_v5  ;;  %v5180_v5 = vld [vmem:[#allocation8 + $0x3d8] ss:$60 sps:$4 sm:$0xff]  }
 0x54b   : > { %2212 = vmatprep.subr.bf16.mxu0 %v4408_v6  ;;  %5747 = vst [vmem:[#allocation23_spill] sm:$0xff] %v5180_v5  ;;  %v5183_v6 = vld [vmem:[#allocation8 + $0x454] ss:$60 sps:$4 sm:$0xff]  }
 0x54c   : > { %2476 = vmatpush1.bf16.msra.mxu1 %v5162_v58  ;;  %5748 = vst [vmem:[#allocation24_spill] sm:$0xff] %v5183_v6 }
 0x54d   : > { %2477 = vmatprep.subr.bf16.mxu1 %v5165_v59 }
 0x54e   : > { %2213 = vmatpush1.bf16.msra.mxu0 %v4406_v7  ;;  %v5186_v7 = vld [vmem:[#allocation8 + $0x450] ss:$60 sps:$4 sm:$0xff]  }
 0x54f   : > { %2214 = vmatprep.subr.bf16.mxu0 %v4411_v8  ;;  %5749 = vst [vmem:[#allocation25_spill] sm:$0xff] %v5186_v7  ;;  %v5189_v8 = vld [vmem:[#allocation8 + $0x4cc] ss:$60 sps:$4 sm:$0xff]  }
 0x550   : > { %2478 = vmatpush1.bf16.msra.mxu1 %v5168_v60  ;;  %5750 = vst [vmem:[#allocation26_spill] sm:$0xff] %v5189_v8 }
 0x551   : > { %2479 = vmatprep.subr.bf16.mxu1 %v5171_v61 }
 0x552   : > { %2215 = vmatpush1.bf16.msra.mxu0 %v4409_v9  ;;  %v5192_v9 = vld [vmem:[#allocation8 + $0x4c8] ss:$60 sps:$4 sm:$0xff]  }
 0x553   : > { %2216 = vmatprep.subr.bf16.mxu0 %v4414_v10  ;;  %5751 = vst [vmem:[#allocation27_spill] sm:$0xff] %v5192_v9  ;;  %v5195_v10 = vld [vmem:[#allocation8 + $0x544] ss:$60 sps:$4 sm:$0xff]  }
 0x554   : > { %2480 = vmatpush1.bf16.msra.mxu1 %v5174_v63  ;;  %5752 = vst [vmem:[#allocation28_spill] sm:$0xff] %v5195_v10 }
 0x555   : > { %2481 = vmatprep.subr.bf16.mxu1 %v5177_v2 }
 0x556   : > { %2217 = vmatpush1.bf16.msra.mxu0 %v4412_v13  ;;  %v5198_v13 = vld [vmem:[#allocation8 + $0x540] ss:$60 sps:$4 sm:$0xff]  }
 0x557   : > { %2218 = vmatprep.subr.bf16.mxu0 %v4417_v14  ;;  %5753 = vst [vmem:[#allocation29_spill] sm:$0xff] %v5198_v13  ;;  %v5201_v14 = vld [vmem:[#allocation8 + $0x5bc] ss:$60 sps:$4 sm:$0xff]  }
 0x558   : > { %2482 = vmatpush1.bf16.msra.mxu1 %v5180_v5  ;;  %5754 = vst [vmem:[#allocation30_spill] sm:$0xff] %v5201_v14 }
 0x559   : > { %2483 = vmatprep.subr.bf16.mxu1 %v5183_v6 }
 0x55a   : > { %2219 = vmatpush1.bf16.msra.mxu0 %v4415_v15  ;;  %v5204_v15 = vld [vmem:[#allocation8 + $0x5b8] ss:$60 sps:$4 sm:$0xff]  }
 0x55b   : > { %2220 = vmatprep.subr.bf16.mxu0 %v4420_v16  ;;  %5755 = vst [vmem:[#allocation31_spill] sm:$0xff] %v5204_v15  ;;  %v5207_v16 = vld [vmem:[#allocation8 + $0x634] ss:$60 sps:$4 sm:$0xff]  }
 0x55c   : > { %2484 = vmatpush1.bf16.msra.mxu1 %v5186_v7  ;;  %5756 = vst [vmem:[#allocation32_spill] sm:$0xff] %v5207_v16 }
 0x55d   : > { %2485 = vmatprep.subr.bf16.mxu1 %v5189_v8 }
 0x55e   : > { %2221 = vmatpush1.bf16.msra.mxu0 %v4418_v17  ;;  %v5210_v17 = vld [vmem:[#allocation8 + $0x630] ss:$60 sps:$4 sm:$0xff]  }
 0x55f   : > { %2222 = vmatprep.subr.bf16.mxu0 %v4423_v18  ;;  %5757 = vst [vmem:[#allocation33_spill] sm:$0xff] %v5210_v17  ;;  %v5214_v18 = vld [vmem:[#allocation8 + $0x6ac] ss:$60 sps:$4 sm:$0xff]  }
 0x560   : > { %2486 = vmatpush1.bf16.msra.mxu1 %v5192_v9  ;;  %5758 = vst [vmem:[#allocation34_spill] sm:$0xff] %v5214_v18 }
 0x561   : > { %2487 = vmatprep.subr.bf16.mxu1 %v5195_v10 }
 0x562   : > { %2223 = vmatpush1.bf16.msra.mxu0 %v4421_v19  ;;  %v5216_v19 = vld [vmem:[#allocation8 + $0x6a8] ss:$60 sps:$4 sm:$0xff]  }
 0x563   : > { %2224 = vmatprep.subr.bf16.mxu0 %v4426_v20  ;;  %5759 = vst [vmem:[#allocation35_spill] sm:$0xff] %v5216_v19  ;;  %v5220_v20 = vld [vmem:[#allocation8 + $0x724] ss:$60 sps:$4 sm:$0xff]  }
 0x564   : > { %2488 = vmatpush1.bf16.msra.mxu1 %v5198_v13  ;;  %5760 = vst [vmem:[#allocation36_spill] sm:$0xff] %v5220_v20 }
 0x565   : > { %2489 = vmatprep.subr.bf16.mxu1 %v5201_v14 }
 0x566   : > { %2225 = vmatpush1.bf16.msra.mxu0 %v4424_v21  ;;  %v5222_v21 = vld [vmem:[#allocation8 + $0x720] ss:$60 sps:$4 sm:$0xff]  }
 0x567   : > { %2226 = vmatprep.subr.bf16.mxu0 %v4429_v22  ;;  %5761 = vst [vmem:[#allocation37_spill] sm:$0xff] %v5222_v21  ;;  %v1676_v22 = vand.u32 127, %v324_v62  ;;  %v5236_v62 = vld [vmem:[#allocation8 + $0x20] ss:$60 sps:$4 sm:$0xff]  }
 0x568   : > { %2490 = vmatpush1.bf16.msra.mxu1 %v5204_v15 }
 0x569   : > { %2491 = vmatprep.subr.bf16.mxu1 %v5207_v16  ;;  %vm1678_vm0 = vcmp.lt.s32.totalorder %v1676_v22, 4 }
 0x56a   : > { %2227 = vmatpush1.bf16.msra.mxu0 %v4427_v23 }
 0x56b   : > { %2228 = vmatprep.subr.bf16.mxu0 %v4432_v24 }
 0x56c   : > { %2492 = vmatpush1.bf16.msra.mxu1 %v5210_v17 }
 0x56d   : > { %2493 = vmatprep.subr.bf16.mxu1 %v5214_v18 }
 0x56e   : > { %2229 = vmatpush1.bf16.msra.mxu0 %v4430_v25  ;;  %v3765_v25 = vld [vmem:[#allocation10 + $0x13] ss:$0 sm:$0xff] }
 0x56f   : > { %2230 = vmatprep.subr.bf16.mxu0 %v4435_v26 }
 0x570   : > { %2494 = vmatpush1.bf16.msra.mxu1 %v5216_v19 }
 0x571   : > { %2495 = vmatprep.subr.bf16.mxu1 %v5220_v20 }
 0x572   : > { %v1969_v32 = vpop.f32.mrb[12].mxu1  ;;  %2231 = vmatpush1.bf16.msra.mxu0 %v4433_v28 }
 0x573   : > { %v1990_v34 = vadd.f32 %v1983_v29, %v1969_v32  ;;  %v1971_v0 = vpop.f32.mrb[13].mxu1  ;;  %2232 = vmatprep.subr.bf16.mxu0 %v4438_v30 }
 0x574   : > { %v1991_v36 = vadd.f32 %v1987_v31, %v1971_v0  ;;  %v1973_v37 = vpop.f32.mrb[14].mxu1  ;;  %2496 = vmatpush1.bf16.msra.mxu1 %v5222_v21  ;;  %v5238_v0 = vld [vmem:[#allocation8 + $0x9c] ss:$60 sps:$4 sm:$0xff]  }
 0x575   : > { %v1992_v38 = vadd.f32 %v1983_v29, %v1973_v37  ;;  %v1975_v39 = vpop.f32.mrb[15].mxu1  ;;  %v1994_v42 = vmax.f32 %v1990_v34, 0.0  ;;  %2755 = vmatprep.subr.bf16.mxu1 %v5130_v48  ;;  %v5234_v34 = vld [vmem:[#allocation8 + $0x24] ss:$60 sps:$4 sm:$0xff]   ;;  %v5248_v37 = vld [vmem:[#allocation8 + $0x110] ss:$60 sps:$4 sm:$0xff]  }
 0x576   : > { %v1993_v40 = vadd.f32 %v1987_v31, %v1975_v39  ;;  %2233 = vmatpush1.bf16.msra.mxu0 %v4436_v33  ;;  %v1995_v44 = vmax.f32 %v1991_v36, 0.0  ;;  %5762 = vst [vmem:[#allocation38_spill] sm:$0xff] %v5234_v34  ;;  %v5245_v36 = vld [vmem:[#allocation8 + $0x114] ss:$60 sps:$4 sm:$0xff]   ;;  %v5254_v39 = vld [vmem:[#allocation8 + $0x188] ss:$60 sps:$4 sm:$0xff]  }
 0x577   : > { %v1996_v43 = vmax.f32 %v1992_v38, 0.0  ;;  %2234 = vmatprep.subr.bf16.mxu0 %v4441_v35  ;;  %v5242_v35 = vld [vmem:[#allocation8 + $0x98] ss:$60 sps:$4 sm:$0xff]   ;;  %v5251_v38 = vld [vmem:[#allocation8 + $0x18c] ss:$60 sps:$4 sm:$0xff]  }
 0x578   : > { %v1997_v45 = vmax.f32 %v1993_v40, 0.0  ;;  %v5257_v40 = vld [vmem:[#allocation8 + $0x204] ss:$60 sps:$4 sm:$0xff]  }
 0x579   : > { %v2030_v46 = vpack.c.bf16 %v1996_v43, %v1994_v42  ;;  %v5263_v42 = vld [vmem:[#allocation8 + $0x27c] ss:$60 sps:$4 sm:$0xff]  }
 0x57a   : > { %v2031_v47 = vpack.c.bf16 %v1997_v45, %v1995_v44  ;;  %2235 = vmatpush1.bf16.msra.mxu0 %v4439_v41  ;;  %v5260_v41 = vld [vmem:[#allocation8 + $0x200] ss:$60 sps:$4 sm:$0xff]   ;;  %v5266_v43 = vld [vmem:[#allocation8 + $0x278] ss:$60 sps:$4 sm:$0xff]   ;;  %v2032_v45 = vld [vmem:[#allocation10 + $0xa] sm:$0x3] }
 0x57b   : > { %2706 = vmatprep.subr.bf16.mxu0 %v5234_v34  ;;  %v5269_v44 = vld [vmem:[#allocation8 + $0x2f4] ss:$60 sps:$4 sm:$0xff]   ;;  %v2041_v22 = vrot.slane %v2032_v45, %v5103_v3 }
 0x57c   : > { %2236 = vmatprep.mubr.bf16.mxu0 %v2031_v47 }
 0x57d   : > { %2237 = vmatmul.mubr.bf16.vlgmr.msra.gmra.mrb[24].mxu0 %v2030_v46  ;;  %v5272_v46 = vld [vmem:[#allocation8 + $0x2f0] ss:$60 sps:$4 sm:$0xff]  }
 0x57e   : > { %2707 = vmatpush1.bf16.msra.mxu0 %v5236_v62  ;;  %5763 = vst [vmem:[#allocation39_spill] sm:$0xff] %v5272_v46 }
 0x57f   : > { %2708 = vmatprep.subr.bf16.mxu0 %v5238_v0 }
 0x582   : > { %2709 = vmatpush1.bf16.msra.mxu0 %v5242_v35 }
 0x583   : > { %2710 = vmatprep.subr.bf16.mxu0 %v5245_v36 }
 0x586   : > { %2711 = vmatpush1.bf16.msra.mxu0 %v5248_v37 }
 0x587   : > { %2712 = vmatprep.subr.bf16.mxu0 %v5251_v38 }
 0x58a   : > { %2713 = vmatpush1.bf16.msra.mxu0 %v5254_v39 }
 0x58b   : > { %2714 = vmatprep.subr.bf16.mxu0 %v5257_v40 }
 0x58e   : > { %2715 = vmatpush1.bf16.msra.mxu0 %v5260_v41 }
 0x58f   : > { %2716 = vmatprep.subr.bf16.mxu0 %v5263_v42 }
 0x592   : > { %2717 = vmatpush1.bf16.msra.mxu0 %v5266_v43 }
 0x593   : > { %2718 = vmatprep.subr.bf16.mxu0 %v5269_v44 }
 0x596   : > { %2719 = vmatpush1.bf16.msra.mxu0 %v5272_v46  ;;  %v5298_v46 = vld [vmem:[#allocation8 + $0x3e0] ss:$60 sps:$4 sm:$0xff]  }
 0x610   : > { %v4010_v23 = vpop.f32.mrb[20].mxu0 }
 0x611   : > { %v4011_v24 = vpop.f32.mrb[21].mxu0 }
 0x612   : > { %v4012_v26 = vadd.f32 %v4011_v24, %v4010_v23  ;;  %v4013_v27 = vpop.f32.mrb[22].mxu0  ;;  %v5276_v23 = vld [vmem:[#allocation8 + $0x36c] ss:$60 sps:$4 sm:$0xff]   ;;  %v2037_v24 = vrot.slane %v2032_v45, %v5101_v1 }
 0x613   : > { %v4014_v28 = vpop.f32.mrb[23].mxu0  ;;  %2720 = vmatprep.subr.bf16.mxu0 %v5276_v23 }
 0x614   : > { %v4015_v29 = vadd.f32 %v4014_v28, %v4013_v27  ;;  %v1669_v30 = vadd.f32 %v4012_v26, %v3765_v25 }
 0x616   : > { %v5228_v31 = vsel %vm1678_vm0, %v1669_v30, -1e+30  ;;  %v1672_v32 = vadd.f32 %v4015_v29, %v3765_v25  ;;  %v5282_v29 = vld [vmem:[#allocation8 + $0x368] ss:$60 sps:$4 sm:$0xff]  }
 0x617   : > { %1682 = vmax.xlane.f32.xlu0 %v5228_v31  ;;  %2721 = vmatpush1.bf16.msra.mxu0 %v5282_v29 }
 0x618   : > { %v5231_v33 = vsel %vm1678_vm0, %v1672_v32, -1e+30  ;;  %2722 = vmatprep.subr.bf16.mxu0 %v5289_v12 }
 0x61b   : > { %1684 = vmax.xlane.f32.xlu0 %v5231_v33  ;;  %2723 = vmatpush1.bf16.msra.mxu0 %v5298_v46 }
 0x650   : > { %v2238_v47 = vpop.f32.mrb[24].mxu0 }
 0x651   : > { %v2240_v25 = vpop.f32.mrb[25].mxu0  ;;  %v5291_v11 = vadd.f32 %v2238_v47, %v2037_v24  ;;  %v5305_v47 = vld [vmem:[#allocation8 + $0x458] ss:$60 sps:$4 sm:$0xff]  }
 0x652   : > { %v2242_v26 = vpop.f32.mrb[26].mxu0  ;;  %v5284_v30 = vadd.f32 %v2240_v25, %v2041_v22  ;;  %v5313_v25 = vld [vmem:[#allocation8 + $0x4d0] ss:$60 sps:$4 sm:$0xff]  }
 0x653   : > { %v5279_v27 = vadd.f32 %v2242_v26, %v2037_v24  ;;  %v2244_v28 = vpop.f32.mrb[27].mxu0  ;;  %5767 = vst [vmem:[#allocation43_spill] sm:$0xff] %v5291_v11  ;;  %v5309_v24 = vld [vmem:[#allocation8 + $0x4d4] ss:$60 sps:$4 sm:$0xff]  }
 0x654   : > { %5765 = vst [vmem:[#allocation41_spill] sm:$0xff] %v5284_v30  ;;  %v5286_v32 = vadd.f32 %v2244_v28, %v2041_v22  ;;  %v5301_v22 = vld [vmem:[#allocation8 + $0x45c] ss:$60 sps:$4 sm:$0xff]   ;;  %v5317_v28 = vld [vmem:[#allocation8 + $0x54c] ss:$60 sps:$4 sm:$0xff]  }
 0x655   : > { %5764 = vst [vmem:[#allocation40_spill] sm:$0xff] %v5279_v27  ;;  %v2303_v26 = vpack.c.bf16 %v5279_v27, %v5291_v11  ;;  %2724 = vmatprep.subr.bf16.mxu0 %v5301_v22  ;;  %v5329_v11 = vld [vmem:[#allocation8 + $0x5c0] ss:$60 sps:$4 sm:$0xff]  }
 0x656   : > { %5766 = vst [vmem:[#allocation42_spill] sm:$0xff] %v5286_v32  ;;  %v2304_v45 = vpack.c.bf16 %v5286_v32, %v5284_v30  ;;  %2725 = vmatpush1.bf16.msra.mxu0 %v5305_v47  ;;  %v5333_v32 = vld [vmem:[#allocation8 + $0x63c] ss:$60 sps:$4 sm:$0xff]  }
 0x657   : > { %2726 = vmatprep.subr.bf16.mxu0 %v5309_v24 }
 0x658   : > { %2497 = vmatprep.mubr.bf16.mxu1 %v2304_v45  ;;  %v5321_v45 = vld [vmem:[#allocation8 + $0x548] ss:$60 sps:$4 sm:$0xff]  }
 0x659   : > { %2498 = vmatmul.mubr.bf16.vlgmr.msra.gmra.mrb[16].mxu1 %v2303_v26  ;;  %v5325_v26 = vld [vmem:[#allocation8 + $0x5c4] ss:$60 sps:$4 sm:$0xff]  }
 0x65a   : > { %2756 = vmatpush1.bf16.msra.mxu1 %v5132_v4  ;;  %2727 = vmatpush1.bf16.msra.mxu0 %v5313_v25 }
 0x65b   : > { %2757 = vmatprep.subr.bf16.mxu1 %v5136_v49  ;;  %2728 = vmatprep.subr.bf16.mxu0 %v5317_v28 }
 0x65e   : > { %2758 = vmatpush1.bf16.msra.mxu1 %v5138_v50  ;;  %2729 = vmatpush1.bf16.msra.mxu0 %v5321_v45 }
 0x65f   : > { %2759 = vmatprep.subr.bf16.mxu1 %v5140_v51  ;;  %2730 = vmatprep.subr.bf16.mxu0 %v5325_v26 }
 0x662   : > { %2760 = vmatpush1.bf16.msra.mxu1 %v5144_v52  ;;  %2731 = vmatpush1.bf16.msra.mxu0 %v5329_v11 }
 0x663   : > { %2761 = vmatprep.subr.bf16.mxu1 %v5147_v53  ;;  %2732 = vmatprep.subr.bf16.mxu0 %v5333_v32 }
 0x666   : > { %2762 = vmatpush1.bf16.msra.mxu1 %v5150_v54 }
 0x667   : > { %2763 = vmatprep.subr.bf16.mxu1 %v5153_v55 }
 0x66a   : > { %2764 = vmatpush1.bf16.msra.mxu1 %v5156_v56 }
 0x66b   : > { %2765 = vmatprep.subr.bf16.mxu1 %v5159_v57 }
 0x66e   : > { %2766 = vmatpush1.bf16.msra.mxu1 %v5162_v58 }
 0x66f   : > { %2767 = vmatprep.subr.bf16.mxu1 %v5165_v59 }
 0x672   : > { %2768 = vmatpush1.bf16.msra.mxu1 %v5168_v60 }
 0x673   : > { %2769 = vmatprep.subr.bf16.mxu1 %v5171_v61 }
 0x676   : > { %2770 = vmatpush1.bf16.msra.mxu1 %v5174_v63 }
 0x677   : > { %2771 = vmatprep.subr.bf16.mxu1 %v5177_v2 }
 0x67a   : > { %2772 = vmatpush1.bf16.msra.mxu1 %v5180_v5 }
 0x67b   : > { %2773 = vmatprep.subr.bf16.mxu1 %v5183_v6 }
 0x67e   : > { %2774 = vmatpush1.bf16.msra.mxu1 %v5186_v7 }
 0x67f   : > { %2775 = vmatprep.subr.bf16.mxu1 %v5189_v8 }
 0x682   : > { %2776 = vmatpush1.bf16.msra.mxu1 %v5192_v9 }
 0x683   : > { %2777 = vmatprep.subr.bf16.mxu1 %v5195_v10 }
 0x686   : > { %2778 = vmatpush1.bf16.msra.mxu1 %v5198_v13 }
 0x687   : > { %2779 = vmatprep.subr.bf16.mxu1 %v5201_v14 }
 0x68a   : > { %2780 = vmatpush1.bf16.msra.mxu1 %v5204_v15  ;;  %v5363_v15 = vld [vmem:[#allocation8 + $0x638] ss:$60 sps:$4 sm:$0xff]  }
 0x68b   : > { %2781 = vmatprep.subr.bf16.mxu1 %v5207_v16  ;;  %2733 = vmatpush1.bf16.msra.mxu0 %v5363_v15 }
 0x68e   : > { %2782 = vmatpush1.bf16.msra.mxu1 %v5210_v17 }
 0x68f   : > { %2783 = vmatprep.subr.bf16.mxu1 %v5214_v18 }
 0x692   : > { %2784 = vmatpush1.bf16.msra.mxu1 %v5216_v19  ;;  %v5366_v19 = vld [vmem:[#allocation8 + $0x6b4] ss:$60 sps:$4 sm:$0xff]  }
 0x693   : > { %2785 = vmatprep.subr.bf16.mxu1 %v5220_v20  ;;  %5768 = vst [vmem:[#allocation44_spill] sm:$0xff] %v5366_v19  ;;  %v5368_v20 = vld [vmem:[#allocation8 + $0x6b0] ss:$60 sps:$4 sm:$0xff]   ;;  %2734 = vmatprep.subr.bf16.mxu0 %v5366_v19 }
 0x694   : > { %5769 = vst [vmem:[#allocation45_spill] sm:$0xff] %v5368_v20  ;;  %2735 = vmatpush1.bf16.msra.mxu0 %v5368_v20 }
 0x696   : > { %2786 = vmatpush1.bf16.msra.mxu1 %v5222_v21 }
 0x697   : > { %2857 = vmatprep.subr.bf16.mxu1 %v5130_v48 }
 0x6a4   : > { %v1683_v30 = vpop.xlane.xlu0 %1682 }
 0x6a5   : > { %v1686_v27 = vsub.f32 %v5228_v31, %v1683_v30  ;;  %v5372_v31 = vld [vmem:[#allocation8 + $0x72c] ss:$60 sps:$4 sm:$0xff]  }
 0x6a6   : > { %5770 = vst [vmem:[#allocation46_spill] sm:$0xff] %v5372_v31  ;;  %2736 = vmatprep.subr.bf16.mxu0 %v5372_v31 }
 0x6a7   : > { %v1688_v14 = vmul.f32 1.442695, %v1686_v27  ;;  %v5374_v27 = vld [vmem:[#allocation8 + $0x728] ss:$60 sps:$4 sm:$0xff]  }
 0x6a8   : > { %v1685_v13 = vpop.xlane.xlu0 %1684  ;;  %5771 = vst [vmem:[#allocation47_spill] sm:$0xff] %v5374_v27  ;;  %2737 = vmatpush1.bf16.msra.mxu0 %v5374_v27 }
 0x6a9   : > { %4602 = vpow2.f32 %v1688_v14  ;;  %v1687_v16 = vsub.f32 %v5231_v33, %v1685_v13  ;;  %2804 = vmatprep.subr.bf16.mxu0 %v5234_v34 }
 0x6ab   : > { %v1690_v17 = vmul.f32 1.442695, %v1687_v16  ;;  %v2247_v16 = vld [vmem:[#allocation10 + $0xc] sm:$0x3] }
 0x6ac   : > { %v5389_v33 = vrot.slane %v2247_v16, %v5103_v3 }
 0x6ad   : > { %4604 = vpow2.f32 %v1690_v17  ;;  %v5386_v17 = vrot.slane %v2247_v16, %v5101_v1 }
 0x6b3   : > { %v5376_v14 = vpop.eup %4602 }
 0x6b4   : > { %5772 = vst [vmem:[#allocation48_spill] sm:$0xff] %v5376_v14  ;;  %1692 = vadd.xlane.f32.xlu1 %v5376_v14 }
 0x6b7   : > { %v5382_v13 = vpop.eup %4604 }
 0x6b8   : > { %5773 = vst [vmem:[#allocation49_spill] sm:$0xff] %v5382_v13  ;;  %1694 = vadd.xlane.f32.xlu1 %v5382_v13 }
 0x72c   : > { %v2499_v30 = vpop.f32.mrb[16].mxu1 }
 0x72d   : > { %v2500_v48 = vadd.f32 %v2499_v30, %v5386_v17  ;;  %v2501_v21 = vpop.f32.mrb[17].mxu1 }
 0x72e   : > { %v2502_v14 = vadd.f32 %v2501_v21, %v5389_v33  ;;  %v2503_v18 = vpop.f32.mrb[18].mxu1 }
 0x72f   : > { %v2504_v10 = vadd.f32 %v2503_v18, %v5386_v17  ;;  %v2505_v9 = vpop.f32.mrb[19].mxu1  ;;  %v2508_v13 = vmax.f32 %v2500_v48, 0.0  ;;  %v5774_v48 = vld [vmem:[#allocation39_spill] sm:$0xff] }
 0x730   : > { %v2506_v8 = vadd.f32 %v2505_v9, %v5389_v33  ;;  %v2509_v6 = vmax.f32 %v2502_v14, 0.0 }
 0x731   : > { %v2510_v7 = vmax.f32 %v2504_v10, 0.0 }
 0x732   : > { %v2511_v5 = vmax.f32 %v2506_v8, 0.0 }
 0x733   : > { %v2544_v2 = vpack.c.bf16 %v2510_v7, %v2508_v13 }
 0x734   : > { %v2545_v63 = vpack.c.bf16 %v2511_v5, %v2509_v6 }
 0x736   : > { %2738 = vmatprep.mubr.bf16.mxu0 %v2545_v63  ;;  %v2259_v63 = vld [vmem:[#allocation10 + $0xe] sm:$0x3] }
 0x737   : > { %2739 = vmatmul.mubr.bf16.vlgmr.msra.gmra.mrb[28].mxu0 %v2544_v2  ;;  %v5428_v2 = vrot.slane %v2259_v63, %v5101_v1  ;;  %v5431_v5 = vrot.slane %v2259_v63, %v5103_v3  ;;  %v5778_v63 = vld [vmem:[#allocation24_spill] sm:$0xff] }
 0x738   : > { %2805 = vmatpush1.bf16.msra.mxu0 %v5236_v62  ;;  %v5790_v3 = vld [vmem:[#allocation36_spill] sm:$0xff] }
 0x739   : > { %2806 = vmatprep.subr.bf16.mxu0 %v5238_v0 }
 0x73c   : > { %2807 = vmatpush1.bf16.msra.mxu0 %v5242_v35 }
 0x73d   : > { %2808 = vmatprep.subr.bf16.mxu0 %v5245_v36 }
 0x740   : > { %2809 = vmatpush1.bf16.msra.mxu0 %v5248_v37 }
 0x741   : > { %2810 = vmatprep.subr.bf16.mxu0 %v5251_v38 }
 0x744   : > { %2811 = vmatpush1.bf16.msra.mxu0 %v5254_v39 }
 0x745   : > { %2812 = vmatprep.subr.bf16.mxu0 %v5257_v40 }
 0x748   : > { %2813 = vmatpush1.bf16.msra.mxu0 %v5260_v41 }
 0x749   : > { %2814 = vmatprep.subr.bf16.mxu0 %v5263_v42 }
 0x74c   : > { %2815 = vmatpush1.bf16.msra.mxu0 %v5266_v43 }
 0x74d   : > { %2816 = vmatprep.subr.bf16.mxu0 %v5269_v44 }
 0x750   : > { %2817 = vmatpush1.bf16.msra.mxu0 %v5774_v48 }
 0x751   : > { %2818 = vmatprep.subr.bf16.mxu0 %v5276_v23 }
 0x754   : > { %2819 = vmatpush1.bf16.msra.mxu0 %v5282_v29 }
 0x755   : > { %2820 = vmatprep.subr.bf16.mxu0 %v5289_v12 }
 0x758   : > { %2821 = vmatpush1.bf16.msra.mxu0 %v5298_v46 }
 0x759   : > { %2822 = vmatprep.subr.bf16.mxu0 %v5301_v22 }
 0x75c   : > { %2823 = vmatpush1.bf16.msra.mxu0 %v5305_v47 }
 0x75d   : > { %2824 = vmatprep.subr.bf16.mxu0 %v5309_v24 }
 0x760   : > { %2825 = vmatpush1.bf16.msra.mxu0 %v5313_v25 }
 0x761   : > { %2826 = vmatprep.subr.bf16.mxu0 %v5317_v28 }
 0x764   : > { %2827 = vmatpush1.bf16.msra.mxu0 %v5321_v45 }
 0x765   : > { %2828 = vmatprep.subr.bf16.mxu0 %v5325_v26 }
 0x768   : > { %2829 = vmatpush1.bf16.msra.mxu0 %v5329_v11 }
 0x769   : > { %2830 = vmatprep.subr.bf16.mxu0 %v5333_v32 }
 0x76c   : > { %2831 = vmatpush1.bf16.msra.mxu0 %v5363_v15 }
 0x76d   : > { %2832 = vmatprep.subr.bf16.mxu0 %v5366_v19 }
 0x770   : > { %2833 = vmatpush1.bf16.msra.mxu0 %v5368_v20 }
 0x771   : > { %2834 = vmatprep.subr.bf16.mxu0 %v5372_v31 }
 0x774   : > { %2835 = vmatpush1.bf16.msra.mxu0 %v5374_v27 }
 0x775   : > { %2906 = vmatprep.subr.bf16.mxu0 %v5234_v34 }
 0x80a   : > { %v2740_v6 = vpop.f32.mrb[28].mxu0 }
 0x80b   : > { %v2741_v7 = vadd.f32 %v2740_v6, %v5428_v2  ;;  %v2742_v8 = vpop.f32.mrb[29].mxu0  ;;  %v5779_v6 = vld [vmem:[#allocation25_spill] sm:$0xff] }
 0x80c   : > { %v2743_v9 = vadd.f32 %v2742_v8, %v5431_v5  ;;  %v2744_v10 = vpop.f32.mrb[30].mxu0  ;;  %v5781_v8 = vld [vmem:[#allocation27_spill] sm:$0xff] }
 0x80d   : > { %v2745_v18 = vadd.f32 %v2744_v10, %v5428_v2  ;;  %v2746_v21 = vpop.f32.mrb[31].mxu0  ;;  %v2749_v13 = vmax.f32 %v2741_v7, 0.0  ;;  %v5780_v7 = vld [vmem:[#allocation26_spill] sm:$0xff]  ;;  %v5783_v10 = vld [vmem:[#allocation29_spill] sm:$0xff] }
 0x80e   : > { %v2747_v14 = vadd.f32 %v2746_v21, %v5431_v5  ;;  %v2750_v30 = vmax.f32 %v2743_v9, 0.0  ;;  %v5782_v9 = vld [vmem:[#allocation28_spill] sm:$0xff]  ;;  %v5785_v21 = vld [vmem:[#allocation31_spill] sm:$0xff] }
 0x80f   : > { %v2751_v16 = vmax.f32 %v2745_v18, 0.0  ;;  %v5784_v18 = vld [vmem:[#allocation30_spill] sm:$0xff] }
 0x810   : > { %v2752_v1 = vmax.f32 %v2747_v14, 0.0  ;;  %v5786_v14 = vld [vmem:[#allocation32_spill] sm:$0xff] }
 0x811   : > { %v2753_v34 = vpack.c.bf16 %v2751_v16, %v2749_v13  ;;  %v5787_v13 = vld [vmem:[#allocation33_spill] sm:$0xff]  ;;  %v5788_v16 = vld [vmem:[#allocation34_spill] sm:$0xff] }
 0x812   : > { %v2754_v27 = vpack.c.bf16 %v2752_v1, %v2750_v30  ;;  %v5775_v1 = vld [vmem:[#allocation21_spill] sm:$0xff]  ;;  %v5789_v30 = vld [vmem:[#allocation35_spill] sm:$0xff] }
 0x814   : > { %2787 = vmatprep.mubr.bf16.mxu1 %v2754_v27  ;;  %v5777_v27 = vld [vmem:[#allocation23_spill] sm:$0xff] }
 0x815   : > { %2788 = vmatmul.mubr.bf16.vlgmr.msra.gmra.mrb[20].mxu1 %v2753_v34  ;;  %v5776_v34 = vld [vmem:[#allocation22_spill] sm:$0xff] }
 0x816   : > { %2858 = vmatpush1.bf16.msra.mxu1 %v5132_v4 }
 0x817   : > { %2859 = vmatprep.subr.bf16.mxu1 %v5136_v49 }
 0x81a   : > { %2860 = vmatpush1.bf16.msra.mxu1 %v5138_v50 }
 0x81b   : > { %2861 = vmatprep.subr.bf16.mxu1 %v5140_v51 }
 0x81e   : > { %2862 = vmatpush1.bf16.msra.mxu1 %v5144_v52 }
 0x81f   : > { %2863 = vmatprep.subr.bf16.mxu1 %v5147_v53 }
 0x822   : > { %2864 = vmatpush1.bf16.msra.mxu1 %v5150_v54 }
 0x823   : > { %2865 = vmatprep.subr.bf16.mxu1 %v5153_v55 }
 0x826   : > { %2866 = vmatpush1.bf16.msra.mxu1 %v5156_v56 }
 0x827   : > { %2867 = vmatprep.subr.bf16.mxu1 %v5159_v57 }
 0x82a   : > { %2868 = vmatpush1.bf16.msra.mxu1 %v5162_v58 }
 0x82b   : > { %2869 = vmatprep.subr.bf16.mxu1 %v5165_v59 }
 0x82e   : > { %2870 = vmatpush1.bf16.msra.mxu1 %v5168_v60 }
 0x82f   : > { %2871 = vmatprep.subr.bf16.mxu1 %v5171_v61 }
 0x832   : > { %2872 = vmatpush1.bf16.msra.mxu1 %v5775_v1 }
 0x833   : > { %2873 = vmatprep.subr.bf16.mxu1 %v5776_v34 }
 0x836   : > { %2874 = vmatpush1.bf16.msra.mxu1 %v5777_v27 }
 0x837   : > { %2875 = vmatprep.subr.bf16.mxu1 %v5778_v63 }
 0x83a   : > { %2876 = vmatpush1.bf16.msra.mxu1 %v5779_v6 }
 0x83b   : > { %2877 = vmatprep.subr.bf16.mxu1 %v5780_v7  ;;  %v5791_v7 = vld [vmem:[#allocation37_spill] sm:$0xff] }
 0x83e   : > { %2878 = vmatpush1.bf16.msra.mxu1 %v5781_v8  ;;  %v5792_v8 = vld [vmem:[#allocation20_spill] sm:$0xff] }
 0x83f   : > { %2879 = vmatprep.subr.bf16.mxu1 %v5782_v9 }
 0x842   : > { %2880 = vmatpush1.bf16.msra.mxu1 %v5783_v10 }
 0x843   : > { %2881 = vmatprep.subr.bf16.mxu1 %v5784_v18 }
 0x846   : > { %2882 = vmatpush1.bf16.msra.mxu1 %v5785_v21 }
 0x847   : > { %2883 = vmatprep.subr.bf16.mxu1 %v5786_v14 }
 0x84a   : > { %2884 = vmatpush1.bf16.msra.mxu1 %v5787_v13 }
 0x84b   : > { %2885 = vmatprep.subr.bf16.mxu1 %v5788_v16 }
 0x84e   : > { %2886 = vmatpush1.bf16.msra.mxu1 %v5789_v30 }
 0x84f   : > { %2887 = vmatprep.subr.bf16.mxu1 %v5790_v3 }
 0x852   : > { %2888 = vmatpush1.bf16.msra.mxu1 %v5791_v7 }
 0x853   : > { %2955 = vmatprep.subr.bf16.mxu1 %v5792_v8 }
 0x8e8   : > { %v2789_v9 = vpop.f32.mrb[20].mxu1 }
 0x8e9   : > { %v2790_v10 = vadd.f32 %v2789_v9, %v5386_v17  ;;  %v2791_v18 = vpop.f32.mrb[21].mxu1 }
 0x8ea   : > { %v2792_v21 = vadd.f32 %v2791_v18, %v5389_v33  ;;  %v2793_v6 = vpop.f32.mrb[22].mxu1 }
 0x8eb   : > { %v2794_v14 = vadd.f32 %v2793_v6, %v5386_v17  ;;  %v2795_v13 = vpop.f32.mrb[23].mxu1  ;;  %v2798_v63 = vmax.f32 %v2790_v10, 0.0 }
 0x8ec   : > { %v2796_v16 = vadd.f32 %v2795_v13, %v5389_v33  ;;  %v2799_v27 = vmax.f32 %v2792_v21, 0.0 }
 0x8ed   : > { %v2800_v30 = vmax.f32 %v2794_v14, 0.0 }
 0x8ee   : > { %v2801_v3 = vmax.f32 %v2796_v16, 0.0 }
 0x8ef   : > { %v2802_v34 = vpack.c.bf16 %v2800_v30, %v2798_v63  ;;  %v5795_v30 = vld [vmem:[#allocation40_spill] sm:$0xff] }
 0x8f0   : > { %v2803_v7 = vpack.c.bf16 %v2801_v3, %v2799_v27  ;;  %v5793_v3 = vld [vmem:[#allocation47_spill] sm:$0xff] }
 0x8f2   : > { %2836 = vmatprep.mubr.bf16.mxu0 %v2803_v7 }
 0x8f3   : > { %2837 = vmatmul.mubr.bf16.vlgmr.msra.gmra.mrb[32].mxu0 %v2802_v34  ;;  %v5794_v34 = vld [vmem:[#allocation38_spill] sm:$0xff] }
 0x8f4   : > { %2907 = vmatpush1.bf16.msra.mxu0 %v5236_v62 }
 0x8f5   : > { %2908 = vmatprep.subr.bf16.mxu0 %v5238_v0 }
 0x8f8   : > { %2909 = vmatpush1.bf16.msra.mxu0 %v5242_v35 }
 0x8f9   : > { %2910 = vmatprep.subr.bf16.mxu0 %v5245_v36 }
 0x8fc   : > { %2911 = vmatpush1.bf16.msra.mxu0 %v5248_v37 }
 0x8fd   : > { %2912 = vmatprep.subr.bf16.mxu0 %v5251_v38 }
 0x900   : > { %2913 = vmatpush1.bf16.msra.mxu0 %v5254_v39 }
 0x901   : > { %2914 = vmatprep.subr.bf16.mxu0 %v5257_v40 }
 0x904   : > { %2915 = vmatpush1.bf16.msra.mxu0 %v5260_v41 }
 0x905   : > { %2916 = vmatprep.subr.bf16.mxu0 %v5263_v42 }
 0x908   : > { %2917 = vmatpush1.bf16.msra.mxu0 %v5266_v43 }
 0x909   : > { %2918 = vmatprep.subr.bf16.mxu0 %v5269_v44 }
 0x90c   : > { %2919 = vmatpush1.bf16.msra.mxu0 %v5774_v48 }
 0x90d   : > { %2920 = vmatprep.subr.bf16.mxu0 %v5276_v23 }
 0x910   : > { %2921 = vmatpush1.bf16.msra.mxu0 %v5282_v29 }
 0x911   : > { %2922 = vmatprep.subr.bf16.mxu0 %v5289_v12 }
 0x914   : > { %2923 = vmatpush1.bf16.msra.mxu0 %v5298_v46 }
 0x915   : > { %2924 = vmatprep.subr.bf16.mxu0 %v5301_v22 }
 0x918   : > { %2925 = vmatpush1.bf16.msra.mxu0 %v5305_v47 }
 0x919   : > { %2926 = vmatprep.subr.bf16.mxu0 %v5309_v24 }
 0x91c   : > { %2927 = vmatpush1.bf16.msra.mxu0 %v5313_v25 }
 0x91d   : > { %2928 = vmatprep.subr.bf16.mxu0 %v5317_v28 }
 0x920   : > { %2929 = vmatpush1.bf16.msra.mxu0 %v5321_v45 }
 0x921   : > { %2930 = vmatprep.subr.bf16.mxu0 %v5325_v26 }
 0x924   : > { %2931 = vmatpush1.bf16.msra.mxu0 %v5329_v11 }
 0x925   : > { %2932 = vmatprep.subr.bf16.mxu0 %v5333_v32 }
 0x928   : > { %2933 = vmatpush1.bf16.msra.mxu0 %v5363_v15 }
 0x929   : > { %2934 = vmatprep.subr.bf16.mxu0 %v5366_v19 }
 0x92c   : > { %2935 = vmatpush1.bf16.msra.mxu0 %v5368_v20 }
 0x92d   : > { %2936 = vmatprep.subr.bf16.mxu0 %v5372_v31 }
 0x930   : > { %2937 = vmatpush1.bf16.msra.mxu0 %v5793_v3 }
 0x931   : > { %3004 = vmatprep.subr.bf16.mxu0 %v5794_v34  ;;  %v5796_v34 = vld [vmem:[#allocation41_spill] sm:$0xff] }
 0x9c6   : > { %v2838_v27 = vpop.f32.mrb[32].mxu0 }
 0x9c7   : > { %v2839_v63 = vadd.f32 %v2838_v27, %v5428_v2  ;;  %v2840_v6 = vpop.f32.mrb[33].mxu0  ;;  %v5797_v27 = vld [vmem:[#allocation42_spill] sm:$0xff] }
 0x9c8   : > { %v2841_v7 = vadd.f32 %v2840_v6, %v5431_v5  ;;  %v2842_v8 = vpop.f32.mrb[34].mxu0  ;;  %v5798_v6 = vld [vmem:[#allocation43_spill] sm:$0xff] }
 0x9c9   : > { %v2843_v9 = vadd.f32 %v2842_v8, %v5428_v2  ;;  %v2844_v10 = vpop.f32.mrb[35].mxu0  ;;  %v2847_v14 = vmax.f32 %v2839_v63, 0.0  ;;  %v5814_v8 = vld [vmem:[#allocation37_spill] sm:$0xff] }
 0x9ca   : > { %v2848_v18 = vmax.f32 %v2841_v7, 0.0  ;;  %v2845_v21 = vadd.f32 %v2844_v10, %v5431_v5 }
 0x9cb   : > { %v2849_v13 = vmax.f32 %v2843_v9, 0.0  ;;  %v5519_v19 = vadd.f32 %v2847_v14, %v5798_v6 }
 0x9cc   : > { %v2850_v16 = vmax.f32 %v2845_v21, 0.0  ;;  %v5513_v31 = vadd.f32 %v2848_v18, %v5796_v34 }
 0x9cd   : > { %v5510_v3 = vadd.f32 %v2849_v13, %v5795_v30 }
 0x9ce   : > { %v5516_v20 = vadd.f32 %v2850_v16, %v5797_v27 }
 0x9cf   : > { %v2855_v63 = vpack.c.bf16 %v5510_v3, %v5519_v19 }
 0x9d0   : > { %v2856_v7 = vpack.c.bf16 %v5516_v20, %v5513_v31 }
 0x9d2   : > { %2889 = vmatprep.mubr.bf16.mxu1 %v2856_v7 }
 0x9d3   : > { %2890 = vmatmul.mubr.bf16.vlgmr.msra.gmra.mrb[24].mxu1 %v2855_v63 }
 0x9d4   : > { %2956 = vmatpush1.bf16.msra.mxu1 %v5132_v4  ;;  %v5799_v4 = vld [vmem:[#allocation22_spill] sm:$0xff] }
 0x9d5   : > { %2957 = vmatprep.subr.bf16.mxu1 %v5136_v49  ;;  %v5800_v49 = vld [vmem:[#allocation23_spill] sm:$0xff] }
 0x9d8   : > { %2958 = vmatpush1.bf16.msra.mxu1 %v5138_v50  ;;  %v5801_v50 = vld [vmem:[#allocation24_spill] sm:$0xff] }
 0x9d9   : > { %2959 = vmatprep.subr.bf16.mxu1 %v5140_v51  ;;  %v5802_v51 = vld [vmem:[#allocation25_spill] sm:$0xff] }
 0x9dc   : > { %2960 = vmatpush1.bf16.msra.mxu1 %v5144_v52  ;;  %v5803_v52 = vld [vmem:[#allocation26_spill] sm:$0xff] }
 0x9dd   : > { %2961 = vmatprep.subr.bf16.mxu1 %v5147_v53  ;;  %v5804_v53 = vld [vmem:[#allocation27_spill] sm:$0xff] }
 0x9e0   : > { %2962 = vmatpush1.bf16.msra.mxu1 %v5150_v54  ;;  %v5805_v54 = vld [vmem:[#allocation28_spill] sm:$0xff] }
 0x9e1   : > { %2963 = vmatprep.subr.bf16.mxu1 %v5153_v55  ;;  %v5806_v55 = vld [vmem:[#allocation29_spill] sm:$0xff] }
 0x9e4   : > { %2964 = vmatpush1.bf16.msra.mxu1 %v5156_v56  ;;  %v5807_v56 = vld [vmem:[#allocation30_spill] sm:$0xff] }
 0x9e5   : > { %2965 = vmatprep.subr.bf16.mxu1 %v5159_v57  ;;  %v5808_v57 = vld [vmem:[#allocation31_spill] sm:$0xff] }
 0x9e8   : > { %2966 = vmatpush1.bf16.msra.mxu1 %v5162_v58  ;;  %v5809_v58 = vld [vmem:[#allocation32_spill] sm:$0xff] }
 0x9e9   : > { %2967 = vmatprep.subr.bf16.mxu1 %v5165_v59  ;;  %v5810_v59 = vld [vmem:[#allocation33_spill] sm:$0xff] }
 0x9ec   : > { %2968 = vmatpush1.bf16.msra.mxu1 %v5168_v60  ;;  %v5811_v60 = vld [vmem:[#allocation34_spill] sm:$0xff] }
 0x9ed   : > { %2969 = vmatprep.subr.bf16.mxu1 %v5171_v61  ;;  %v5812_v61 = vld [vmem:[#allocation35_spill] sm:$0xff] }
 0x9f0   : > { %2970 = vmatpush1.bf16.msra.mxu1 %v5775_v1  ;;  %v5813_v1 = vld [vmem:[#allocation36_spill] sm:$0xff] }
 0x9f1   : > { %2971 = vmatprep.subr.bf16.mxu1 %v5799_v4 }
 0x9f4   : > { %2972 = vmatpush1.bf16.msra.mxu1 %v5800_v49  ;;  %v4550_v49 = vld [vmem:[#allocation8 + $0x208] ss:$60 sps:$4 sm:$0xff]  }
 0x9f5   : > { %2973 = vmatprep.subr.bf16.mxu1 %v5801_v50  ;;  %v4555_v50 = vld [vmem:[#allocation8 + $0x284] ss:$60 sps:$4 sm:$0xff]  }
 0x9f8   : > { %2974 = vmatpush1.bf16.msra.mxu1 %v5802_v51  ;;  %v4553_v51 = vld [vmem:[#allocation8 + $0x280] ss:$60 sps:$4 sm:$0xff]  }
 0x9f9   : > { %2975 = vmatprep.subr.bf16.mxu1 %v5803_v52  ;;  %v4558_v52 = vld [vmem:[#allocation8 + $0x2fc] ss:$60 sps:$4 sm:$0xff]  }
 0x9fc   : > { %2976 = vmatpush1.bf16.msra.mxu1 %v5804_v53  ;;  %v4556_v53 = vld [vmem:[#allocation8 + $0x2f8] ss:$60 sps:$4 sm:$0xff]  }
 0x9fd   : > { %2977 = vmatprep.subr.bf16.mxu1 %v5805_v54  ;;  %v4561_v54 = vld [vmem:[#allocation8 + $0x374] ss:$60 sps:$4 sm:$0xff]  }
 0xa00   : > { %2978 = vmatpush1.bf16.msra.mxu1 %v5806_v55  ;;  %v4559_v55 = vld [vmem:[#allocation8 + $0x370] ss:$60 sps:$4 sm:$0xff]  }
 0xa01   : > { %2979 = vmatprep.subr.bf16.mxu1 %v5807_v56  ;;  %v4564_v56 = vld [vmem:[#allocation8 + $0x3ec] ss:$60 sps:$4 sm:$0xff]  }
 0xa04   : > { %2980 = vmatpush1.bf16.msra.mxu1 %v5808_v57  ;;  %v4562_v57 = vld [vmem:[#allocation8 + $0x3e8] ss:$60 sps:$4 sm:$0xff]  }
 0xa05   : > { %2981 = vmatprep.subr.bf16.mxu1 %v5809_v58  ;;  %v4567_v58 = vld [vmem:[#allocation8 + $0x464] ss:$60 sps:$4 sm:$0xff]  }
 0xa08   : > { %2982 = vmatpush1.bf16.msra.mxu1 %v5810_v59  ;;  %v4565_v59 = vld [vmem:[#allocation8 + $0x460] ss:$60 sps:$4 sm:$0xff]  }
 0xa09   : > { %2983 = vmatprep.subr.bf16.mxu1 %v5811_v60  ;;  %v4570_v60 = vld [vmem:[#allocation8 + $0x4dc] ss:$60 sps:$4 sm:$0xff]  }
 0xa0c   : > { %2984 = vmatpush1.bf16.msra.mxu1 %v5812_v61  ;;  %v4568_v61 = vld [vmem:[#allocation8 + $0x4d8] ss:$60 sps:$4 sm:$0xff]  }
 0xa0d   : > { %2985 = vmatprep.subr.bf16.mxu1 %v5813_v1  ;;  %v4573_v1 = vld [vmem:[#allocation8 + $0x554] ss:$60 sps:$4 sm:$0xff]  }
 0xa10   : > { %2986 = vmatpush1.bf16.msra.mxu1 %v5814_v8  ;;  %v4571_v8 = vld [vmem:[#allocation8 + $0x550] ss:$60 sps:$4 sm:$0xff]  }
 0xaa6   : > { %v2891_v9 = vpop.f32.mrb[24].mxu1 }
 0xaa7   : > { %v2892_v10 = vadd.f32 %v2891_v9, %v5386_v17  ;;  %v2893_v18 = vpop.f32.mrb[25].mxu1  ;;  %v4576_v9 = vld [vmem:[#allocation8 + $0x5cc] ss:$60 sps:$4 sm:$0xff]  }
 0xaa8   : > { %v2894_v21 = vadd.f32 %v2893_v18, %v5389_v33  ;;  %v2895_v14 = vpop.f32.mrb[26].mxu1 }
 0xaa9   : > { %v2896_v13 = vadd.f32 %v2895_v14, %v5386_v17  ;;  %v2897_v16 = vpop.f32.mrb[27].mxu1  ;;  %v2900_v34 = vmax.f32 %v2892_v10, 0.0  ;;  %v4574_v10 = vld [vmem:[#allocation8 + $0x5c8] ss:$60 sps:$4 sm:$0xff]  }
 0xaaa   : > { %v2898_v30 = vadd.f32 %v2897_v16, %v5389_v33  ;;  %v2901_v6 = vmax.f32 %v2894_v21, 0.0 }
 0xaab   : > { %v2902_v27 = vmax.f32 %v2896_v13, 0.0 }
 0xaac   : > { %v2903_v7 = vmax.f32 %v2898_v30, 0.0 }
 0xaad   : > { %v2904_v63 = vpack.c.bf16 %v2902_v27, %v2900_v34 }
 0xaae   : > { %v2905_v4 = vpack.c.bf16 %v2903_v7, %v2901_v6 }
 0xab0   : > { %2938 = vmatprep.mubr.bf16.mxu0 %v2905_v4 }
 0xab1   : > { %2939 = vmatmul.mubr.bf16.vlgmr.msra.gmra.mrb[36].mxu0 %v2904_v63 }
 0xab2   : > { %3005 = vmatpush1.bf16.msra.mxu0 %v5236_v62  ;;  %v5816_v62 = vld [vmem:[#allocation45_spill] sm:$0xff] }
 0xab3   : > { %3006 = vmatprep.subr.bf16.mxu0 %v5238_v0  ;;  %v5817_v0 = vld [vmem:[#allocation46_spill] sm:$0xff] }
 0xab6   : > { %3007 = vmatpush1.bf16.msra.mxu0 %v5242_v35  ;;  %v5818_v35 = vld [vmem:[#allocation47_spill] sm:$0xff] }
 0xab7   : > { %3008 = vmatprep.subr.bf16.mxu0 %v5245_v36 }
 0xaba   : > { %3009 = vmatpush1.bf16.msra.mxu0 %v5248_v37 }
 0xabb   : > { %3010 = vmatprep.subr.bf16.mxu0 %v5251_v38 }
 0xabe   : > { %3011 = vmatpush1.bf16.msra.mxu0 %v5254_v39 }
 0xabf   : > { %3012 = vmatprep.subr.bf16.mxu0 %v5257_v40 }
 0xac2   : > { %3013 = vmatpush1.bf16.msra.mxu0 %v5260_v41 }
 0xac3   : > { %3014 = vmatprep.subr.bf16.mxu0 %v5263_v42 }
 0xac6   : > { %3015 = vmatpush1.bf16.msra.mxu0 %v5266_v43 }
 0xac7   : > { %3016 = vmatprep.subr.bf16.mxu0 %v5269_v44 }
 0xaca   : > { %3017 = vmatpush1.bf16.msra.mxu0 %v5774_v48  ;;  %v4552_v48 = vld [vmem:[#allocation8 + $0x20c] ss:$60 sps:$4 sm:$0xff]  }
 0xacb   : > { %3018 = vmatprep.subr.bf16.mxu0 %v5276_v23 }
 0xace   : > { %3019 = vmatpush1.bf16.msra.mxu0 %v5282_v29 }
 0xacf   : > { %3020 = vmatprep.subr.bf16.mxu0 %v5289_v12  ;;  %v5815_v12 = vld [vmem:[#allocation44_spill] sm:$0xff] }
 0xad2   : > { %3021 = vmatpush1.bf16.msra.mxu0 %v5298_v46 }
 0xad3   : > { %3022 = vmatprep.subr.bf16.mxu0 %v5301_v22  ;;  %v4540_v22 = vld [vmem:[#allocation8 + $0x2c] ss:$60 sps:$4 sm:$0xff]  }
 0xad4   : > { %3261 = vmatprep.subr.bf16.mxu1 %v4540_v22 }
 0xad6   : > { %3023 = vmatpush1.bf16.msra.mxu0 %v5305_v47  ;;  %v4543_v47 = vld [vmem:[#allocation8 + $0xa4] ss:$60 sps:$4 sm:$0xff]  }
 0xad7   : > { %3024 = vmatprep.subr.bf16.mxu0 %v5309_v24  ;;  %v4541_v24 = vld [vmem:[#allocation8 + $0xa0] ss:$60 sps:$4 sm:$0xff]  }
 0xada   : > { %3025 = vmatpush1.bf16.msra.mxu0 %v5313_v25  ;;  %v4546_v25 = vld [vmem:[#allocation8 + $0x11c] ss:$60 sps:$4 sm:$0xff]  }
 0xadb   : > { %3026 = vmatprep.subr.bf16.mxu0 %v5317_v28  ;;  %v4544_v28 = vld [vmem:[#allocation8 + $0x118] ss:$60 sps:$4 sm:$0xff]  }
 0xade   : > { %3027 = vmatpush1.bf16.msra.mxu0 %v5321_v45  ;;  %v4549_v45 = vld [vmem:[#allocation8 + $0x194] ss:$60 sps:$4 sm:$0xff]  }
 0xadf   : > { %3028 = vmatprep.subr.bf16.mxu0 %v5325_v26  ;;  %v4547_v26 = vld [vmem:[#allocation8 + $0x190] ss:$60 sps:$4 sm:$0xff]  }
 0xae2   : > { %3029 = vmatpush1.bf16.msra.mxu0 %v5329_v11 }
 0xae3   : > { %3030 = vmatprep.subr.bf16.mxu0 %v5333_v32  ;;  %v4538_v32 = vld [vmem:[#allocation8 + $0x28] ss:$60 sps:$4 sm:$0xff]  }
 0xae6   : > { %3031 = vmatpush1.bf16.msra.mxu0 %v5363_v15 }
 0xae7   : > { %3032 = vmatprep.subr.bf16.mxu0 %v5815_v12 }
 0xaea   : > { %3033 = vmatpush1.bf16.msra.mxu0 %v5816_v62 }
 0xaeb   : > { %3034 = vmatprep.subr.bf16.mxu0 %v5817_v0  ;;  %v4579_v0 = vld [vmem:[#allocation8 + $0x644] ss:$60 sps:$4 sm:$0xff]  }
 0xaee   : > { %3035 = vmatpush1.bf16.msra.mxu0 %v5818_v35  ;;  %v4577_v35 = vld [vmem:[#allocation8 + $0x640] ss:$60 sps:$4 sm:$0xff]  }
 0xb84   : > { %v2940_v36 = vpop.f32.mrb[36].mxu0 }
 0xb85   : > { %v2941_v37 = vadd.f32 %v2940_v36, %v5428_v2  ;;  %v2942_v38 = vpop.f32.mrb[37].mxu0  ;;  %v4582_v36 = vld [vmem:[#allocation8 + $0x6bc] ss:$60 sps:$4 sm:$0xff]  }
 0xb86   : > { %v2943_v39 = vadd.f32 %v2942_v38, %v5431_v5  ;;  %v2944_v40 = vpop.f32.mrb[38].mxu0  ;;  %v4583_v38 = vld [vmem:[#allocation8 + $0x730] ss:$60 sps:$4 sm:$0xff]  }
 0xb87   : > { %v2945_v11 = vadd.f32 %v2944_v40, %v5428_v2  ;;  %v2946_v41 = vpop.f32.mrb[39].mxu0  ;;  %v2949_v42 = vmax.f32 %v2941_v37, 0.0  ;;  %v4580_v37 = vld [vmem:[#allocation8 + $0x6b8] ss:$60 sps:$4 sm:$0xff]   ;;  %v4588_v40 = vld [vmem:[#allocation8 + $0x470] ss:$60 sps:$4 sm:$0xff]  }
 0xb88   : > { %v2947_v15 = vadd.f32 %v2946_v41, %v5431_v5  ;;  %v2950_v44 = vmax.f32 %v2943_v39, 0.0  ;;  %v4587_v39 = vld [vmem:[#allocation8 + $0x38] ss:$60 sps:$4 sm:$0xff]   ;;  %v4590_v41 = vld [vmem:[#allocation8 + $0x4e8] ss:$60 sps:$4 sm:$0xff]  }
 0xb89   : > { %v2951_v43 = vmax.f32 %v2945_v11, 0.0  ;;  %v4589_v11 = vld [vmem:[#allocation8 + $0xb0] ss:$60 sps:$4 sm:$0xff]  }
 0xb8a   : > { %v2952_v46 = vmax.f32 %v2947_v15, 0.0  ;;  %v4591_v15 = vld [vmem:[#allocation8 + $0x128] ss:$60 sps:$4 sm:$0xff]  }
 0xb8b   : > { %v2953_v23 = vpack.c.bf16 %v2951_v43, %v2949_v42  ;;  %v4592_v42 = vld [vmem:[#allocation8 + $0x560] ss:$60 sps:$4 sm:$0xff]  }
 0xb8c   : > { %v2954_v29 = vpack.c.bf16 %v2952_v46, %v2950_v44  ;;  %v4593_v43 = vld [vmem:[#allocation8 + $0x1a0] ss:$60 sps:$4 sm:$0xff]   ;;  %v4594_v44 = vld [vmem:[#allocation8 + $0x5d8] ss:$60 sps:$4 sm:$0xff]  }
 0xb8d   : > { %v4595_v46 = vld [vmem:[#allocation8 + $0x218] ss:$60 sps:$4 sm:$0xff]  }
 0xb8e   : > { %2987 = vmatprep.mubr.bf16.mxu1 %v2954_v29 }
 0xb8f   : > { %2988 = vmatmul.mubr.bf16.vlgmr.msra.gmra.mrb[28].mxu1 %v2953_v23  ;;  %v4596_v23 = vld [vmem:[#allocation8 + $0x650] ss:$60 sps:$4 sm:$0xff]  }
 0xb90   : > { %3262 = vmatpush1.bf16.msra.mxu1 %v4538_v32 }
 0xb91   : > { %3263 = vmatprep.subr.bf16.mxu1 %v4543_v47 }
 0xb94   : > { %3264 = vmatpush1.bf16.msra.mxu1 %v4541_v24 }
 0xb95   : > { %3265 = vmatprep.subr.bf16.mxu1 %v4546_v25 }
 0xb98   : > { %3266 = vmatpush1.bf16.msra.mxu1 %v4544_v28 }
 0xb99   : > { %3267 = vmatprep.subr.bf16.mxu1 %v4549_v45 }
 0xb9c   : > { %3268 = vmatpush1.bf16.msra.mxu1 %v4547_v26 }
 0xb9d   : > { %3269 = vmatprep.subr.bf16.mxu1 %v4552_v48 }
 0xba0   : > { %3270 = vmatpush1.bf16.msra.mxu1 %v4550_v49 }
 0xba1   : > { %3271 = vmatprep.subr.bf16.mxu1 %v4555_v50 }
 0xba4   : > { %3272 = vmatpush1.bf16.msra.mxu1 %v4553_v51 }
 0xba5   : > { %3273 = vmatprep.subr.bf16.mxu1 %v4558_v52 }
 0xba8   : > { %3274 = vmatpush1.bf16.msra.mxu1 %v4556_v53 }
 0xba9   : > { %3275 = vmatprep.subr.bf16.mxu1 %v4561_v54 }
 0xbac   : > { %3276 = vmatpush1.bf16.msra.mxu1 %v4559_v55 }
 0xbad   : > { %3277 = vmatprep.subr.bf16.mxu1 %v4564_v56 }
 0xbb0   : > { %3278 = vmatpush1.bf16.msra.mxu1 %v4562_v57  ;;  %v4597_v57 = vld [vmem:[#allocation8 + $0x290] ss:$60 sps:$4 sm:$0xff]  }
 0xbb1   : > { %3279 = vmatprep.subr.bf16.mxu1 %v4567_v58  ;;  %v4599_v58 = vld [vmem:[#allocation8 + $0x308] ss:$60 sps:$4 sm:$0xff]  }
 0xbb4   : > { %3280 = vmatpush1.bf16.msra.mxu1 %v4565_v59  ;;  %v4601_v59 = vld [vmem:[#allocation8 + $0x380] ss:$60 sps:$4 sm:$0xff]  }
 0xbb5   : > { %3281 = vmatprep.subr.bf16.mxu1 %v4570_v60 }
 0xbb8   : > { %3282 = vmatpush1.bf16.msra.mxu1 %v4568_v61 }
 0xbb9   : > { %3283 = vmatprep.subr.bf16.mxu1 %v4573_v1 }
 0xbbc   : > { %3284 = vmatpush1.bf16.msra.mxu1 %v4571_v8 }
 0xbbd   : > { %3285 = vmatprep.subr.bf16.mxu1 %v4576_v9 }
 0xbc0   : > { %3286 = vmatpush1.bf16.msra.mxu1 %v4574_v10 }
 0xbc1   : > { %3287 = vmatprep.subr.bf16.mxu1 %v4579_v0 }
 0xbc4   : > { %3288 = vmatpush1.bf16.msra.mxu1 %v4577_v35 }
 0xbc5   : > { %3289 = vmatprep.subr.bf16.mxu1 %v4582_v36 }
 0xbc8   : > { %3290 = vmatpush1.bf16.msra.mxu1 %v4580_v37 }
 0xc62   : > { %v2989_v18 = vpop.f32.mrb[28].mxu1 }
 0xc63   : > { %v2990_v21 = vadd.f32 %v2989_v18, %v5386_v17  ;;  %v2991_v14 = vpop.f32.mrb[29].mxu1 }
 0xc64   : > { %v2992_v13 = vadd.f32 %v2991_v14, %v5389_v33  ;;  %v2993_v16 = vpop.f32.mrb[30].mxu1 }
 0xc65   : > { %v2994_v30 = vadd.f32 %v2993_v16, %v5386_v17  ;;  %v2995_v34 = vpop.f32.mrb[31].mxu1  ;;  %v2998_v6 = vmax.f32 %v2990_v21, 0.0  ;;  %v4585_v17 = vld [vmem:[#allocation8 + $0x734] ss:$60 sps:$4 sm:$0xff]  }
 0xc66   : > { %v2996_v27 = vadd.f32 %v2995_v34, %v5389_v33  ;;  %v2999_v63 = vmax.f32 %v2992_v13, 0.0  ;;  %3291 = vmatprep.subr.bf16.mxu1 %v4585_v17  ;;  %v4586_v33 = vld [vmem:[#allocation8 + $0x3f8] ss:$60 sps:$4 sm:$0xff]  }
 0xc67   : > { %v3000_v7 = vmax.f32 %v2994_v30, 0.0  ;;  %3292 = vmatpush1.bf16.msra.mxu1 %v4583_v38  ;;  %4016 = vmatprep.subr.bf16.mxu0 %v4586_v33  ;;  %v5821_v38 = vld [vmem:[#allocation48_spill] sm:$0xff] }
 0xc68   : > { %v3001_v4 = vmax.f32 %v2996_v27, 0.0 }
 0xc69   : > { %v3002_v12 = vpack.c.bf16 %v3000_v7, %v2998_v6  ;;  %v1693_v7 = vpop.xlane.xlu1 %1692 }
 0xc6a   : > { %v3003_v62 = vpack.c.bf16 %v3001_v4, %v2999_v63  ;;  %4606 = vrcp.f32 %v1693_v7 }
 0xc6c   : > { %3036 = vmatprep.mubr.bf16.mxu0 %v3003_v62  ;;  %v3942_v62 = vld [vmem:[#allocation10 + $0x14] ss:$0 sm:$0xff] }
 0xc6d   : > { %3037 = vmatmul.mubr.bf16.vlgmr.msra.gmra.mrb[40].mxu0 %v3002_v12  ;;  %v1695_v63 = vpop.xlane.xlu1 %1694 }
 0xc6e   : > { %4017 = vmatpush3.bf16.msra.mxu0 %v4587_v39  ;;  %4608 = vrcp.f32 %v1695_v63 }
 0xc6f   : > { %4018 = vmatprep.subr.bf16.mxu0 %v4588_v40 }
 0xc72   : > { %4019 = vmatpush3.bf16.msra.mxu0 %v4589_v11 }
 0xc73   : > { %4020 = vmatprep.subr.bf16.mxu0 %v4590_v41  ;;  %v5822_v41 = vld [vmem:[#allocation49_spill] sm:$0xff] }
 0xc74   : > { %v4607_v12 = vpop.eup %4606 }
 0xc75   : > { %v1698_v33 = vmul.f32 %v4607_v12, %v5821_v38 }
 0xc76   : > { %4021 = vmatpush3.bf16.msra.mxu0 %v4591_v15 }
 0xc77   : > { %4022 = vmatprep.subr.bf16.mxu0 %v4592_v42 }
 0xc78   : > { %v4609_v37 = vpop.eup %4608 }
 0xc79   : > { %v1699_v15 = vmul.f32 %v4609_v37, %v5822_v41 }
 0xc7a   : > { %4023 = vmatpush3.bf16.msra.mxu0 %v4593_v43  ;;  %v5823_v43 = vld [vmem:[#allocation18_spill] sm:$0xff] }
 0xc7b   : > { %4024 = vmatprep.subr.bf16.mxu0 %v4594_v44 }
 0xc7e   : > { %4025 = vmatpush3.bf16.msra.mxu0 %v4595_v46 }
 0xc7f   : > { %4026 = vmatprep.subr.bf16.mxu0 %v4596_v23  ;;  %v5824_v23 = vld [vmem:[#allocation19_spill] sm:$0xff] }
 0xc82   : > { %4027 = vmatpush3.bf16.msra.mxu0 %v4597_v57 }
 0xd40   : > { %v3038_v29 = vpop.f32.mrb[40].mxu0 }
 0xd41   : > { %v3039_v32 = vadd.f32 %v3038_v29, %v5428_v2  ;;  %v3040_v22 = vpop.f32.mrb[41].mxu0 }
 0xd42   : > { %v3041_v47 = vadd.f32 %v3040_v22, %v5431_v5  ;;  %v3042_v24 = vpop.f32.mrb[42].mxu0 }
 0xd43   : > { %v3047_v25 = vmax.f32 %v3039_v32, 0.0  ;;  %v3043_v28 = vadd.f32 %v3042_v24, %v5428_v2  ;;  %v3044_v45 = vpop.f32.mrb[43].mxu0  ;;  %v4598_v2 = vld [vmem:[#allocation8 + $0x6c8] ss:$60 sps:$4 sm:$0xff]  }
 0xd44   : > { %v3048_v26 = vmax.f32 %v3041_v47, 0.0  ;;  %v3045_v48 = vadd.f32 %v3044_v45, %v5431_v5  ;;  %4028 = vmatprep.subr.bf16.mxu0 %v4598_v2  ;;  %v4600_v5 = vld [vmem:[#allocation8 + $0x740] ss:$60 sps:$4 sm:$0xff]  }
 0xd45   : > { %v3049_v49 = vmax.f32 %v3043_v28, 0.0  ;;  %v3051_v51 = vadd.f32 %v3047_v25, %v5519_v19  ;;  %4029 = vmatpush3.bf16.msra.mxu0 %v4599_v58  ;;  %v3087_v19 = vld [vmem:[#allocation10 + $0x10] sm:$0x3] }
 0xd46   : > { %v3050_v50 = vmax.f32 %v3045_v48, 0.0  ;;  %v3052_v53 = vadd.f32 %v3048_v26, %v5513_v31  ;;  %4030 = vmatprep.subr.bf16.mxu0 %v4600_v5  ;;  %v5820_v31 = vld [vmem:[#allocation17_spill] sm:$0xff] }
 0xd47   : > { %v3053_v52 = vadd.f32 %v3049_v49, %v5510_v3  ;;  %v5819_v3 = vld [vmem:[#allocation16_spill] sm:$0xff]  ;;  %v3098_v61 = vrot.slane %v3087_v19, %v5820_v31 }
 0xd48   : > { %v3054_v54 = vadd.f32 %v3050_v50, %v5516_v20  ;;  %v3094_v60 = vrot.slane %v3087_v19, %v5819_v3 }
 0xd49   : > { %v3088_v55 = vpack.c.bf16 %v3053_v52, %v3051_v51  ;;  %4031 = vmatpush3.bf16.msra.mxu0 %v4601_v59 }
 0xd4a   : > { %v3089_v56 = vpack.c.bf16 %v3054_v54, %v3052_v53 }
 0xd4c   : > { %3293 = vmatprep.mubr.bf16.mxu1 %v3089_v56 }
 0xd4d   : > { %3294 = vmatmul.mubr.bf16.vlgmr.msra.gmra.mrb[32].mxu1 %v3088_v55 }
 0xe20   : > { %v3295_v20 = vpop.f32.mrb[32].mxu1 }
 0xe21   : > { %v3296_v1 = vadd.f32 %v3295_v20, %v3094_v60  ;;  %v3297_v8 = vpop.f32.mrb[33].mxu1 }
 0xe22   : > { %v3298_v9 = vadd.f32 %v3297_v8, %v3098_v61  ;;  %v3299_v10 = vpop.f32.mrb[34].mxu1 }
 0xe23   : > { %v3300_v18 = vadd.f32 %v3299_v10, %v3094_v60  ;;  %v3301_v21 = vpop.f32.mrb[35].mxu1  ;;  %v3304_v13 = vmax.f32 %v3296_v1, 0.0 }
 0xe24   : > { %v3302_v14 = vadd.f32 %v3301_v21, %v3098_v61  ;;  %v3305_v30 = vmax.f32 %v3298_v9, 0.0 }
 0xe25   : > { %v3306_v16 = vmax.f32 %v3300_v18, 0.0 }
 0xe26   : > { %v3307_v34 = vmax.f32 %v3302_v14, 0.0 }
 0xe27   : > { %v3340_v27 = vpack.c.bf16 %v3306_v16, %v3304_v13 }
 0xe28   : > { %v3341_v6 = vpack.c.bf16 %v3307_v34, %v3305_v30 }
 0xe2a   : > { %3477 = vmatprep.mubr.bf16.mxu0 %v3341_v6 }
 0xe2b   : > { %3478 = vmatmul.mubr.bf16.vlgmr.msra.gmra.mrb[44].mxu0 %v3340_v27 }
 0xefe   : > { %v4032_v4 = vpop.f32.mrb[44].mxu0 }
 0xeff   : > { %v4033_v0 = vpop.f32.mrb[45].mxu0 }
 0xf00   : > { %v4034_v35 = vadd.f32 %v4033_v0, %v4032_v4  ;;  %v4035_v36 = vpop.f32.mrb[46].mxu0 }
 0xf01   : > { %v4036_v17 = vpop.f32.mrb[47].mxu0 }
 0xf02   : > { %v3480_v39 = vadd.f32 %v4034_v35, %v3942_v62  ;;  %v4037_v40 = vadd.f32 %v4036_v17, %v4035_v36 }
 0xf04   : > { %v3486_v11 = vadd.f32 %v3480_v39, %v1698_v33  ;;  %v3483_v42 = vadd.f32 %v4037_v40, %v3942_v62 }
 0xf06   : > { %v3488_v44 = vadd.f32 %v3486_v11, %v5823_v43  ;;  %v3487_v46 = vadd.f32 %v3483_v42, %v1699_v15 }
 0xf08   : > { %3490 = vst [vmem:[%s298_s24] sm:$0xff] %v3488_v44  ;;  %v3489_v29 = vadd.f32 %v3487_v46, %v5824_v23 }
 0xf0a   : > { %3491 = vst [vmem:[%s298_s24 + $0x8] sm:$0xff] %v3489_v29 }
 0xf0b   : > { %4766 = shalt.err (!%p4763_p12)
}
 0xf0c   : > { %s4767_s28 = scalar_lea.hbm %s5618_s6, 256  ;;  %s4771_s7 = scalar_lea.hbm %s5669_s5, 1024 }
 0xf0d   : > { %p4768_p0 = scmp.ne.s32.totalorder %s5618_s6, %s4767_s28  ;;  %p4772_p11 = scmp.lt.u32.totalorder %s5618_s6, %s5669_s5 }
 0xf0e   : > { %p4773_p1 = scmp.lt.u32.totalorder %s4771_s7, %s4767_s28  ;;  %p4775_p6 = scmp.lt.u32.totalorder %s4767_s28, %s5618_s6 }
 0xf0f   : > { %p4769_p5 = pnand %p4768_p0, %p5024_p4 }
 0xf10   : > { %p4774_p2 = por %p4773_p1, %p4772_p11 }
 0xf11   : > { %p4770_p10 = pneg %p4769_p5 }
 0xf12   : > { %p4776_p8 = por %p4775_p6, %p4774_p2 }
 0xf14   : > { %p4777_p13 = pnand %p4776_p8, %p4770_p10 }
 0xf16   : > { %4780 = shalt.err (!%p4777_p13)
}
 0xf17   : > { %s4844_s10 = smov 128   ;;  %s4845_s13 = smov 8  }
 0xf18   : > { %4064 = dma.vmem_to_hbm [thread:$0]  (%p5024_p4), %s5620_s26, 256, %s5618_s6, %s3493_s30, %s4844_s10, %s4844_s10, %s4845_s13  }
 0xf19 PF: > { %p4096_p3 = scmp.ge.s32.totalorder %s4827_s21, 2  ;;  %s3521_s27 = sand.u32 1, %s4815_s18  }
 0xf1a   : > { %p5825_p7 = scmp.ne.s32.totalorder %s5727_s25, 0  ;;  %s3522_s8 = scalar_lea.sflag [#allocation4], %s3521_s27 }
 0xf1c   : > { %p4084_p9 = pnand %p4096_p3, %p5825_p7 }
 0xf1e   : > { %4810 = dma.done.wait (!%p4084_p9), %s3522_s8, 256  }
 0xf1f   : > { %4812 = vsyncadd (!%p4084_p9), %s3522_s8, 4294967040  ;;  %p20_p12 = scmp.ge.s32.totalorder %s5014_s12, 6   ;;  %s5826_s18 = smov %s4819_s19 }
 0xf20   : > { %s5827_s19 = smov %s4823_s20  ;;  %s5828_s20 = smov %s5030_s17 }
 0xf21   : > { %s5829_s21 = smov %s5014_s12  ;;  %22 = sbr.rel (!%p20_p12) target bundleno = 7 (0x7), region = 101 }
 0xf28   :  { %3527 = vsyncpa [#allocation3], 1 }
 0xf29   :  { %3529 = vsyncpa [#allocation3 + $0x1], 1 }
 0xf2a   :  { %3530 = vsyncpa [#allocation6], 1 }
 0xf2b   :  { %3531 = vsyncpa [#allocation9], 1 }
 0xf2c   :  { %3532 = vsyncpa [#allocation4], 1 }
 0xf2d   :  { %3534 = vsyncpa [#allocation4 + $0x1], 1 }

</bundles_post_ra>
